<compile_context>
chip_gen: v7x
topology: tpu7x:2x2x1
jax: 0.10.0
libtpu: 0.0.40
codegen_flags: <defaults>
</compile_context>

<pallas_src>
import functools

import jax
import jax.numpy as jnp
from jax.experimental import pallas as pl
from jax.experimental.pallas import tpu as pltpu

# ----- model constants (small stand-ins for the original globals) -----------
T = 8                       # time frames per clip
H = 32                      # MLA hidden size
K = 10                      # number of classes
DR = 0.4                    # dropout prob (identity at inference)
S_VGGISH_SHAPE = (16, 8)    # per-frame patch (original VGGish uses 96x64)
C1, C2 = 8, 16              # channels of the scaled VGGish feature stack
M_VGGISH_JB = (S_VGGISH_SHAPE[0] // 4) * (S_VGGISH_SHAPE[1] // 4) * C2  # = 128
MODEL_CONF = [2, 1]
BN_EPS = 1e-5

S0, S1 = S_VGGISH_SHAPE
H1, W1 = S0, S1              # conv1 output spatial (16, 8)
H2, W2 = S0 // 2, S1 // 2    # conv2 output spatial (8, 4)
H3, W3 = S0 // 4, S1 // 4    # final spatial (4, 2)
FRAMES_PER_BLOCK = 8         # frames handled per grid step of the conv kernel


# ======================= Kernel 1: fused CNN features ========================
# Layout inside the kernel: rows = (h, frame), lanes = (w, channel).  With this
# layout every pad / tap-slice / 2x2-pool / flatten is a static ref slice or a
# static slice+concat of values, and each conv is ONE MXU matmul against a
# width-expanded block-diagonal weight (lane-dense 64-wide output).

def _cnn_features_kernel(x_ref, w1_ref, b1_ref, w2_ref, b2_ref, o_ref,
                         xpad_ref, ppad_ref, *, nb):
    # ---- zero-pad input: (h, n, w) -> (h+2, n, w+2), all in VMEM ----
    xpad_ref[...] = jnp.zeros_like(xpad_ref)
    xpad_ref[1:H1 + 1, :, 1:W1 + 1] = x_ref[...]

    # ---- conv1 (3x3, 1->C1, pad 1) + bias + relu as one matmul ----
    taps = []
    for dh in range(3):
        for dw in range(3):
            t = xpad_ref[dh:dh + H1, :, dw:dw + W1]          # (H1, nb, W1)
            taps.append(t.reshape(H1 * nb, W1))              # rows = (h, n)
    tap1 = jnp.concatenate(taps, axis=1).astype(jnp.bfloat16)  # (H1*nb, 9*W1)
    y1 = jnp.dot(tap1, w1_ref[...], preferred_element_type=jnp.float32)
    y1 = jnp.maximum(y1 + b1_ref[...], 0.0)                  # (H1*nb, W1*C1)

    # ---- maxpool 2x2 (static row-chunk / lane-chunk slices + max) ----
    even_h = jnp.concatenate([y1[2 * k * nb:(2 * k + 1) * nb, :]
                              for k in range(H2)], axis=0)
    odd_h = jnp.concatenate([y1[(2 * k + 1) * nb:(2 * k + 2) * nb, :]
                             for k in range(H2)], axis=0)
    hp = jnp.maximum(even_h, odd_h)                          # (H2*nb, W1*C1)
    even_w = jnp.concatenate([hp[:, 2 * k * C1:(2 * k + 1) * C1]
                              for k in range(W2)], axis=1)
    odd_w = jnp.concatenate([hp[:, (2 * k + 1) * C1:(2 * k + 2) * C1]
                             for k in range(W2)], axis=1)
    p1 = jnp.maximum(even_w, odd_w)                          # (H2*nb, W2*C1)

    # ---- zero-pad for conv2: (h', n, w'*C1) -> (h'+2, n, (w'+2)*C1) ----
    ppad_ref[...] = jnp.zeros_like(ppad_ref)
    ppad_ref[1:H2 + 1, :, C1:C1 + W2 * C1] = p1.reshape(H2, nb, W2 * C1)

    # ---- conv2 (3x3, C1->C2, pad 1) + bias + relu as one matmul ----
    taps2 = []
    for dh in range(3):
        for dw in range(3):
            t = ppad_ref[dh:dh + H2, :, dw * C1:(dw + W2) * C1]  # (H2, nb, W2*C1)
            taps2.append(t.reshape(H2 * nb, W2 * C1))
    tap2 = jnp.concatenate(taps2, axis=1).astype(jnp.bfloat16)   # (H2*nb, 9*W2*C1)
    y2 = jnp.dot(tap2, w2_ref[...], preferred_element_type=jnp.float32)
    y2 = jnp.maximum(y2 + b2_ref[...], 0.0)                  # (H2*nb, W2*C2)

    # ---- maxpool 2x2 ----
    even_h = jnp.concatenate([y2[2 * k * nb:(2 * k + 1) * nb, :]
                              for k in range(H3)], axis=0)
    odd_h = jnp.concatenate([y2[(2 * k + 1) * nb:(2 * k + 2) * nb, :]
                             for k in range(H3)], axis=0)
    hp2 = jnp.maximum(even_h, odd_h)                         # (H3*nb, W2*C2)
    even_w = jnp.concatenate([hp2[:, 2 * k * C2:(2 * k + 1) * C2]
                              for k in range(W3)], axis=1)
    odd_w = jnp.concatenate([hp2[:, (2 * k + 1) * C2:(2 * k + 2) * C2]
                             for k in range(W3)], axis=1)
    p2 = jnp.maximum(even_w, odd_w)                          # (H3*nb, W3*C2)

    # ---- CnnFlatten('vggish'): feature index = h*(W3*C2) + w*C2 + c ----
    feats = jnp.concatenate([p2[h * nb:(h + 1) * nb, :] for h in range(H3)],
                            axis=1)                          # (nb, 128), rows=n
    o_ref[...] = feats


def cnn_features(x_hnw, w1big, b1row, w2big, b2row):
    """x_hnw: (S0, N, S1) f32 -> features (N, M_VGGISH_JB) f32."""
    n_frames = x_hnw.shape[1]
    nb = FRAMES_PER_BLOCK
    assert n_frames % nb == 0, n_frames
    grid = (n_frames // nb,)
    return pl.pallas_call(
        functools.partial(_cnn_features_kernel, nb=nb),
        out_shape=jax.ShapeDtypeStruct((n_frames, M_VGGISH_JB), jnp.float32),
        grid=grid,
        in_specs=[
            pl.BlockSpec((H1, nb, W1), lambda i: (0, i, 0)),
            pl.BlockSpec((9 * W1, W1 * C1), lambda i: (0, 0)),
            pl.BlockSpec((1, W1 * C1), lambda i: (0, 0)),
            pl.BlockSpec((9 * W2 * C1, W2 * C2), lambda i: (0, 0)),
            pl.BlockSpec((1, W2 * C2), lambda i: (0, 0)),
        ],
        out_specs=pl.BlockSpec((nb, M_VGGISH_JB), lambda i: (i, 0)),
        scratch_shapes=[
            pltpu.VMEM((H1 + 2, nb, W1 + 2), jnp.float32),
            pltpu.VMEM((H2 + 2, nb, (W2 + 2) * C1), jnp.float32),
        ],
        compiler_params=pltpu.CompilerParams(dimension_semantics=("parallel",)),
    )(x_hnw, w1big, b1row, w2big, b2row)


# ========================= Kernel 2: fused MLA ===============================
# Grid over the batch; each step sees the (T, M) feature block of one clip so
# BatchNorm1d(T) is a per-row affine.  Columns of bnT_{scale,shift} (T, 9):
#   0: em0.norm0  1: em0.bn0  2: em0.bn1  3: em1.norm0  4: em1.bn0
#   5: att0.normv 6: att0.normf 7: att1.normv 8: att1.normf

def _mla_kernel(feats_ref, bnts_ref, bntt_ref,
                w00_ref, b00_ref, w01_ref, b01_ref, w10_ref, b10_ref,
                wa0_ref, ba0_ref, wa1_ref, ba1_ref,
                wm_ref, bm_ref, sk_ref, tk_ref, o_ref):
    def bn_t(i):
        return bnts_ref[:, i:i + 1], bntt_ref[:, i:i + 1]    # (T, 1) each

    def fc_bn_relu(h, w_ref, b_ref, bn_idx):
        y = jnp.dot(h.astype(jnp.bfloat16), w_ref[...],
                    preferred_element_type=jnp.float32) + b_ref[...]
        s, t = bn_t(bn_idx)
        return jnp.maximum(y * s + t, 0.0)

    # EmbeddedMapping 0 (n_fc=2, is_first=True); dropout == identity (eval)
    s, t = bn_t(0)
    h = feats_ref[...] * s + t
    h = fc_bn_relu(h, w00_ref, b00_ref, 1)
    emb0 = fc_bn_relu(h, w01_ref, b01_ref, 2)
    # EmbeddedMapping 1 (n_fc=1)
    s, t = bn_t(3)
    emb1 = fc_bn_relu(emb0 * s + t, w10_ref, b10_ref, 4)

    def attention(emb, w_ref, b_ref, v_idx, f_idx):
        # NB: the original PyTorch AttentionModule reuses fcv for both branches.
        v = jnp.dot(emb.astype(jnp.bfloat16), w_ref[...],
                    preferred_element_type=jnp.float32) + b_ref[...]   # (T, K)
        sv, tv = bn_t(v_idx)
        sf, tf = bn_t(f_idx)
        logits = v * sv + tv
        logits = logits - jnp.max(logits, axis=-1, keepdims=True)
        e = jnp.exp(logits)
        att = e * pl.reciprocal(jnp.sum(e, axis=-1, keepdims=True), approx=True)
        z = v * sf + tf
        cla = pl.reciprocal(1.0 + jnp.exp(-z), approx=True)            # sigmoid
        inv_norm = pl.reciprocal(jnp.sum(att, axis=0, keepdims=True), approx=True)
        return jnp.sum(cla * att * inv_norm, axis=0, keepdims=True)    # (1, K)

    y0 = attention(emb0, wa0_ref, ba0_ref, 5, 6)
    y1 = attention(emb1, wa1_ref, ba1_ref, 7, 8)
    conc = jnp.concatenate([y0, y1], axis=1)                           # (1, 2K)

    z = jnp.dot(conc.astype(jnp.bfloat16), wm_ref[...],
                preferred_element_type=jnp.float32) + bm_ref[...]
    z = z * sk_ref[...] + tk_ref[...]            # BatchNorm1d(K) == per-col affine
    out = 1.0 / (1.0 + jnp.exp(-z))              # exact sigmoid for the output
    o_ref[...] = out.reshape(1, 1, K)


def mla_forward(feats, p):
    """feats: (B*T, M_VGGISH_JB) f32 -> (B, K) f32."""
    n_rows = feats.shape[0]
    assert n_rows % T == 0
    batch = n_rows // T

    args = (feats, p["bnT_scale"], p["bnT_shift"],
            p["w_em0_0"], p["b_em0_0"], p["w_em0_1"], p["b_em0_1"],
            p["w_em1_0"], p["b_em1_0"],
            p["w_att0"], p["b_att0"], p["w_att1"], p["b_att1"],
            p["w_mla"], p["b_mla"], p["s_mla"], p["t_mla"])

    def full(a):
        return pl.BlockSpec(a.shape, lambda i: (0,) * a.ndim)

    in_specs = [pl.BlockSpec((T, M_VGGISH_JB), lambda i: (i, 0))]
    in_specs += [full(a) for a in args[1:]]

    out = pl.pallas_call(
        _mla_kernel,
        out_shape=jax.ShapeDtypeStruct((batch, 1, K), jnp.float32),
        grid=(batch,),
        in_specs=in_specs,
        out_specs=pl.BlockSpec((1, 1, K), lambda i: (i, 0, 0)),
        compiler_params=pltpu.CompilerParams(dimension_semantics=("parallel",)),
    )(*args)
    return out.reshape(batch, K)


# ============================ parameters =====================================

def _bn_fold(key, c):
    """Deterministic BatchNorm params folded into (scale, shift) of shape (c,)."""
    k1, k2, k3, k4 = jax.random.split(key, 4)
    gamma = 1.0 + 0.1 * jax.random.normal(k1, (c,), jnp.float32)
    beta = 0.1 * jax.random.normal(k2, (c,), jnp.float32)
    mean = 0.1 * jax.random.normal(k3, (c,), jnp.float32)
    var = 1.0 + 0.1 * jnp.abs(jax.random.normal(k4, (c,), jnp.float32))
    scale = gamma / jnp.sqrt(var + BN_EPS)
    shift = beta - mean * scale
    return scale, shift


def init_params(key):
    keys = iter(jax.random.split(key, 64))
    p = {}

    # ---- scaled VGGish-style conv stack (synthetic weights) ----
    w1 = 0.2 * jax.random.normal(next(keys), (9, C1), jnp.float32)      # (tap, Cout)
    b1 = 0.05 * jax.random.normal(next(keys), (C1,), jnp.float32)
    w2 = 0.2 * jax.random.normal(next(keys), (9, C1, C2), jnp.float32)  # (tap, Cin, Cout)
    b2 = 0.05 * jax.random.normal(next(keys), (C2,), jnp.float32)
    # Width-expanded block-diagonal weights so each conv is ONE lane-dense
    # MXU matmul inside the kernel (tap order = dh*3 + dw, matching the kernel).
    p["w1big"] = jnp.concatenate(
        [jnp.kron(jnp.eye(W1, dtype=jnp.float32), w1[t][None, :]) for t in range(9)],
        axis=0).astype(jnp.bfloat16)                                    # (9*W1, W1*C1)
    p["b1row"] = jnp.tile(b1, (W1,)).reshape(1, W1 * C1)
    p["w2big"] = jnp.concatenate(
        [jnp.kron(jnp.eye(W2, dtype=jnp.float32), w2[t]) for t in range(9)],
        axis=0).astype(jnp.bfloat16)                                    # (9*W2*C1, W2*C2)
    p["b2row"] = jnp.tile(b2, (W2,)).reshape(1, W2 * C2)

    # ---- MLA BatchNorm1d(T) params, packed as (T, 9) scale / shift ----
    bn_cols = [_bn_fold(next(keys), T) for _ in range(9)]
    p["bnT_scale"] = jnp.stack([s for s, _ in bn_cols], axis=1)
    p["bnT_shift"] = jnp.stack([t for _, t in bn_cols], axis=1)

    def fc(k, din, dout, w_scale=0.1):
        k1, k2 = jax.random.split(k)
        w = (w_scale * jax.random.normal(k1, (din, dout), jnp.float32))
        b = 0.05 * jax.random.normal(k2, (dout,), jnp.float32)
        return w.astype(jnp.bfloat16), b.reshape(1, dout)

    p["w_em0_0"], p["b_em0_0"] = fc(next(keys), M_VGGISH_JB, H)
    p["w_em0_1"], p["b_em0_1"] = fc(next(keys), H, H)
    p["w_em1_0"], p["b_em1_0"] = fc(next(keys), H, H)
    p["w_att0"], p["b_att0"] = fc(next(keys), H, K)
    p["w_att1"], p["b_att1"] = fc(next(keys), H, K)
    p["w_mla"], p["b_mla"] = fc(next(keys), len(MODEL_CONF) * K, K)
    sk, tk = _bn_fold(next(keys), K)
    p["s_mla"] = sk.reshape(1, K)
    p["t_mla"] = tk.reshape(1, K)
    return p


# ============================== forward ======================================

def ensemble_forward(x, p):
    """x: (B, T, S0, S1) float32 -> (B, K) float32."""
    batch = x.shape[0]
    assert x.shape == (batch, T, S0, S1)
    n_frames = batch * T
    # Input module ('vggish'): reshape to (-1, 1, S0, S1).  With C == 1 the
    # NCHW->NHWC move is a no-op; we only lay frames out as (h, frame, w) for
    # the fused conv kernel (one tiny transpose, ~8 KB).
    x_hnw = jnp.transpose(x.reshape(n_frames, S0, S1), (1, 0, 2))
    feats = cnn_features(x_hnw, p["w1big"], p["b1row"], p["w2big"], p["b2row"])
    return mla_forward(feats, p)


if __name__ == "__main__":
    key = jax.random.PRNGKey(0)
    kp, kx = jax.random.split(key)
    params = init_params(kp)
    x = jax.random.normal(kx, (2, T, S0, S1), jnp.float32)
    fwd = jax.jit(ensemble_forward)
    out = jax.block_until_ready(fwd(x, params))
    assert out.shape == (2, K), out.shape
    assert bool(jnp.all(jnp.isfinite(out)))
    assert bool(jnp.all((out >= 0.0) & (out <= 1.0)))  # final sigmoid
    print("KERNEL_OK")
</pallas_src>

<mosaic_0001>
module attributes {stable_mosaic.version = 11 : i64} {
  func.func @_cnn_features_kernel(%arg0: i32, %arg1: memref<16x8x8xf32, #tpu.memory_space<vmem>>, %arg2: memref<72x64xbf16, #tpu.memory_space<vmem>>, %arg3: memref<1x64xf32, #tpu.memory_space<vmem>>, %arg4: memref<288x64xbf16, #tpu.memory_space<vmem>>, %arg5: memref<1x64xf32, #tpu.memory_space<vmem>>, %arg6: memref<8x128xf32, #tpu.memory_space<vmem>>, %arg7: memref<18x8x10xf32, #tpu.memory_space<vmem>>, %arg8: memref<10x8x48xf32, #tpu.memory_space<vmem>>) attributes {dimension_semantics = [#tpu.dimension_semantics<parallel>], iteration_bounds = array<i64: 2>, scalar_prefetch = 0 : i64, scratch_operands = 2 : i64, tpu.core_type = #tpu.core_type<tc>, window_params = [{transform_indices = @transform_0, window_bounds = array<i64: 16, 8, 8>}, {pipeline_mode = #tpu.pipeline_mode<synchronous>, transform_indices = @transform_1, window_bounds = array<i64: 72, 64>}, {pipeline_mode = #tpu.pipeline_mode<synchronous>, transform_indices = @transform_2, window_bounds = array<i64: 1, 64>}, {pipeline_mode = #tpu.pipeline_mode<synchronous>, transform_indices = @transform_3, window_bounds = array<i64: 288, 64>}, {pipeline_mode = #tpu.pipeline_mode<synchronous>, transform_indices = @transform_4, window_bounds = array<i64: 1, 64>}, {transform_indices = @transform_5, window_bounds = array<i64: 8, 128>}]} {
    %cst = arith.constant 0.000000e+00 : f32
    %0 = vector.broadcast %cst : f32 to vector<18x8x10xf32>
    %c0 = arith.constant 0 : index
    %c0_0 = arith.constant 0 : index
    %c0_1 = arith.constant 0 : index
    %1 = vector.load %arg7[%c0, %c0_0, %c0_1] : memref<18x8x10xf32, #tpu.memory_space<vmem>>, vector<18x8x10xf32>
    tpu.vector_store %arg7[%c0, %c0_0, %c0_1], %0 {strides = array<i32>} : memref<18x8x10xf32, #tpu.memory_space<vmem>>, vector<18x8x10xf32>,
    %c0_2 = arith.constant 0 : index
    %c0_3 = arith.constant 0 : index
    %c0_4 = arith.constant 0 : index
    %2 = vector.load %arg1[%c0_2, %c0_3, %c0_4] : memref<16x8x8xf32, #tpu.memory_space<vmem>>, vector<16x8x8xf32>
    %c1 = arith.constant 1 : index
    %c0_5 = arith.constant 0 : index
    %c1_6 = arith.constant 1 : index
    %3 = vector.load %arg7[%c1, %c0_5, %c1_6] : memref<18x8x10xf32, #tpu.memory_space<vmem>>, vector<16x8x8xf32>
    tpu.vector_store %arg7[%c1, %c0_5, %c1_6], %2 {strides = array<i32>} : memref<18x8x10xf32, #tpu.memory_space<vmem>>, vector<16x8x8xf32>,
    %c0_7 = arith.constant 0 : index
    %c0_8 = arith.constant 0 : index
    %c0_9 = arith.constant 0 : index
    %4 = vector.load %arg7[%c0_7, %c0_8, %c0_9] : memref<18x8x10xf32, #tpu.memory_space<vmem>>, vector<16x8x8xf32>
    %5 = vector.shape_cast %4 : vector<16x8x8xf32> to vector<128x8xf32>
    %c0_10 = arith.constant 0 : index
    %c0_11 = arith.constant 0 : index
    %c1_12 = arith.constant 1 : index
    %6 = vector.load %arg7[%c0_10, %c0_11, %c1_12] : memref<18x8x10xf32, #tpu.memory_space<vmem>>, vector<16x8x8xf32>
    %7 = vector.shape_cast %6 : vector<16x8x8xf32> to vector<128x8xf32>
    %c0_13 = arith.constant 0 : index
    %c0_14 = arith.constant 0 : index
    %c2 = arith.constant 2 : index
    %8 = vector.load %arg7[%c0_13, %c0_14, %c2] : memref<18x8x10xf32, #tpu.memory_space<vmem>>, vector<16x8x8xf32>
    %9 = vector.shape_cast %8 : vector<16x8x8xf32> to vector<128x8xf32>
    %c1_15 = arith.constant 1 : index
    %c0_16 = arith.constant 0 : index
    %c0_17 = arith.constant 0 : index
    %10 = vector.load %arg7[%c1_15, %c0_16, %c0_17] : memref<18x8x10xf32, #tpu.memory_space<vmem>>, vector<16x8x8xf32>
    %11 = vector.shape_cast %10 : vector<16x8x8xf32> to vector<128x8xf32>
    %c1_18 = arith.constant 1 : index
    %c0_19 = arith.constant 0 : index
    %c1_20 = arith.constant 1 : index
    %12 = vector.load %arg7[%c1_18, %c0_19, %c1_20] : memref<18x8x10xf32, #tpu.memory_space<vmem>>, vector<16x8x8xf32>
    %13 = vector.shape_cast %12 : vector<16x8x8xf32> to vector<128x8xf32>
    %c1_21 = arith.constant 1 : index
    %c0_22 = arith.constant 0 : index
    %c2_23 = arith.constant 2 : index
    %14 = vector.load %arg7[%c1_21, %c0_22, %c2_23] : memref<18x8x10xf32, #tpu.memory_space<vmem>>, vector<16x8x8xf32>
    %15 = vector.shape_cast %14 : vector<16x8x8xf32> to vector<128x8xf32>
    %c2_24 = arith.constant 2 : index
    %c0_25 = arith.constant 0 : index
    %c0_26 = arith.constant 0 : index
    %16 = vector.load %arg7[%c2_24, %c0_25, %c0_26] : memref<18x8x10xf32, #tpu.memory_space<vmem>>, vector<16x8x8xf32>
    %17 = vector.shape_cast %16 : vector<16x8x8xf32> to vector<128x8xf32>
    %c2_27 = arith.constant 2 : index
    %c0_28 = arith.constant 0 : index
    %c1_29 = arith.constant 1 : index
    %18 = vector.load %arg7[%c2_27, %c0_28, %c1_29] : memref<18x8x10xf32, #tpu.memory_space<vmem>>, vector<16x8x8xf32>
    %19 = vector.shape_cast %18 : vector<16x8x8xf32> to vector<128x8xf32>
    %c2_30 = arith.constant 2 : index
    %c0_31 = arith.constant 0 : index
    %c2_32 = arith.constant 2 : index
    %20 = vector.load %arg7[%c2_30, %c0_31, %c2_32] : memref<18x8x10xf32, #tpu.memory_space<vmem>>, vector<16x8x8xf32>
    %21 = vector.shape_cast %20 : vector<16x8x8xf32> to vector<128x8xf32>
    %22 = tpu.concatenate %5, %7, %9, %11, %13, %15, %17, %19, %21 in 1 : vector<128x8xf32>, vector<128x8xf32>, vector<128x8xf32>, vector<128x8xf32>, vector<128x8xf32>, vector<128x8xf32>, vector<128x8xf32>, vector<128x8xf32>, vector<128x8xf32> -> vector<128x72xf32>
    %23 = arith.truncf %22 : vector<128x72xf32> to vector<128x72xbf16>
    %c0_33 = arith.constant 0 : index
    %c0_34 = arith.constant 0 : index
    %24 = vector.load %arg2[%c0_33, %c0_34] : memref<72x64xbf16, #tpu.memory_space<vmem>>, vector<72x64xbf16>
    %cst_35 = arith.constant dense<0.000000e+00> : vector<128x64xf32>
    %25 = tpu.matmul %23, %24, %cst_35 {dimension_numbers = #tpu.dot_dimension_numbers<[1], [0], [0], [1], [0, 0, 1, 1], [], []>} : vector<128x72xbf16>, vector<72x64xbf16>, vector<128x64xf32> -> vector<128x64xf32>
    %c0_36 = arith.constant 0 : index
    %c0_37 = arith.constant 0 : index
    %26 = vector.load %arg3[%c0_36, %c0_37] : memref<1x64xf32, #tpu.memory_space<vmem>>, vector<1x64xf32>
    %27 = vector.broadcast %26 : vector<1x64xf32> to vector<128x64xf32>
    %28 = arith.addf %25, %27 : vector<128x64xf32>
    %cst_38 = arith.constant 0.000000e+00 : f32
    %29 = vector.broadcast %cst_38 : f32 to vector<128x64xf32>
    %30 = arith.maximumf %28, %29 : vector<128x64xf32>
    %31 = vector.extract_strided_slice %30 {offsets = [0, 0], sizes = [8, 64], strides = [1, 1]} : vector<128x64xf32> to vector<8x64xf32>
    %32 = vector.extract_strided_slice %30 {offsets = [16, 0], sizes = [8, 64], strides = [1, 1]} : vector<128x64xf32> to vector<8x64xf32>
    %33 = vector.extract_strided_slice %30 {offsets = [32, 0], sizes = [8, 64], strides = [1, 1]} : vector<128x64xf32> to vector<8x64xf32>
    %34 = vector.extract_strided_slice %30 {offsets = [48, 0], sizes = [8, 64], strides = [1, 1]} : vector<128x64xf32> to vector<8x64xf32>
    %35 = vector.extract_strided_slice %30 {offsets = [64, 0], sizes = [8, 64], strides = [1, 1]} : vector<128x64xf32> to vector<8x64xf32>
    %36 = vector.extract_strided_slice %30 {offsets = [80, 0], sizes = [8, 64], strides = [1, 1]} : vector<128x64xf32> to vector<8x64xf32>
    %37 = vector.extract_strided_slice %30 {offsets = [96, 0], sizes = [8, 64], strides = [1, 1]} : vector<128x64xf32> to vector<8x64xf32>
    %38 = vector.extract_strided_slice %30 {offsets = [112, 0], sizes = [8, 64], strides = [1, 1]} : vector<128x64xf32> to vector<8x64xf32>
    %39 = tpu.concatenate %31, %32, %33, %34, %35, %36, %37, %38 in 0 : vector<8x64xf32>, vector<8x64xf32>, vector<8x64xf32>, vector<8x64xf32>, vector<8x64xf32>, vector<8x64xf32>, vector<8x64xf32>, vector<8x64xf32> -> vector<64x64xf32>
    %40 = vector.extract_strided_slice %30 {offsets = [8, 0], sizes = [8, 64], strides = [1, 1]} : vector<128x64xf32> to vector<8x64xf32>
    %41 = vector.extract_strided_slice %30 {offsets = [24, 0], sizes = [8, 64], strides = [1, 1]} : vector<128x64xf32> to vector<8x64xf32>
    %42 = vector.extract_strided_slice %30 {offsets = [40, 0], sizes = [8, 64], strides = [1, 1]} : vector<128x64xf32> to vector<8x64xf32>
    %43 = vector.extract_strided_slice %30 {offsets = [56, 0], sizes = [8, 64], strides = [1, 1]} : vector<128x64xf32> to vector<8x64xf32>
    %44 = vector.extract_strided_slice %30 {offsets = [72, 0], sizes = [8, 64], strides = [1, 1]} : vector<128x64xf32> to vector<8x64xf32>
    %45 = vector.extract_strided_slice %30 {offsets = [88, 0], sizes = [8, 64], strides = [1, 1]} : vector<128x64xf32> to vector<8x64xf32>
    %46 = vector.extract_strided_slice %30 {offsets = [104, 0], sizes = [8, 64], strides = [1, 1]} : vector<128x64xf32> to vector<8x64xf32>
    %47 = vector.extract_strided_slice %30 {offsets = [120, 0], sizes = [8, 64], strides = [1, 1]} : vector<128x64xf32> to vector<8x64xf32>
    %48 = tpu.concatenate %40, %41, %42, %43, %44, %45, %46, %47 in 0 : vector<8x64xf32>, vector<8x64xf32>, vector<8x64xf32>, vector<8x64xf32>, vector<8x64xf32>, vector<8x64xf32>, vector<8x64xf32>, vector<8x64xf32> -> vector<64x64xf32>
    %49 = arith.maximumf %39, %48 : vector<64x64xf32>
    %50 = vector.extract_strided_slice %49 {offsets = [0, 0], sizes = [64, 8], strides = [1, 1]} : vector<64x64xf32> to vector<64x8xf32>
    %51 = vector.extract_strided_slice %49 {offsets = [0, 16], sizes = [64, 8], strides = [1, 1]} : vector<64x64xf32> to vector<64x8xf32>
    %52 = vector.extract_strided_slice %49 {offsets = [0, 32], sizes = [64, 8], strides = [1, 1]} : vector<64x64xf32> to vector<64x8xf32>
    %53 = vector.extract_strided_slice %49 {offsets = [0, 48], sizes = [64, 8], strides = [1, 1]} : vector<64x64xf32> to vector<64x8xf32>
    %54 = tpu.concatenate %50, %51, %52, %53 in 1 : vector<64x8xf32>, vector<64x8xf32>, vector<64x8xf32>, vector<64x8xf32> -> vector<64x32xf32>
    %55 = vector.extract_strided_slice %49 {offsets = [0, 8], sizes = [64, 8], strides = [1, 1]} : vector<64x64xf32> to vector<64x8xf32>
    %56 = vector.extract_strided_slice %49 {offsets = [0, 24], sizes = [64, 8], strides = [1, 1]} : vector<64x64xf32> to vector<64x8xf32>
    %57 = vector.extract_strided_slice %49 {offsets = [0, 40], sizes = [64, 8], strides = [1, 1]} : vector<64x64xf32> to vector<64x8xf32>
    %58 = vector.extract_strided_slice %49 {offsets = [0, 56], sizes = [64, 8], strides = [1, 1]} : vector<64x64xf32> to vector<64x8xf32>
    %59 = tpu.concatenate %55, %56, %57, %58 in 1 : vector<64x8xf32>, vector<64x8xf32>, vector<64x8xf32>, vector<64x8xf32> -> vector<64x32xf32>
    %60 = arith.maximumf %54, %59 : vector<64x32xf32>
    %cst_39 = arith.constant 0.000000e+00 : f32
    %61 = vector.broadcast %cst_39 : f32 to vector<10x8x48xf32>
    %c0_40 = arith.constant 0 : index
    %c0_41 = arith.constant 0 : index
    %c0_42 = arith.constant 0 : index
    %62 = vector.load %arg8[%c0_40, %c0_41, %c0_42] : memref<10x8x48xf32, #tpu.memory_space<vmem>>, vector<10x8x48xf32>
    tpu.vector_store %arg8[%c0_40, %c0_41, %c0_42], %61 {strides = array<i32>} : memref<10x8x48xf32, #tpu.memory_space<vmem>>, vector<10x8x48xf32>,
    %63 = vector.shape_cast %60 : vector<64x32xf32> to vector<8x8x32xf32>
    %c1_43 = arith.constant 1 : index
    %c0_44 = arith.constant 0 : index
    %c8 = arith.constant 8 : index
    %64 = vector.load %arg8[%c1_43, %c0_44, %c8] : memref<10x8x48xf32, #tpu.memory_space<vmem>>, vector<8x8x32xf32>
    tpu.vector_store %arg8[%c1_43, %c0_44, %c8], %63 {strides = array<i32>} : memref<10x8x48xf32, #tpu.memory_space<vmem>>, vector<8x8x32xf32>,
    %c0_45 = arith.constant 0 : index
    %c0_46 = arith.constant 0 : index
    %c0_47 = arith.constant 0 : index
    %65 = vector.load %arg8[%c0_45, %c0_46, %c0_47] : memref<10x8x48xf32, #tpu.memory_space<vmem>>, vector<8x8x32xf32>
    %66 = vector.shape_cast %65 : vector<8x8x32xf32> to vector<64x32xf32>
    %c0_48 = arith.constant 0 : index
    %c0_49 = arith.constant 0 : index
    %c8_50 = arith.constant 8 : index
    %67 = vector.load %arg8[%c0_48, %c0_49, %c8_50] : memref<10x8x48xf32, #tpu.memory_space<vmem>>, vector<8x8x32xf32>
    %68 = vector.shape_cast %67 : vector<8x8x32xf32> to vector<64x32xf32>
    %c0_51 = arith.constant 0 : index
    %c0_52 = arith.constant 0 : index
    %c16 = arith.constant 16 : index
    %69 = vector.load %arg8[%c0_51, %c0_52, %c16] : memref<10x8x48xf32, #tpu.memory_space<vmem>>, vector<8x8x32xf32>
    %70 = vector.shape_cast %69 : vector<8x8x32xf32> to vector<64x32xf32>
    %c1_53 = arith.constant 1 : index
    %c0_54 = arith.constant 0 : index
    %c0_55 = arith.constant 0 : index
    %71 = vector.load %arg8[%c1_53, %c0_54, %c0_55] : memref<10x8x48xf32, #tpu.memory_space<vmem>>, vector<8x8x32xf32>
    %72 = vector.shape_cast %71 : vector<8x8x32xf32> to vector<64x32xf32>
    %c1_56 = arith.constant 1 : index
    %c0_57 = arith.constant 0 : index
    %c8_58 = arith.constant 8 : index
    %73 = vector.load %arg8[%c1_56, %c0_57, %c8_58] : memref<10x8x48xf32, #tpu.memory_space<vmem>>, vector<8x8x32xf32>
    %74 = vector.shape_cast %73 : vector<8x8x32xf32> to vector<64x32xf32>
    %c1_59 = arith.constant 1 : index
    %c0_60 = arith.constant 0 : index
    %c16_61 = arith.constant 16 : index
    %75 = vector.load %arg8[%c1_59, %c0_60, %c16_61] : memref<10x8x48xf32, #tpu.memory_space<vmem>>, vector<8x8x32xf32>
    %76 = vector.shape_cast %75 : vector<8x8x32xf32> to vector<64x32xf32>
    %c2_62 = arith.constant 2 : index
    %c0_63 = arith.constant 0 : index
    %c0_64 = arith.constant 0 : index
    %77 = vector.load %arg8[%c2_62, %c0_63, %c0_64] : memref<10x8x48xf32, #tpu.memory_space<vmem>>, vector<8x8x32xf32>
    %78 = vector.shape_cast %77 : vector<8x8x32xf32> to vector<64x32xf32>
    %c2_65 = arith.constant 2 : index
    %c0_66 = arith.constant 0 : index
    %c8_67 = arith.constant 8 : index
    %79 = vector.load %arg8[%c2_65, %c0_66, %c8_67] : memref<10x8x48xf32, #tpu.memory_space<vmem>>, vector<8x8x32xf32>
    %80 = vector.shape_cast %79 : vector<8x8x32xf32> to vector<64x32xf32>
    %c2_68 = arith.constant 2 : index
    %c0_69 = arith.constant 0 : index
    %c16_70 = arith.constant 16 : index
    %81 = vector.load %arg8[%c2_68, %c0_69, %c16_70] : memref<10x8x48xf32, #tpu.memory_space<vmem>>, vector<8x8x32xf32>
    %82 = vector.shape_cast %81 : vector<8x8x32xf32> to vector<64x32xf32>
    %83 = tpu.concatenate %66, %68, %70, %72, %74, %76, %78, %80, %82 in 1 : vector<64x32xf32>, vector<64x32xf32>, vector<64x32xf32>, vector<64x32xf32>, vector<64x32xf32>, vector<64x32xf32>, vector<64x32xf32>, vector<64x32xf32>, vector<64x32xf32> -> vector<64x288xf32>
    %84 = arith.truncf %83 : vector<64x288xf32> to vector<64x288xbf16>
    %c0_71 = arith.constant 0 : index
    %c0_72 = arith.constant 0 : index
    %85 = vector.load %arg4[%c0_71, %c0_72] : memref<288x64xbf16, #tpu.memory_space<vmem>>, vector<288x64xbf16>
    %cst_73 = arith.constant dense<0.000000e+00> : vector<64x64xf32>
    %86 = tpu.matmul %84, %85, %cst_73 {dimension_numbers = #tpu.dot_dimension_numbers<[1], [0], [0], [1], [0, 0, 1, 1], [], []>} : vector<64x288xbf16>, vector<288x64xbf16>, vector<64x64xf32> -> vector<64x64xf32>
    %c0_74 = arith.constant 0 : index
    %c0_75 = arith.constant 0 : index
    %87 = vector.load %arg5[%c0_74, %c0_75] : memref<1x64xf32, #tpu.memory_space<vmem>>, vector<1x64xf32>
    %88 = vector.broadcast %87 : vector<1x64xf32> to vector<64x64xf32>
    %89 = arith.addf %86, %88 : vector<64x64xf32>
    %cst_76 = arith.constant 0.000000e+00 : f32
    %90 = vector.broadcast %cst_76 : f32 to vector<64x64xf32>
    %91 = arith.maximumf %89, %90 : vector<64x64xf32>
    %92 = vector.extract_strided_slice %91 {offsets = [0, 0], sizes = [8, 64], strides = [1, 1]} : vector<64x64xf32> to vector<8x64xf32>
    %93 = vector.extract_strided_slice %91 {offsets = [16, 0], sizes = [8, 64], strides = [1, 1]} : vector<64x64xf32> to vector<8x64xf32>
    %94 = vector.extract_strided_slice %91 {offsets = [32, 0], sizes = [8, 64], strides = [1, 1]} : vector<64x64xf32> to vector<8x64xf32>
    %95 = vector.extract_strided_slice %91 {offsets = [48, 0], sizes = [8, 64], strides = [1, 1]} : vector<64x64xf32> to vector<8x64xf32>
    %96 = tpu.concatenate %92, %93, %94, %95 in 0 : vector<8x64xf32>, vector<8x64xf32>, vector<8x64xf32>, vector<8x64xf32> -> vector<32x64xf32>
    %97 = vector.extract_strided_slice %91 {offsets = [8, 0], sizes = [8, 64], strides = [1, 1]} : vector<64x64xf32> to vector<8x64xf32>
    %98 = vector.extract_strided_slice %91 {offsets = [24, 0], sizes = [8, 64], strides = [1, 1]} : vector<64x64xf32> to vector<8x64xf32>
    %99 = vector.extract_strided_slice %91 {offsets = [40, 0], sizes = [8, 64], strides = [1, 1]} : vector<64x64xf32> to vector<8x64xf32>
    %100 = vector.extract_strided_slice %91 {offsets = [56, 0], sizes = [8, 64], strides = [1, 1]} : vector<64x64xf32> to vector<8x64xf32>
    %101 = tpu.concatenate %97, %98, %99, %100 in 0 : vector<8x64xf32>, vector<8x64xf32>, vector<8x64xf32>, vector<8x64xf32> -> vector<32x64xf32>
    %102 = arith.maximumf %96, %101 : vector<32x64xf32>
    %103 = vector.extract_strided_slice %102 {offsets = [0, 0], sizes = [32, 16], strides = [1, 1]} : vector<32x64xf32> to vector<32x16xf32>
    %104 = vector.extract_strided_slice %102 {offsets = [0, 32], sizes = [32, 16], strides = [1, 1]} : vector<32x64xf32> to vector<32x16xf32>
    %105 = tpu.concatenate %103, %104 in 1 : vector<32x16xf32>, vector<32x16xf32> -> vector<32x32xf32>
    %106 = vector.extract_strided_slice %102 {offsets = [0, 16], sizes = [32, 16], strides = [1, 1]} : vector<32x64xf32> to vector<32x16xf32>
    %107 = vector.extract_strided_slice %102 {offsets = [0, 48], sizes = [32, 16], strides = [1, 1]} : vector<32x64xf32> to vector<32x16xf32>
    %108 = tpu.concatenate %106, %107 in 1 : vector<32x16xf32>, vector<32x16xf32> -> vector<32x32xf32>
    %109 = arith.maximumf %105, %108 : vector<32x32xf32>
    %110 = vector.extract_strided_slice %109 {offsets = [0, 0], sizes = [8, 32], strides = [1, 1]} : vector<32x32xf32> to vector<8x32xf32>
    %111 = vector.extract_strided_slice %109 {offsets = [8, 0], sizes = [8, 32], strides = [1, 1]} : vector<32x32xf32> to vector<8x32xf32>
    %112 = vector.extract_strided_slice %109 {offsets = [16, 0], sizes = [8, 32], strides = [1, 1]} : vector<32x32xf32> to vector<8x32xf32>
    %113 = vector.extract_strided_slice %109 {offsets = [24, 0], sizes = [8, 32], strides = [1, 1]} : vector<32x32xf32> to vector<8x32xf32>
    %114 = tpu.concatenate %110, %111, %112, %113 in 1 : vector<8x32xf32>, vector<8x32xf32>, vector<8x32xf32>, vector<8x32xf32> -> vector<8x128xf32>
    %c0_77 = arith.constant 0 : index
    %c0_78 = arith.constant 0 : index
    %115 = vector.load %arg6[%c0_77, %c0_78] : memref<8x128xf32, #tpu.memory_space<vmem>>, vector<8x128xf32>
    tpu.vector_store %arg6[%c0_77, %c0_78], %114 {strides = array<i32>} : memref<8x128xf32, #tpu.memory_space<vmem>>, vector<8x128xf32>,
    return
  }
  func.func @transform_0(%arg0: i32) -> (i32, i32, i32) {
    %c0_i32 = arith.constant 0 : i32
    %c0_i32_0 = arith.constant 0 : i32
    %c0_i32_1 = arith.constant 0 : i32
    return %c0_i32, %arg0, %c0_i32_0 : i32, i32, i32
  }
  func.func @transform_1(%arg0: i32) -> (i32, i32) {
    %c0_i32 = arith.constant 0 : i32
    %c0_i32_0 = arith.constant 0 : i32
    %c0_i32_1 = arith.constant 0 : i32
    return %c0_i32, %c0_i32_0 : i32, i32
  }
  func.func @transform_2(%arg0: i32) -> (i32, i32) {
    %c0_i32 = arith.constant 0 : i32
    %c0_i32_0 = arith.constant 0 : i32
    %c0_i32_1 = arith.constant 0 : i32
    return %c0_i32, %c0_i32_0 : i32, i32
  }
  func.func @transform_3(%arg0: i32) -> (i32, i32) {
    %c0_i32 = arith.constant 0 : i32
    %c0_i32_0 = arith.constant 0 : i32
    %c0_i32_1 = arith.constant 0 : i32
    return %c0_i32, %c0_i32_0 : i32, i32
  }
  func.func @transform_4(%arg0: i32) -> (i32, i32) {
    %c0_i32 = arith.constant 0 : i32
    %c0_i32_0 = arith.constant 0 : i32
    %c0_i32_1 = arith.constant 0 : i32
    return %c0_i32, %c0_i32_0 : i32, i32
  }
  func.func @transform_5(%arg0: i32) -> (i32, i32) {
    %c0_i32 = arith.constant 0 : i32
    %c0_i32_0 = arith.constant 0 : i32
    return %arg0, %c0_i32 : i32, i32
  }
}

module attributes {stable_mosaic.version = 11 : i64} {
  func.func @_mla_kernel(%arg0: i32, %arg1: memref<8x128xf32, #tpu.memory_space<vmem>>, %arg2: memref<8x9xf32, #tpu.memory_space<vmem>>, %arg3: memref<8x9xf32, #tpu.memory_space<vmem>>, %arg4: memref<128x32xbf16, #tpu.memory_space<vmem>>, %arg5: memref<1x32xf32, #tpu.memory_space<vmem>>, %arg6: memref<32x32xbf16, #tpu.memory_space<vmem>>, %arg7: memref<1x32xf32, #tpu.memory_space<vmem>>, %arg8: memref<32x32xbf16, #tpu.memory_space<vmem>>, %arg9: memref<1x32xf32, #tpu.memory_space<vmem>>, %arg10: memref<32x10xbf16, #tpu.memory_space<vmem>>, %arg11: memref<1x10xf32, #tpu.memory_space<vmem>>, %arg12: memref<32x10xbf16, #tpu.memory_space<vmem>>, %arg13: memref<1x10xf32, #tpu.memory_space<vmem>>, %arg14: memref<20x10xbf16, #tpu.memory_space<vmem>>, %arg15: memref<1x10xf32, #tpu.memory_space<vmem>>, %arg16: memref<1x10xf32, #tpu.memory_space<vmem>>, %arg17: memref<1x10xf32, #tpu.memory_space<vmem>>, %arg18: memref<1x1x10xf32, #tpu.memory_space<vmem>>) attributes {dimension_semantics = [#tpu.dimension_semantics<parallel>], iteration_bounds = array<i64: 2>, scalar_prefetch = 0 : i64, scratch_operands = 0 : i64, tpu.core_type = #tpu.core_type<tc>, window_params = [{transform_indices = @transform_0, window_bounds = array<i64: 8, 128>}, {pipeline_mode = #tpu.pipeline_mode<synchronous>, transform_indices = @transform_1, window_bounds = array<i64: 8, 9>}, {pipeline_mode = #tpu.pipeline_mode<synchronous>, transform_indices = @transform_2, window_bounds = array<i64: 8, 9>}, {pipeline_mode = #tpu.pipeline_mode<synchronous>, transform_indices = @transform_3, window_bounds = array<i64: 128, 32>}, {pipeline_mode = #tpu.pipeline_mode<synchronous>, transform_indices = @transform_4, window_bounds = array<i64: 1, 32>}, {pipeline_mode = #tpu.pipeline_mode<synchronous>, transform_indices = @transform_5, window_bounds = array<i64: 32, 32>}, {pipeline_mode = #tpu.pipeline_mode<synchronous>, transform_indices = @transform_6, window_bounds = array<i64: 1, 32>}, {pipeline_mode = #tpu.pipeline_mode<synchronous>, transform_indices = @transform_7, window_bounds = array<i64: 32, 32>}, {pipeline_mode = #tpu.pipeline_mode<synchronous>, transform_indices = @transform_8, window_bounds = array<i64: 1, 32>}, {pipeline_mode = #tpu.pipeline_mode<synchronous>, transform_indices = @transform_9, window_bounds = array<i64: 32, 10>}, {pipeline_mode = #tpu.pipeline_mode<synchronous>, transform_indices = @transform_10, window_bounds = array<i64: 1, 10>}, {pipeline_mode = #tpu.pipeline_mode<synchronous>, transform_indices = @transform_11, window_bounds = array<i64: 32, 10>}, {pipeline_mode = #tpu.pipeline_mode<synchronous>, transform_indices = @transform_12, window_bounds = array<i64: 1, 10>}, {pipeline_mode = #tpu.pipeline_mode<synchronous>, transform_indices = @transform_13, window_bounds = array<i64: 20, 10>}, {pipeline_mode = #tpu.pipeline_mode<synchronous>, transform_indices = @transform_14, window_bounds = array<i64: 1, 10>}, {pipeline_mode = #tpu.pipeline_mode<synchronous>, transform_indices = @transform_15, window_bounds = array<i64: 1, 10>}, {pipeline_mode = #tpu.pipeline_mode<synchronous>, transform_indices = @transform_16, window_bounds = array<i64: 1, 10>}, {transform_indices = @transform_17, window_bounds = array<i64: 1, 1, 10>}]} {
    %c0 = arith.constant 0 : index
    %c0_0 = arith.constant 0 : index
    %0 = vector.load %arg2[%c0, %c0_0] : memref<8x9xf32, #tpu.memory_space<vmem>>, vector<8x1xf32>
    %c0_1 = arith.constant 0 : index
    %c0_2 = arith.constant 0 : index
    %1 = vector.load %arg3[%c0_1, %c0_2] : memref<8x9xf32, #tpu.memory_space<vmem>>, vector<8x1xf32>
    %c0_3 = arith.constant 0 : index
    %c0_4 = arith.constant 0 : index
    %2 = vector.load %arg1[%c0_3, %c0_4] : memref<8x128xf32, #tpu.memory_space<vmem>>, vector<8x128xf32>
    %3 = vector.broadcast %0 : vector<8x1xf32> to vector<8x128xf32>
    %4 = arith.mulf %2, %3 : vector<8x128xf32>
    %5 = vector.broadcast %1 : vector<8x1xf32> to vector<8x128xf32>
    %6 = arith.addf %4, %5 : vector<8x128xf32>
    %7 = arith.truncf %6 : vector<8x128xf32> to vector<8x128xbf16>
    %c0_5 = arith.constant 0 : index
    %c0_6 = arith.constant 0 : index
    %8 = vector.load %arg4[%c0_5, %c0_6] : memref<128x32xbf16, #tpu.memory_space<vmem>>, vector<128x32xbf16>
    %cst = arith.constant dense<0.000000e+00> : vector<8x32xf32>
    %9 = tpu.matmul %7, %8, %cst {dimension_numbers = #tpu.dot_dimension_numbers<[1], [0], [0], [1], [0, 0, 1, 1], [], []>} : vector<8x128xbf16>, vector<128x32xbf16>, vector<8x32xf32> -> vector<8x32xf32>
    %c0_7 = arith.constant 0 : index
    %c0_8 = arith.constant 0 : index
    %10 = vector.load %arg5[%c0_7, %c0_8] : memref<1x32xf32, #tpu.memory_space<vmem>>, vector<1x32xf32>
    %11 = vector.broadcast %10 : vector<1x32xf32> to vector<8x32xf32>
    %12 = arith.addf %9, %11 : vector<8x32xf32>
    %c0_9 = arith.constant 0 : index
    %c1 = arith.constant 1 : index
    %13 = vector.load %arg2[%c0_9, %c1] : memref<8x9xf32, #tpu.memory_space<vmem>>, vector<8x1xf32>
    %c0_10 = arith.constant 0 : index
    %c1_11 = arith.constant 1 : index
    %14 = vector.load %arg3[%c0_10, %c1_11] : memref<8x9xf32, #tpu.memory_space<vmem>>, vector<8x1xf32>
    %15 = vector.broadcast %13 : vector<8x1xf32> to vector<8x32xf32>
    %16 = arith.mulf %12, %15 : vector<8x32xf32>
    %17 = vector.broadcast %14 : vector<8x1xf32> to vector<8x32xf32>
    %18 = arith.addf %16, %17 : vector<8x32xf32>
    %cst_12 = arith.constant 0.000000e+00 : f32
    %19 = vector.broadcast %cst_12 : f32 to vector<8x32xf32>
    %20 = arith.maximumf %18, %19 : vector<8x32xf32>
    %21 = arith.truncf %20 : vector<8x32xf32> to vector<8x32xbf16>
    %c0_13 = arith.constant 0 : index
    %c0_14 = arith.constant 0 : index
    %22 = vector.load %arg6[%c0_13, %c0_14] : memref<32x32xbf16, #tpu.memory_space<vmem>>, vector<32x32xbf16>
    %cst_15 = arith.constant dense<0.000000e+00> : vector<8x32xf32>
    %23 = tpu.matmul %21, %22, %cst_15 {dimension_numbers = #tpu.dot_dimension_numbers<[1], [0], [0], [1], [0, 0, 1, 1], [], []>} : vector<8x32xbf16>, vector<32x32xbf16>, vector<8x32xf32> -> vector<8x32xf32>
    %c0_16 = arith.constant 0 : index
    %c0_17 = arith.constant 0 : index
    %24 = vector.load %arg7[%c0_16, %c0_17] : memref<1x32xf32, #tpu.memory_space<vmem>>, vector<1x32xf32>
    %25 = vector.broadcast %24 : vector<1x32xf32> to vector<8x32xf32>
    %26 = arith.addf %23, %25 : vector<8x32xf32>
    %c0_18 = arith.constant 0 : index
    %c2 = arith.constant 2 : index
    %27 = vector.load %arg2[%c0_18, %c2] : memref<8x9xf32, #tpu.memory_space<vmem>>, vector<8x1xf32>
    %c0_19 = arith.constant 0 : index
    %c2_20 = arith.constant 2 : index
    %28 = vector.load %arg3[%c0_19, %c2_20] : memref<8x9xf32, #tpu.memory_space<vmem>>, vector<8x1xf32>
    %29 = vector.broadcast %27 : vector<8x1xf32> to vector<8x32xf32>
    %30 = arith.mulf %26, %29 : vector<8x32xf32>
    %31 = vector.broadcast %28 : vector<8x1xf32> to vector<8x32xf32>
    %32 = arith.addf %30, %31 : vector<8x32xf32>
    %cst_21 = arith.constant 0.000000e+00 : f32
    %33 = vector.broadcast %cst_21 : f32 to vector<8x32xf32>
    %34 = arith.maximumf %32, %33 : vector<8x32xf32>
    %c0_22 = arith.constant 0 : index
    %c3 = arith.constant 3 : index
    %35 = vector.load %arg2[%c0_22, %c3] : memref<8x9xf32, #tpu.memory_space<vmem>>, vector<8x1xf32>
    %c0_23 = arith.constant 0 : index
    %c3_24 = arith.constant 3 : index
    %36 = vector.load %arg3[%c0_23, %c3_24] : memref<8x9xf32, #tpu.memory_space<vmem>>, vector<8x1xf32>
    %37 = vector.broadcast %35 : vector<8x1xf32> to vector<8x32xf32>
    %38 = arith.mulf %34, %37 : vector<8x32xf32>
    %39 = vector.broadcast %36 : vector<8x1xf32> to vector<8x32xf32>
    %40 = arith.addf %38, %39 : vector<8x32xf32>
    %41 = arith.truncf %40 : vector<8x32xf32> to vector<8x32xbf16>
    %c0_25 = arith.constant 0 : index
    %c0_26 = arith.constant 0 : index
    %42 = vector.load %arg8[%c0_25, %c0_26] : memref<32x32xbf16, #tpu.memory_space<vmem>>, vector<32x32xbf16>
    %cst_27 = arith.constant dense<0.000000e+00> : vector<8x32xf32>
    %43 = tpu.matmul %41, %42, %cst_27 {dimension_numbers = #tpu.dot_dimension_numbers<[1], [0], [0], [1], [0, 0, 1, 1], [], []>} : vector<8x32xbf16>, vector<32x32xbf16>, vector<8x32xf32> -> vector<8x32xf32>
    %c0_28 = arith.constant 0 : index
    %c0_29 = arith.constant 0 : index
    %44 = vector.load %arg9[%c0_28, %c0_29] : memref<1x32xf32, #tpu.memory_space<vmem>>, vector<1x32xf32>
    %45 = vector.broadcast %44 : vector<1x32xf32> to vector<8x32xf32>
    %46 = arith.addf %43, %45 : vector<8x32xf32>
    %c0_30 = arith.constant 0 : index
    %c4 = arith.constant 4 : index
    %47 = vector.load %arg2[%c0_30, %c4] : memref<8x9xf32, #tpu.memory_space<vmem>>, vector<8x1xf32>
    %c0_31 = arith.constant 0 : index
    %c4_32 = arith.constant 4 : index
    %48 = vector.load %arg3[%c0_31, %c4_32] : memref<8x9xf32, #tpu.memory_space<vmem>>, vector<8x1xf32>
    %49 = vector.broadcast %47 : vector<8x1xf32> to vector<8x32xf32>
    %50 = arith.mulf %46, %49 : vector<8x32xf32>
    %51 = vector.broadcast %48 : vector<8x1xf32> to vector<8x32xf32>
    %52 = arith.addf %50, %51 : vector<8x32xf32>
    %cst_33 = arith.constant 0.000000e+00 : f32
    %53 = vector.broadcast %cst_33 : f32 to vector<8x32xf32>
    %54 = arith.maximumf %52, %53 : vector<8x32xf32>
    %55 = arith.truncf %34 : vector<8x32xf32> to vector<8x32xbf16>
    %c0_34 = arith.constant 0 : index
    %c0_35 = arith.constant 0 : index
    %56 = vector.load %arg10[%c0_34, %c0_35] : memref<32x10xbf16, #tpu.memory_space<vmem>>, vector<32x10xbf16>
    %cst_36 = arith.constant dense<0.000000e+00> : vector<8x10xf32>
    %57 = tpu.matmul %55, %56, %cst_36 {dimension_numbers = #tpu.dot_dimension_numbers<[1], [0], [0], [1], [0, 0, 1, 1], [], []>} : vector<8x32xbf16>, vector<32x10xbf16>, vector<8x10xf32> -> vector<8x10xf32>
    %c0_37 = arith.constant 0 : index
    %c0_38 = arith.constant 0 : index
    %58 = vector.load %arg11[%c0_37, %c0_38] : memref<1x10xf32, #tpu.memory_space<vmem>>, vector<1x10xf32>
    %59 = vector.broadcast %58 : vector<1x10xf32> to vector<8x10xf32>
    %60 = arith.addf %57, %59 : vector<8x10xf32>
    %c0_39 = arith.constant 0 : index
    %c5 = arith.constant 5 : index
    %61 = vector.load %arg2[%c0_39, %c5] : memref<8x9xf32, #tpu.memory_space<vmem>>, vector<8x1xf32>
    %c0_40 = arith.constant 0 : index
    %c5_41 = arith.constant 5 : index
    %62 = vector.load %arg3[%c0_40, %c5_41] : memref<8x9xf32, #tpu.memory_space<vmem>>, vector<8x1xf32>
    %c0_42 = arith.constant 0 : index
    %c6 = arith.constant 6 : index
    %63 = vector.load %arg2[%c0_42, %c6] : memref<8x9xf32, #tpu.memory_space<vmem>>, vector<8x1xf32>
    %c0_43 = arith.constant 0 : index
    %c6_44 = arith.constant 6 : index
    %64 = vector.load %arg3[%c0_43, %c6_44] : memref<8x9xf32, #tpu.memory_space<vmem>>, vector<8x1xf32>
    %65 = vector.broadcast %61 : vector<8x1xf32> to vector<8x10xf32>
    %66 = arith.mulf %60, %65 : vector<8x10xf32>
    %67 = vector.broadcast %62 : vector<8x1xf32> to vector<8x10xf32>
    %68 = arith.addf %66, %67 : vector<8x10xf32>
    %cst_45 = arith.constant dense<0xFF800000> : vector<8xf32>
    %69 = vector.multi_reduction <maximumf>, %68, %cst_45 [1] : vector<8x10xf32> to vector<8xf32>
    %70 = vector.shape_cast %69 : vector<8xf32> to vector<8x1xf32>
    %71 = vector.broadcast %70 : vector<8x1xf32> to vector<8x10xf32>
    %72 = arith.subf %68, %71 : vector<8x10xf32>
    %73 = math.exp %72 : vector<8x10xf32>
    %cst_46 = arith.constant dense<0.000000e+00> : vector<8xf32>
    %74 = vector.multi_reduction <add>, %73, %cst_46 [1] : vector<8x10xf32> to vector<8xf32>
    %75 = vector.shape_cast %74 : vector<8xf32> to vector<8x1xf32>
    %76 = tpu.reciprocal %75 {approx = true} : vector<8x1xf32> -> vector<8x1xf32>
    %77 = vector.broadcast %76 : vector<8x1xf32> to vector<8x10xf32>
    %78 = arith.mulf %73, %77 : vector<8x10xf32>
    %79 = vector.broadcast %63 : vector<8x1xf32> to vector<8x10xf32>
    %80 = arith.mulf %60, %79 : vector<8x10xf32>
    %81 = vector.broadcast %64 : vector<8x1xf32> to vector<8x10xf32>
    %82 = arith.addf %80, %81 : vector<8x10xf32>
    %cst_47 = arith.constant 0.000000e+00 : f32
    %83 = vector.broadcast %cst_47 : f32 to vector<8x10xf32>
    %84 = arith.subf %83, %82 : vector<8x10xf32>
    %85 = math.exp %84 : vector<8x10xf32>
    %cst_48 = arith.constant 1.000000e+00 : f32
    %86 = vector.broadcast %cst_48 : f32 to vector<8x10xf32>
    %87 = arith.addf %86, %85 : vector<8x10xf32>
    %88 = tpu.reciprocal %87 {approx = true} : vector<8x10xf32> -> vector<8x10xf32>
    %cst_49 = arith.constant dense<0.000000e+00> : vector<10xf32>
    %89 = vector.multi_reduction <add>, %78, %cst_49 [0] : vector<8x10xf32> to vector<10xf32>
    %90 = vector.shape_cast %89 : vector<10xf32> to vector<1x10xf32>
    %91 = tpu.reciprocal %90 {approx = true} : vector<1x10xf32> -> vector<1x10xf32>
    %92 = arith.mulf %88, %78 : vector<8x10xf32>
    %93 = vector.broadcast %91 : vector<1x10xf32> to vector<8x10xf32>
    %94 = arith.mulf %92, %93 : vector<8x10xf32>
    %cst_50 = arith.constant dense<0.000000e+00> : vector<10xf32>
    %95 = vector.multi_reduction <add>, %94, %cst_50 [0] : vector<8x10xf32> to vector<10xf32>
    %96 = vector.shape_cast %95 : vector<10xf32> to vector<1x10xf32>
    %97 = arith.truncf %54 : vector<8x32xf32> to vector<8x32xbf16>
    %c0_51 = arith.constant 0 : index
    %c0_52 = arith.constant 0 : index
    %98 = vector.load %arg12[%c0_51, %c0_52] : memref<32x10xbf16, #tpu.memory_space<vmem>>, vector<32x10xbf16>
    %cst_53 = arith.constant dense<0.000000e+00> : vector<8x10xf32>
    %99 = tpu.matmul %97, %98, %cst_53 {dimension_numbers = #tpu.dot_dimension_numbers<[1], [0], [0], [1], [0, 0, 1, 1], [], []>} : vector<8x32xbf16>, vector<32x10xbf16>, vector<8x10xf32> -> vector<8x10xf32>
    %c0_54 = arith.constant 0 : index
    %c0_55 = arith.constant 0 : index
    %100 = vector.load %arg13[%c0_54, %c0_55] : memref<1x10xf32, #tpu.memory_space<vmem>>, vector<1x10xf32>
    %101 = vector.broadcast %100 : vector<1x10xf32> to vector<8x10xf32>
    %102 = arith.addf %99, %101 : vector<8x10xf32>
    %c0_56 = arith.constant 0 : index
    %c7 = arith.constant 7 : index
    %103 = vector.load %arg2[%c0_56, %c7] : memref<8x9xf32, #tpu.memory_space<vmem>>, vector<8x1xf32>
    %c0_57 = arith.constant 0 : index
    %c7_58 = arith.constant 7 : index
    %104 = vector.load %arg3[%c0_57, %c7_58] : memref<8x9xf32, #tpu.memory_space<vmem>>, vector<8x1xf32>
    %c0_59 = arith.constant 0 : index
    %c8 = arith.constant 8 : index
    %105 = vector.load %arg2[%c0_59, %c8] : memref<8x9xf32, #tpu.memory_space<vmem>>, vector<8x1xf32>
    %c0_60 = arith.constant 0 : index
    %c8_61 = arith.constant 8 : index
    %106 = vector.load %arg3[%c0_60, %c8_61] : memref<8x9xf32, #tpu.memory_space<vmem>>, vector<8x1xf32>
    %107 = vector.broadcast %103 : vector<8x1xf32> to vector<8x10xf32>
    %108 = arith.mulf %102, %107 : vector<8x10xf32>
    %109 = vector.broadcast %104 : vector<8x1xf32> to vector<8x10xf32>
    %110 = arith.addf %108, %109 : vector<8x10xf32>
    %cst_62 = arith.constant dense<0xFF800000> : vector<8xf32>
    %111 = vector.multi_reduction <maximumf>, %110, %cst_62 [1] : vector<8x10xf32> to vector<8xf32>
    %112 = vector.shape_cast %111 : vector<8xf32> to vector<8x1xf32>
    %113 = vector.broadcast %112 : vector<8x1xf32> to vector<8x10xf32>
    %114 = arith.subf %110, %113 : vector<8x10xf32>
    %115 = math.exp %114 : vector<8x10xf32>
    %cst_63 = arith.constant dense<0.000000e+00> : vector<8xf32>
    %116 = vector.multi_reduction <add>, %115, %cst_63 [1] : vector<8x10xf32> to vector<8xf32>
    %117 = vector.shape_cast %116 : vector<8xf32> to vector<8x1xf32>
    %118 = tpu.reciprocal %117 {approx = true} : vector<8x1xf32> -> vector<8x1xf32>
    %119 = vector.broadcast %118 : vector<8x1xf32> to vector<8x10xf32>
    %120 = arith.mulf %115, %119 : vector<8x10xf32>
    %121 = vector.broadcast %105 : vector<8x1xf32> to vector<8x10xf32>
    %122 = arith.mulf %102, %121 : vector<8x10xf32>
    %123 = vector.broadcast %106 : vector<8x1xf32> to vector<8x10xf32>
    %124 = arith.addf %122, %123 : vector<8x10xf32>
    %cst_64 = arith.constant 0.000000e+00 : f32
    %125 = vector.broadcast %cst_64 : f32 to vector<8x10xf32>
    %126 = arith.subf %125, %124 : vector<8x10xf32>
    %127 = math.exp %126 : vector<8x10xf32>
    %cst_65 = arith.constant 1.000000e+00 : f32
    %128 = vector.broadcast %cst_65 : f32 to vector<8x10xf32>
    %129 = arith.addf %128, %127 : vector<8x10xf32>
    %130 = tpu.reciprocal %129 {approx = true} : vector<8x10xf32> -> vector<8x10xf32>
    %cst_66 = arith.constant dense<0.000000e+00> : vector<10xf32>
    %131 = vector.multi_reduction <add>, %120, %cst_66 [0] : vector<8x10xf32> to vector<10xf32>
    %132 = vector.shape_cast %131 : vector<10xf32> to vector<1x10xf32>
    %133 = tpu.reciprocal %132 {approx = true} : vector<1x10xf32> -> vector<1x10xf32>
    %134 = arith.mulf %130, %120 : vector<8x10xf32>
    %135 = vector.broadcast %133 : vector<1x10xf32> to vector<8x10xf32>
    %136 = arith.mulf %134, %135 : vector<8x10xf32>
    %cst_67 = arith.constant dense<0.000000e+00> : vector<10xf32>
    %137 = vector.multi_reduction <add>, %136, %cst_67 [0] : vector<8x10xf32> to vector<10xf32>
    %138 = vector.shape_cast %137 : vector<10xf32> to vector<1x10xf32>
    %139 = tpu.concatenate %96, %138 in 1 : vector<1x10xf32>, vector<1x10xf32> -> vector<1x20xf32>
    %140 = arith.truncf %139 : vector<1x20xf32> to vector<1x20xbf16>
    %c0_68 = arith.constant 0 : index
    %c0_69 = arith.constant 0 : index
    %141 = vector.load %arg14[%c0_68, %c0_69] : memref<20x10xbf16, #tpu.memory_space<vmem>>, vector<20x10xbf16>
    %cst_70 = arith.constant dense<0.000000e+00> : vector<1x10xf32>
    %142 = tpu.matmul %140, %141, %cst_70 {dimension_numbers = #tpu.dot_dimension_numbers<[1], [0], [0], [1], [0, 0, 1, 1], [], []>} : vector<1x20xbf16>, vector<20x10xbf16>, vector<1x10xf32> -> vector<1x10xf32>
    %c0_71 = arith.constant 0 : index
    %c0_72 = arith.constant 0 : index
    %143 = vector.load %arg15[%c0_71, %c0_72] : memref<1x10xf32, #tpu.memory_space<vmem>>, vector<1x10xf32>
    %144 = arith.addf %142, %143 : vector<1x10xf32>
    %c0_73 = arith.constant 0 : index
    %c0_74 = arith.constant 0 : index
    %145 = vector.load %arg16[%c0_73, %c0_74] : memref<1x10xf32, #tpu.memory_space<vmem>>, vector<1x10xf32>
    %146 = arith.mulf %144, %145 : vector<1x10xf32>
    %c0_75 = arith.constant 0 : index
    %c0_76 = arith.constant 0 : index
    %147 = vector.load %arg17[%c0_75, %c0_76] : memref<1x10xf32, #tpu.memory_space<vmem>>, vector<1x10xf32>
    %148 = arith.addf %146, %147 : vector<1x10xf32>
    %cst_77 = arith.constant 0.000000e+00 : f32
    %149 = vector.broadcast %cst_77 : f32 to vector<1x10xf32>
    %150 = arith.subf %149, %148 : vector<1x10xf32>
    %151 = math.exp %150 : vector<1x10xf32>
    %cst_78 = arith.constant 1.000000e+00 : f32
    %152 = vector.broadcast %cst_78 : f32 to vector<1x10xf32>
    %153 = arith.addf %152, %151 : vector<1x10xf32>
    %cst_79 = arith.constant 1.000000e+00 : f32
    %154 = vector.broadcast %cst_79 : f32 to vector<1x10xf32>
    %155 = arith.divf %154, %153 : vector<1x10xf32>
    %156 = vector.shape_cast %155 : vector<1x10xf32> to vector<1x1x10xf32>
    %c0_80 = arith.constant 0 : index
    %c0_81 = arith.constant 0 : index
    %c0_82 = arith.constant 0 : index
    %157 = vector.load %arg18[%c0_80, %c0_81, %c0_82] : memref<1x1x10xf32, #tpu.memory_space<vmem>>, vector<1x1x10xf32>
    tpu.vector_store %arg18[%c0_80, %c0_81, %c0_82], %156 {strides = array<i32>} : memref<1x1x10xf32, #tpu.memory_space<vmem>>, vector<1x1x10xf32>,
    return
  }
  func.func @transform_0(%arg0: i32) -> (i32, i32) {
    %c0_i32 = arith.constant 0 : i32
    %c0_i32_0 = arith.constant 0 : i32
    return %arg0, %c0_i32 : i32, i32
  }
  func.func @transform_1(%arg0: i32) -> (i32, i32) {
    %c0_i32 = arith.constant 0 : i32
    %c0_i32_0 = arith.constant 0 : i32
    %c0_i32_1 = arith.constant 0 : i32
    return %c0_i32, %c0_i32_0 : i32, i32
  }
  func.func @transform_2(%arg0: i32) -> (i32, i32) {
    %c0_i32 = arith.constant 0 : i32
    %c0_i32_0 = arith.constant 0 : i32
    %c0_i32_1 = arith.constant 0 : i32
    return %c0_i32, %c0_i32_0 : i32, i32
  }
  func.func @transform_3(%arg0: i32) -> (i32, i32) {
    %c0_i32 = arith.constant 0 : i32
    %c0_i32_0 = arith.constant 0 : i32
    %c0_i32_1 = arith.constant 0 : i32
    return %c0_i32, %c0_i32_0 : i32, i32
  }
  func.func @transform_4(%arg0: i32) -> (i32, i32) {
    %c0_i32 = arith.constant 0 : i32
    %c0_i32_0 = arith.constant 0 : i32
    %c0_i32_1 = arith.constant 0 : i32
    return %c0_i32, %c0_i32_0 : i32, i32
  }
  func.func @transform_5(%arg0: i32) -> (i32, i32) {
    %c0_i32 = arith.constant 0 : i32
    %c0_i32_0 = arith.constant 0 : i32
    %c0_i32_1 = arith.constant 0 : i32
    return %c0_i32, %c0_i32_0 : i32, i32
  }
  func.func @transform_6(%arg0: i32) -> (i32, i32) {
    %c0_i32 = arith.constant 0 : i32
    %c0_i32_0 = arith.constant 0 : i32
    %c0_i32_1 = arith.constant 0 : i32
    return %c0_i32, %c0_i32_0 : i32, i32
  }
  func.func @transform_7(%arg0: i32) -> (i32, i32) {
    %c0_i32 = arith.constant 0 : i32
    %c0_i32_0 = arith.constant 0 : i32
    %c0_i32_1 = arith.constant 0 : i32
    return %c0_i32, %c0_i32_0 : i32, i32
  }
  func.func @transform_8(%arg0: i32) -> (i32, i32) {
    %c0_i32 = arith.constant 0 : i32
    %c0_i32_0 = arith.constant 0 : i32
    %c0_i32_1 = arith.constant 0 : i32
    return %c0_i32, %c0_i32_0 : i32, i32
  }
  func.func @transform_9(%arg0: i32) -> (i32, i32) {
    %c0_i32 = arith.constant 0 : i32
    %c0_i32_0 = arith.constant 0 : i32
    %c0_i32_1 = arith.constant 0 : i32
    return %c0_i32, %c0_i32_0 : i32, i32
  }
  func.func @transform_10(%arg0: i32) -> (i32, i32) {
    %c0_i32 = arith.constant 0 : i32
    %c0_i32_0 = arith.constant 0 : i32
    %c0_i32_1 = arith.constant 0 : i32
    return %c0_i32, %c0_i32_0 : i32, i32
  }
  func.func @transform_11(%arg0: i32) -> (i32, i32) {
    %c0_i32 = arith.constant 0 : i32
    %c0_i32_0 = arith.constant 0 : i32
    %c0_i32_1 = arith.constant 0 : i32
    return %c0_i32, %c0_i32_0 : i32, i32
  }
  func.func @transform_12(%arg0: i32) -> (i32, i32) {
    %c0_i32 = arith.constant 0 : i32
    %c0_i32_0 = arith.constant 0 : i32
    %c0_i32_1 = arith.constant 0 : i32
    return %c0_i32, %c0_i32_0 : i32, i32
  }
  func.func @transform_13(%arg0: i32) -> (i32, i32) {
    %c0_i32 = arith.constant 0 : i32
    %c0_i32_0 = arith.constant 0 : i32
    %c0_i32_1 = arith.constant 0 : i32
    return %c0_i32, %c0_i32_0 : i32, i32
  }
  func.func @transform_14(%arg0: i32) -> (i32, i32) {
    %c0_i32 = arith.constant 0 : i32
    %c0_i32_0 = arith.constant 0 : i32
    %c0_i32_1 = arith.constant 0 : i32
    return %c0_i32, %c0_i32_0 : i32, i32
  }
  func.func @transform_15(%arg0: i32) -> (i32, i32) {
    %c0_i32 = arith.constant 0 : i32
    %c0_i32_0 = arith.constant 0 : i32
    %c0_i32_1 = arith.constant 0 : i32
    return %c0_i32, %c0_i32_0 : i32, i32
  }
  func.func @transform_16(%arg0: i32) -> (i32, i32) {
    %c0_i32 = arith.constant 0 : i32
    %c0_i32_0 = arith.constant 0 : i32
    %c0_i32_1 = arith.constant 0 : i32
    return %c0_i32, %c0_i32_0 : i32, i32
  }
  func.func @transform_17(%arg0: i32) -> (i32, i32, i32) {
    %c0_i32 = arith.constant 0 : i32
    %c0_i32_0 = arith.constant 0 : i32
    %c0_i32_1 = arith.constant 0 : i32
    return %arg0, %c0_i32, %c0_i32_0 : i32, i32, i32
  }
}

</mosaic_0001>

<bundles_post_ra>
// kernel: ensemble_forward.3
= control target key start
LH: loop header
LB: loop body
LE: loop exit
PB: predicated region body
PF: predicated region fallthrough
CT: control target
= control target key end

     0   :  { %s1885_s0 = inlined_call_operand.vmem [shape: f32[16,128], index: 0, kind: input, shape index: {}]   ;;  %s1886_s1 = inlined_call_operand.vmem [shape: f32[8,9], index: 1, kind: input, shape index: {}]   ;;  %s1887_s2 = inlined_call_operand.vmem [shape: f32[8,9], index: 2, kind: input, shape index: {}]   ;;  %s1888_s3 = inlined_call_operand.vmem [shape: bf16[128,32], index: 3, kind: input, shape index: {}]   ;;  %s1889_s4 = inlined_call_operand.vmem [shape: f32[1,32], index: 4, kind: input, shape index: {}]   ;;  %s1890_s5 = inlined_call_operand.vmem [shape: bf16[32,32], index: 5, kind: input, shape index: {}]   ;;  %s1891_s6 = inlined_call_operand.vmem [shape: f32[1,32], index: 6, kind: input, shape index: {}]   ;;  %s1892_s7 = inlined_call_operand.vmem [shape: bf16[32,32], index: 7, kind: input, shape index: {}]   ;;  %s1893_s8 = inlined_call_operand.vmem [shape: f32[1,32], index: 8, kind: input, shape index: {}]   ;;  %s1894_s9 = inlined_call_operand.vmem [shape: bf16[32,10], index: 9, kind: input, shape index: {}]   ;;  %s1895_s10 = inlined_call_operand.vmem [shape: f32[1,10], index: 10, kind: input, shape index: {}]   ;;  %s1896_s11 = inlined_call_operand.vmem [shape: bf16[32,10], index: 11, kind: input, shape index: {}]   ;;  %s1897_s12 = inlined_call_operand.vmem [shape: f32[1,10], index: 12, kind: input, shape index: {}]   ;;  %s1898_s13 = inlined_call_operand.vmem [shape: bf16[20,10], index: 13, kind: input, shape index: {}]   ;;  %s1899_s14 = inlined_call_operand.vmem [shape: f32[1,10], index: 14, kind: input, shape index: {}]   ;;  %s1900_s15 = inlined_call_operand.vmem [shape: f32[1,10], index: 15, kind: input, shape index: {}]   ;;  %s1901_s16 = inlined_call_operand.vmem [shape: f32[1,10], index: 16, kind: input, shape index: {}]   ;;  %s1902_s17 = inlined_call_operand.hbm [shape: f32[2,1,10], index: 17, kind: output, shape index: {}]  }
   0x1   :  { %1904 = sst [smem:[#allocation7_spill]] %s1885_s0 }
   0x2   :  { %1905 = sst [smem:[#allocation8_spill]] %s1886_s1 }
   0x3   :  { %1906 = sst [smem:[#allocation9_spill]] %s1887_s2 }
   0x4   :  { %1907 = sst [smem:[#allocation10_spill]] %s1888_s3 }
   0x5   :  { %1908 = sst [smem:[#allocation11_spill]] %s1889_s4 }
   0x6   :  { %22 = vsyncpa [#allocation3], 0 }
   0x7   :  { %24 = vsyncpa [#allocation3 + $0x1], 0  ;;  %s1632_s24 = smov 0   ;;  %s1634_s25 = smov 0  }
   0x8   :  { %s1636_s26 = smov 0   ;;  %s1638_s27 = smov 0  }
   0x9 LB: > { %1909 = sst [smem:[#allocation5_spill]] %s1523_s26  ;;  %s1653_s28 = sadd.s32 4294967295, %s1527_s27   ;;  %s1527_s27 = sphi %s1638_s27, %s1922_s27   ;;  %s1523_s26 = sphi %s1636_s26, %s1919_s26   ;;  %s1519_s25 = sphi %s1634_s25, %s1921_s25   ;;  %s1515_s24 = sphi %s1632_s24, %s1920_s24  }
   0xa   : > { %s1237_s29 = sadd.s32 4294967294, %s1527_s27   ;;  %s1657_s0 = sadd.s32 1, %s1527_s27  }
   0xb   : > { %s399_s30 = sadd.s32 1, %s1523_s26  ;;  %s396_s18 = ssub.s32 %s1527_s27, %s1657_s0 }
   0xc   : > { %p409_p0 = scmp.ne.s32.totalorder %s1523_s26, %s1519_s25  ;;  %p397_p1 = scmp.eq.s32.totalorder %s396_s18, 0 }
   0xd   : > { %p410_p2 = scmp.eq.s32.totalorder %s1653_s28, 1  ;;  %p415_p3 = scmp.ne.s32.totalorder %s1519_s25, %s1515_s24 }
   0xe   : > { %p416_p4 = scmp.eq.s32.totalorder %s1237_s29, 1  ;;  %p1240_p7 = scmp.ge.s32.totalorder %s1527_s27, 1 }
   0xf   : > { %s1668_s19 = scalar_select %p397_p1, %s1523_s26, %s399_s30  }
  0x10   : > { %p1670_p5 = por %p410_p2, %p409_p0  ;;  %p1674_p6 = por %p416_p4, %p415_p3 }
  0x11   : > { %1910 = sst [smem:[#allocation6_spill]] %s1668_s19  ;;  %p489_p8 = scmp.lt.s32.totalorder %s1527_s27, 3 }
  0x13   : > { %p490_p9 = pnand %p1240_p7, %p489_p8 }
  0x14   : > { %s1913_s23 = sld [smem:[#allocation8_spill]] (!%p490_p9)  ;;  %v1529_v1 = vmov (!%p490_p9), 0   ;;  %v1530_v2 = vmov (!%p490_p9), 0.0   ;;  %s1914_s3 = sld [smem:[#allocation10_spill]] (!%p490_p9)  ;;  %vm1531_vm0 = vmmov (!%p490_p9), 0   ;;  %v1532_v8 = vmov (!%p490_p9), 1  }
  0x15   : > { %493 = sbr.rel (%p490_p9) target bundleno = 1782 (0x6f6), region = 88  ;;  %1408 = vset.pattern.permute.xlu0 (!%p490_p9), %v1529_v1  ;;  %1297 = vmatprep.subr.bf16.mxu0 (!%p490_p9), %v1530_v2  ;;  %s1915_s2 = sld [smem:[#allocation9_spill]] (!%p490_p9)  ;;  %v1431_v19 = vld [vmem:[%s1890_s5] sm:$0xff] (!%p490_p9)   ;;  %v1432_v20 = vld [vmem:[%s1890_s5 + $0x8] sm:$0xff] (!%p490_p9)   ;;  %v1533_v21 = vmov (!%p490_p9), 2   ;;  %v1534_v22 = vmov (!%p490_p9), 3  }
  0x16   : > { %1317 = vmatprep.subr.bf16.mxu1 (!%p490_p9), %v1530_v2  ;;  %1313 = vmatprep.mubr.msk.bf16.mxu0 (!%p490_p9), %vm1531_vm0, %v1530_v2  ;;  %p539_p10 = scmp.lt.s32.totalorder (!%p490_p9), %s1653_s28, 1  ;;  %s1916_s26 = sld [smem:[#allocation7_spill]] (!%p490_p9)  ;;  %vm706_vm1 = vcmask (!%p490_p9), 261120   ;;  %v1433_v35 = vld [vmem:[%s1892_s7] sm:$0xff] (!%p490_p9)   ;;  %v1434_v36 = vld [vmem:[%s1892_s7 + $0x8] sm:$0xff] (!%p490_p9)   ;;  %v1535_v37 = vmov (!%p490_p9), 4  }
  0x17   : > { %1321 = vmatprep.mubr.msk.bf16.mxu1 (!%p490_p9), %vm1531_vm0, %v1530_v2  ;;  %1409 = vset.pattern.permute.xlu1 (!%p490_p9), %v1532_v8  ;;  %s1917_s4 = sld [smem:[#allocation11_spill]] (!%p490_p9)  ;;  %v1536_v38 = vmov (!%p490_p9), 7   ;;  %v1537_v39 = vmov (!%p490_p9), 5   ;;  %v1251_v40 = vld [vmem:[%s1891_s6] ss:$0 sm:$0xff] (!%p490_p9)  ;;  %v1436_v57 = vld [vmem:[%s1894_s9 + $0x8] sm:$0xff] (!%p490_p9)  }
  0x18   : > { %1318 = vmatpush3.bf16.msra.mxu1 (!%p490_p9), %v1431_v19  ;;  %v1435_v55 = vld [vmem:[%s1894_s9] sm:$0xff] (!%p490_p9)   ;;  %v1438_v60 = vld [vmem:[%s1896_s11 + $0x8] sm:$0xff] (!%p490_p9)   ;;  %v1538_v61 = vmov (!%p490_p9), 8   ;;  %vm926_vm2 = vcmask (!%p490_p9), 80896   ;;  %vm1113_vm3 = vcmask (!%p490_p9), 1041408   ;;  %vm1109_vm4 = vcmask (!%p490_p9), 162816  }
  0x19   : > { %1319 = vmatprep.subr.bf16.mxu1 (!%p490_p9), %v1530_v2  ;;  %v1437_v59 = vld [vmem:[%s1896_s11] sm:$0xff] (!%p490_p9)   ;;  %s537_s30 = sand.u32 (!%p490_p9), 1, %s1519_s25   ;;  %s1270_s18 = sshll.u32 (!%p490_p9), %s1653_s28, 4  ;;  %vm1167_vm5 = vcmask (!%p490_p9), 73728  }
  0x1a   : > { %v1683_v0 = vld [vmem:[%s1913_s23] sm:$0xff] (!%p490_p9)  ;;  %v1424_v5 = vld [vmem:[%s1914_s3 + $0x8] sm:$0xff] (!%p490_p9)   ;;  %v1425_v6 = vld [vmem:[%s1914_s3 + $0x10] sm:$0xff] (!%p490_p9)   ;;  %s1843_s23 = scalar_lea.hbm (!%p490_p9), %s1902_s17, %s1270_s18 }
  0x1b   : > { %v1423_v3 = vld [vmem:[%s1914_s3] sm:$0xff] (!%p490_p9)   ;;  %549 = vperm.xlu0 (!%p490_p9), %1408, %v1683_v0   ;;  %v1426_v7 = vld [vmem:[%s1914_s3 + $0x18] sm:$0xff] (!%p490_p9)   ;;  %672 = vperm.xlu1 (!%p490_p9), %1409, %v1683_v0   ;;  %v1428_v10 = vld [vmem:[%s1914_s3 + $0x28] sm:$0xff] (!%p490_p9)  }
  0x1c   : > { %v1693_v4 = vld [vmem:[%s1915_s2] sm:$0xff]  ;;  %1298 = vmatpush3.bf16.msra.mxu0 %v1423_v3  ;;  %v1429_v11 = vld [vmem:[%s1914_s3 + $0x30] sm:$0xff]   ;;  %v1430_v12 = vld [vmem:[%s1914_s3 + $0x38] sm:$0xff]   ;;  %s540_s21 = scalar_select %p539_p10, %s1653_s28, 1  ;;  %1320 = vmatpush3.bf16.msra.mxu1 %v1432_v20 }
  0x1d   : > { %1299 = vmatprep.subr.bf16.mxu0 %v1530_v2  ;;  %v1427_v9 = vld [vmem:[%s1914_s3 + $0x20] sm:$0xff]   ;;  %1325 = vmatprep.subr.bf16.mxu1 %v1530_v2  ;;  %s1540_s2 = smov 10   ;;  %s1541_s28 = smov [#allocation2]  }
  0x1e   : > { %s1241_s22 = sshll.u32 %s540_s21, 3  ;;  %v1242_v24 = vld [vmem:[%s1917_s4] ss:$0 sm:$0xff]  ;;  %s1469_s3 = sshll.u32 %s1541_s28, 4  ;;  %s1470_s3 = int_to_ptr.vmem [resolvable:$false] %s1469_s3 }
  0x1f   : > { %555 = vperm.xlu0 %1408, %v1693_v4   ;;  %677 = vperm.xlu1 %1409, %v1693_v4   ;;  %s542_s29 = scalar_lea.vmem %s1916_s26, %s1241_s22  ;;  %v1255_v1 = vld [vmem:[%s1893_s8] ss:$0 sm:$0xff]  ;;  %s1471_s4 = scalar_lea.vmem %s1470_s3, 32 }
  0x20   : > { %1300 = vmatpush3.bf16.msra.mxu0 %v1424_v5  ;;  %v546_v14 = vld [vmem:[%s542_s29] sm:$0xff]  ;;  %s1170_s29 = scalar_lea.sflag [#allocation3], %s537_s30 }
  0x21   : > { %1301 = vmatprep.subr.bf16.mxu0 %v1530_v2 }
  0x23   : > { %1410 = vset.pattern.permute.xlu0 %v1533_v21  ;;  %1411 = vset.pattern.permute.xlu1 %v1533_v21 }
  0x24   : > { %1302 = vmatpush3.bf16.msra.mxu0 %v1425_v6  ;;  %751 = vperm.xlu0 %1410, %v1683_v0  }
  0x25   : > { %1303 = vmatprep.subr.bf16.mxu0 %v1530_v2  ;;  %756 = vperm.xlu1 %1411, %v1693_v4  }
  0x28   : > { %1304 = vmatpush3.bf16.msra.mxu0 %v1426_v7  ;;  %1413 = vset.pattern.permute.xlu0 %v1534_v22 }
  0x29   : > { %1305 = vmatprep.subr.bf16.mxu0 %v1530_v2  ;;  %1412 = vset.pattern.permute.xlu1 %v1534_v22 }
  0x2a   : > { %762 = vperm.xlu1 %1412, %v1683_v0   ;;  %767 = vperm.xlu0 %1413, %v1693_v4  }
  0x2c   : > { %1306 = vmatpush3.bf16.msra.mxu0 %v1427_v9 }
  0x2d   : > { %1307 = vmatprep.subr.bf16.mxu0 %v1530_v2 }
  0x2e   : > { %1414 = vset.pattern.permute.xlu1 %v1535_v37  ;;  %1415 = vset.pattern.permute.xlu0 %v1536_v38 }
  0x2f   : > { %839 = vperm.xlu1 %1414, %v1683_v0   ;;  %1038 = vperm.xlu0 %1415, %v1683_v0  }
  0x30   : > { %1308 = vmatpush3.bf16.msra.mxu0 %v1428_v10 }
  0x31   : > { %1309 = vmatprep.subr.bf16.mxu0 %v1530_v2 }
  0x33   : > { %844 = vperm.xlu1 %1414, %v1693_v4   ;;  %1418 = vset.pattern.permute.xlu0 %v1537_v39 }
  0x34   : > { %1310 = vmatpush3.bf16.msra.mxu0 %v1429_v11  ;;  %922 = vperm.xlu0 %1418, %v1693_v4  }
  0x35   : > { %1311 = vmatprep.subr.bf16.mxu0 %v1530_v2 }
  0x37   : > { %1416 = vset.pattern.permute.xlu1 %v1536_v38 }
  0x38   : > { %1312 = vmatpush3.bf16.msra.mxu0 %v1430_v12  ;;  %1043 = vperm.xlu1 %1416, %v1693_v4  }
  0x39   : > { %1349 = vmatprep.subr.bf16.mxu0 %v1530_v2  ;;  %1419 = vset.pattern.permute.xlu0 %v1538_v61 }
  0x3c   : > { %1417 = vset.pattern.permute.xlu1 %v1537_v39 }
  0x3d   : > { %917 = vperm.xlu1 %1417, %v1683_v0  }
  0x41   : > { %1420 = vset.pattern.permute.xlu1 %v1538_v61 }
  0x9a   : > { %v550_v13 = vpop.permute.xlu0 %549  ;;  %v673_v23 = vpop.permute.xlu1 %672 }
  0x9b   : > { %v552_v15 = vmul.f32 %v550_v13, %v546_v14  ;;  %v1259_v13 = vld [vmem:[%s1895_s10] ss:$0 sm:$0xff] }
  0x9e   : > { %v556_v16 = vpop.permute.xlu0 %555  ;;  %v678_v31 = vpop.permute.xlu1 %677 }
  0x9f   : > { %v558_v17 = vadd.f32 %v556_v16, %v552_v15 }
  0xa1   : > { %v559_v18 = vpack.c.bf16 %v558_v17, %v558_v17 }
  0xa3   : > { %1314 = vmatmul.mubr.bf16.vlgmr.msra.gmra.mrb[0].mxu0 %v559_v18  ;;  %v752_v41 = vpop.permute.xlu0 %751 }
  0xa4   : > { %1353 = vmatprep.mubr.msk.bf16.mxu0 %vm1531_vm0, %v1530_v2  ;;  %v757_v43 = vpop.permute.xlu1 %756 }
  0xa9   : > { %v763_v50 = vpop.permute.xlu1 %762  ;;  %v768_v52 = vpop.permute.xlu0 %767 }
  0xae   : > { %v840_v62 = vpop.permute.xlu1 %839  ;;  %v1039_v11 = vpop.permute.xlu0 %1038 }
  0xb2   : > { %v845_v63 = vpop.permute.xlu1 %844 }
  0xb3   : > { %v923_v21 = vpop.permute.xlu0 %922 }
  0xb7   : > { %v1044_v8 = vpop.permute.xlu1 %1043 }
  0xbc   : > { %v918_v16 = vpop.permute.xlu1 %917 }
 0x176   : > { %v665_v25 = vpop.f32.mrb[0].mxu0 }
 0x177   : > { %v666_v26 = vadd.f32 %v1242_v24, %v665_v25  ;;  %v1315_v27 = vpop.f32.mrb[1].mxu0 }
 0x178   : > { %v668_v28 = vpop.f32.mrb[2].mxu0  ;;  %v1263_v27 = vld [vmem:[%s1897_s12] ss:$0 sm:$0xff] }
 0x179   : > { %v675_v29 = vmul.f32 %v673_v23, %v666_v26  ;;  %v1316_v30 = vpop.f32.mrb[3].mxu0  ;;  %v1539_v26 = vmov 6  }
 0x17b   : > { %v680_v32 = vadd.f32 %v678_v31, %v675_v29 }
 0x17d   : > { %v681_v33 = vmax.f32 %v680_v32, 0.0 }
 0x17f   : > { %v682_v34 = vpack.c.bf16 %v681_v33, %v681_v33 }
 0x181   : > { %1322 = vmatmul.mubr.msk.bf16.vlgmr.msra.gmra.mrb[0].mxu1 %vm706_vm1, %v682_v34 }
 0x182   : > { %1329 = vmatprep.mubr.msk.bf16.mxu1 %vm1531_vm0, %v1530_v2  ;;  %1326 = vmatpush3.bf16.msra.mxu1 %v1433_v35 }
 0x183   : > { %1327 = vmatprep.subr.bf16.mxu1 %v1530_v2 }
 0x186   : > { %1328 = vmatpush3.bf16.msra.mxu1 %v1434_v36 }
 0x187   : > { %1333 = vmatprep.subr.bf16.mxu1 %v1530_v2 }
 0x254   : > { %v744_v42 = vpop.f32.mrb[0].mxu1 }
 0x255   : > { %v745_v44 = vadd.f32 %v1251_v40, %v744_v42  ;;  %v1323_v45 = vpop.f32.mrb[1].mxu1 }
 0x256   : > { %v747_v46 = vpop.f32.mrb[2].mxu1  ;;  %v1439_v45 = vld [vmem:[%s1898_s13] sm:$0xff]  }
 0x257   : > { %v754_v47 = vmul.f32 %v752_v41, %v745_v44  ;;  %v1324_v48 = vpop.f32.mrb[3].mxu1  ;;  %v1440_v46 = vld [vmem:[%s1898_s13 + $0x8] ss:$0 sps:$4 sm:$0x33]   ;;  %1350 = vmatpush3.bf16.msra.mxu0 %v1439_v45  ;;  %v1099_v45 = vld [vmem:[%s1899_s14] sm:$0x1] }
 0x258   : > { %1351 = vmatprep.subr.bf16.mxu0 %v1530_v2 }
 0x259   : > { %v759_v49 = vadd.f32 %v757_v43, %v754_v47 }
 0x25b   : > { %v760_v51 = vmax.f32 %v759_v49, 0.0 }
 0x25d   : > { %v765_v53 = vmul.f32 %v763_v50, %v760_v51  ;;  %v849_v58 = vpack.c.bf16 %v760_v51, %v760_v51 }
 0x25f   : > { %v770_v54 = vadd.f32 %v768_v52, %v765_v53 }
 0x261   : > { %v771_v56 = vpack.c.bf16 %v770_v54, %v770_v54 }
 0x263   : > { %1330 = vmatmul.mubr.msk.bf16.vlgmr.msra.gmra.mrb[4].mxu1 %vm706_vm1, %v771_v56 }
 0x264   : > { %1334 = vmatpush3.bf16.msra.mxu1 %v1435_v55  ;;  %1337 = vmatprep.mubr.msk.bf16.mxu1 %vm1531_vm0, %v1530_v2 }
 0x265   : > { %1335 = vmatprep.subr.bf16.mxu1 %v1530_v2 }
 0x268   : > { %1336 = vmatpush3.bf16.msra.mxu1 %v1436_v57 }
 0x269   : > { %1341 = vmatprep.subr.bf16.mxu1 %v1530_v2 }
 0x26b   : > { %1338 = vmatmul.mubr.msk.bf16.vlgmr.msra.gmra.mrb[8].mxu1 %vm706_vm1, %v849_v58 }
 0x26c   : > { %1345 = vmatprep.mubr.msk.bf16.mxu1 %vm1531_vm0, %v1530_v2  ;;  %1342 = vmatpush3.bf16.msra.mxu1 %v1437_v59 }
 0x26d   : > { %1343 = vmatprep.subr.bf16.mxu1 %v1530_v2 }
 0x270   : > { %1344 = vmatpush3.bf16.msra.mxu1 %v1438_v60 }
 0x336   : > { %v832_v3 = vpop.f32.mrb[4].mxu1 }
 0x337   : > { %v833_v5 = vadd.f32 %v1255_v1, %v832_v3  ;;  %v1331_v6 = vpop.f32.mrb[5].mxu1 }
 0x338   : > { %v835_v7 = vpop.f32.mrb[6].mxu1 }
 0x339   : > { %v842_v9 = vmul.f32 %v840_v62, %v833_v5  ;;  %v1332_v10 = vpop.f32.mrb[7].mxu1 }
 0x33b   : > { %v847_v12 = vadd.f32 %v845_v63, %v842_v9 }
 0x33d   : > { %v848_v14 = vmax.f32 %v847_v12, 0.0 }
 0x33e   : > { %v910_v15 = vpop.f32.mrb[8].mxu1 }
 0x33f   : > { %v970_v17 = vpack.c.bf16 %v848_v14, %v848_v14  ;;  %v1801_v18 = vadd.f32 %v1259_v13, %v910_v15  ;;  %v1339_v19 = vpop.f32.mrb[9].mxu1 }
 0x340   : > { %v913_v20 = vpop.f32.mrb[10].mxu1 }
 0x341   : > { %v920_v22 = vmul.f32 %v918_v16, %v1801_v18  ;;  %v1340_v23 = vpop.f32.mrb[11].mxu1  ;;  %1346 = vmatmul.mubr.msk.bf16.vlgmr.msra.gmra.mrb[12].mxu1 %vm706_vm1, %v970_v17 }
 0x343   : > { %v925_v24 = vadd.f32 %v923_v21, %v920_v22 }
 0x345   : > { %v927_v25 = vsel %vm926_vm2, %v925_v24, -inf }
 0x346   : > { %928 = vmax.xlane.f32.xlu0 %v927_v25 }
 0x35c   : > { %1059 = vperm.xlu0 %1419, %v1683_v0  }
 0x360   : > { %1421 = vset.pattern.permute.xlu0 %v1539_v26 }
 0x361   : > { %939 = vperm.xlu0 %1421, %v1683_v0  }
 0x365   : > { %944 = vperm.xlu0 %1421, %v1693_v4  }
 0x369   : > { %1422 = vset.pattern.permute.xlu0 %v1538_v61 }
 0x3d3   : > { %v929_v40 = vpop.xlane.xlu0 %928 }
 0x3d4   : > { %v930_v41 = vsub.f32 %v925_v24, %v929_v40 }
 0x3d6   : > { %v931_v42 = vmul.f32 1.442695, %v930_v41 }
 0x3db   : > { %v1060_v48 = vpop.permute.xlu0 %1059 }
 0x3e0   : > { %v940_v15 = vpop.permute.xlu0 %939 }
 0x3e1   : > { %v942_v19 = vmul.f32 %v940_v15, %v1801_v18 }
 0x3e4   : > { %v945_v17 = vpop.permute.xlu0 %944 }
 0x3e5   : > { %v947_v21 = vadd.f32 %v945_v17, %v942_v19 }
 0x3e7   : > { %v948_v23 = vsub.f32 0.0, %v947_v21 }
 0x3e9   : > { %v949_v25 = vmul.f32 1.442695, %v948_v23 }
 0x414   : > { %v1031_v28 = vpop.f32.mrb[12].mxu1 }
 0x415   : > { %v1032_v29 = vadd.f32 %v1263_v27, %v1031_v28  ;;  %v1347_v30 = vpop.f32.mrb[13].mxu1 }
 0x416   : > { %v1034_v31 = vpop.f32.mrb[14].mxu1 }
 0x417   : > { %v1041_v32 = vmul.f32 %v1039_v11, %v1032_v29  ;;  %v1348_v33 = vpop.f32.mrb[15].mxu1  ;;  %v1062_v49 = vmul.f32 %v1060_v48, %v1032_v29 }
 0x419   : > { %v1046_v34 = vadd.f32 %v1044_v8, %v1041_v32 }
 0x41b   : > { %v1047_v35 = vsel %vm926_vm2, %v1046_v34, -inf }
 0x41c   : > { %1048 = vmax.xlane.f32.xlu1 %v1047_v35 }
 0x4a9   : > { %v1049_v36 = vpop.xlane.xlu1 %1048 }
 0x4aa   : > { %v1050_v37 = vsub.f32 %v1046_v34, %v1049_v36 }
 0x4ac   : > { %v1051_v0 = vmul.f32 1.442695, %v1050_v37 }
 0x4ae   : > { %1441 = vpow2.f32 %v1051_v0 }
 0x4af   : > { %1443 = vpow2.f32 %v931_v42 }
 0x4b8   : > { %v1442_v38 = vpop.eup %1441 }
 0x4b9   : > { %v1053_v39 = vsel %vm926_vm2, %v1442_v38, 0.0  ;;  %v1444_v43 = vpop.eup %1443 }
 0x4ba   : > { %1054 = vadd.xlane.f32.xlu1 %v1053_v39  ;;  %v933_v44 = vsel %vm926_vm2, %v1444_v43, 0.0 }
 0x4cb   : > { %1064 = vperm.xlu1 %1420, %v1693_v4   ;;  %v1115_v4 = vsel %vm1113_vm3, %v1440_v46, 0 }
 0x4cc   : > { %1352 = vmatpush3.bf16.msra.mxu0 %v1115_v4  ;;  %v1157_v4 = vld [vmem:[%s1900_s15] sm:$0x1] }
 0x4ef   : > { %934 = vadd.xlane.f32.xlu1 %v933_v44 }
 0x547   : > { %v1055_v47 = vpop.xlane.xlu1 %1054 }
 0x548   : > { %1445 = vrcp.f32 %v1055_v47 }
 0x54b   : > { %v1065_v50 = vpop.permute.xlu1 %1064 }
 0x54c   : > { %v1067_v51 = vadd.f32 %v1065_v50, %v1062_v49  ;;  %v1159_v49 = vld [vmem:[%s1901_s16] sm:$0x1] }
 0x54e   : > { %v1068_v52 = vsub.f32 0.0, %v1067_v51 }
 0x550   : > { %v1069_v53 = vmul.f32 1.442695, %v1068_v52 }
 0x552   : > { %v1446_v54 = vpop.eup %1445  ;;  %1447 = vpow2.f32 %v1069_v53 }
 0x553   : > { %v1057_v55 = vmul.f32 %v1446_v54, %v1442_v38 }
 0x555   : > { %v1073_v56 = vsel %vm926_vm2, %v1057_v55, 0.0 }
 0x556   : > { %v1074_v57 = vrot.slane %v1073_v56, 4 }
 0x558   : > { %v1075_v58 = vadd.f32 %v1074_v57, %v1073_v56 }
 0x55a   : > { %v1076_v59 = vrot.slane %v1075_v58, 2 }
 0x55c   : > { %v1448_v60 = vpop.eup %1447  ;;  %v1077_v2 = vadd.f32 %v1076_v59, %v1075_v58 }
 0x55d   : > { %v1071_v61 = vadd.f32 1.0, %v1448_v60 }
 0x55e   : > { %v1078_v62 = vrot.slane %v1077_v2, 1 }
 0x55f   : > { %1449 = vrcp.f32 %v1071_v61 }
 0x560   : > { %v1079_v63 = vadd.f32 %v1078_v62, %v1077_v2 }
 0x562   : > { %1451 = vrcp.f32 %v1079_v63 }
 0x569   : > { %v1450_v1 = vpop.eup %1449 }
 0x56a   : > { %v1081_v3 = vmul.f32 %v1450_v1, %v1057_v55 }
 0x56c   : > { %v1452_v5 = vpop.eup %1451 }
 0x56d   : > { %v1082_v6 = vmul.f32 %v1452_v5, %v1081_v3 }
 0x56f   : > { %v1083_v7 = vsel %vm926_vm2, %v1082_v6, 0.0 }
 0x570   : > { %v1084_v8 = vrot.slane %v1083_v7, 4 }
 0x572   : > { %v1085_v9 = vadd.f32 %v1084_v8, %v1083_v7 }
 0x574   : > { %v1086_v10 = vrot.slane %v1085_v9, 2 }
 0x576   : > { %v1087_v11 = vadd.f32 %v1086_v10, %v1085_v9 }
 0x578   : > { %v1088_v12 = vrot.slane %v1087_v11, 1 }
 0x57a   : > { %v1089_v13 = vadd.f32 %v1088_v12, %v1087_v11 }
 0x57c   : > { %1091 = vrot.lane.b32.xlu1 %v1089_v13, %s1540_s2  ;;  %v935_v14 = vpop.xlane.xlu1 %934  ;;  %s538_s2 = scalar_lea.vmem [#allocation2], %s537_s30 }
 0x57d   : > { %1453 = vrcp.f32 %v935_v14  ;;  %s1182_s26 = sshll.u32 %s538_s2, 4  ;;  %s1845_s26 = int_to_ptr.vmem [resolvable:$true] %s1182_s26 }
 0x57e   : > { %1455 = vpow2.f32 %v949_v25  ;;  %s1465_s19 = scalar_lea.vmem %s1845_s26, 16  ;;  %p1472_p0 = scmp.lt.s32.totalorder %s1845_s26, %s1470_s3 }
 0x57f   : > { %p1466_p11 = scmp.ne.s32.totalorder %s1845_s26, %s1465_s19  ;;  %p1473_p1 = scmp.lt.s32.totalorder %s1471_s4, %s1465_s19 }
 0x581   : > { %p1467_p12 = pnand %p1466_p11, %p1670_p5  ;;  %p1474_p2 = por %p1473_p1, %p1472_p0 }
 0x583   : > { %p1468_p13 = pneg %p1467_p12 }
 0x585   : > { %p1475_p3 = pnand %p1474_p2, %p1468_p13 }
 0x587   : > { %v1454_v16 = vpop.eup %1453 }
 0x588   : > { %v937_v20 = vmul.f32 %v1454_v16, %v1444_v43  ;;  %v1456_v29 = vpop.eup %1455 }
 0x589   : > { %v951_v31 = vadd.f32 1.0, %v1456_v29 }
 0x58a   : > { %v953_v22 = vsel %vm926_vm2, %v937_v20, 0.0 }
 0x58b   : > { %v954_v24 = vrot.slane %v953_v22, 4  ;;  %1457 = vrcp.f32 %v951_v31 }
 0x58d   : > { %v955_v26 = vadd.f32 %v954_v24, %v953_v22 }
 0x58f   : > { %v956_v27 = vrot.slane %v955_v26, 2 }
 0x591   : > { %v957_v28 = vadd.f32 %v956_v27, %v955_v26 }
 0x593   : > { %v958_v30 = vrot.slane %v957_v28, 1 }
 0x595   : > { %v959_v32 = vadd.f32 %v958_v30, %v957_v28  ;;  %v1458_v33 = vpop.eup %1457 }
 0x596   : > { %v961_v18 = vmul.f32 %v1458_v33, %v937_v20 }
 0x597   : > { %1459 = vrcp.f32 %v959_v32 }
 0x5a1   : > { %v1460_v34 = vpop.eup %1459 }
 0x5a2   : > { %v962_v35 = vmul.f32 %v1460_v34, %v961_v18 }
 0x5a4   : > { %v963_v36 = vsel %vm926_vm2, %v962_v35, 0.0 }
 0x5a5   : > { %v964_v37 = vrot.slane %v963_v36, 4 }
 0x5a7   : > { %v965_v0 = vadd.f32 %v964_v37, %v963_v36 }
 0x5a9   : > { %v966_v38 = vrot.slane %v965_v0, 2 }
 0x5ab   : > { %v967_v39 = vadd.f32 %v966_v38, %v965_v0 }
 0x5ad   : > { %v968_v40 = vrot.slane %v967_v39, 1 }
 0x5af   : > { %v969_v41 = vadd.f32 %v968_v40, %v967_v39 }
 0x5ee   : > { %v1092_v42 = vpop.permute.xlu1 %1091 }
 0x5ef   : > { %v1094_v43 = vsel %vm926_vm2, %v969_v41, %v1092_v42 }
 0x5f0   : > { %v1095_v44 = vpack.c.bf16 %v1094_v43, %v1094_v43 }
 0x5f2   : > { %1354 = vmatmul.mubr.msk.bf16.vlgmr.msra.gmra.mrb[4].mxu0 %vm1109_vm4, %v1095_v44 }
 0x6c5   : > { %v1151_v46 = vpop.f32.mrb[4].mxu0 }
 0x6c6   : > { %v1152_v47 = vadd.f32 %v1151_v46, %v1099_v45  ;;  %v1355_v48 = vpop.f32.mrb[5].mxu0 }
 0x6c7   : > { %v1154_v50 = vpop.f32.mrb[6].mxu0 }
 0x6c8   : > { %v1158_v51 = vmul.f32 %v1157_v4, %v1152_v47  ;;  %v1356_v52 = vpop.f32.mrb[7].mxu0 }
 0x6ca   : > { %v1160_v53 = vadd.f32 %v1159_v49, %v1158_v51 }
 0x6cc   : > { %v1161_v54 = vsub.f32 0.0, %v1160_v53 }
 0x6ce   : > { %v1162_v55 = vmul.f32 1.442695, %v1161_v54 }
 0x6d0   : > { %1461 = vpow2.f32 %v1162_v55 }
 0x6da   : > { %v1462_v56 = vpop.eup %1461 }
 0x6db   : > { %v1164_v57 = vadd.f32 1.0, %v1462_v56 }
 0x6dd   : > { %1463 = vrcp.f32 %v1164_v57 }
 0x6e7   : > { %v1464_v58 = vpop.eup %1463 }
 0x6e8   : > { %1168 = vst.msk [vmem:[%s538_s2] sm:$0x1] %vm1167_vm5, %v1464_v58 }
 0x6e9   : > { %1478 = shalt.err (!%p1475_p3)
}
 0x6ea   : > { %s1479_s30 = scalar_lea.hbm %s1843_s23, 16  ;;  %s1483_s21 = scalar_lea.hbm %s1902_s17, 32 }
 0x6eb   : > { %p1480_p4 = scmp.ne.s32.totalorder %s1843_s23, %s1479_s30  ;;  %p1484_p9 = scmp.lt.u32.totalorder %s1843_s23, %s1902_s17 }
 0x6ec   : > { %p1485_p10 = scmp.lt.u32.totalorder %s1483_s21, %s1479_s30  ;;  %p1487_p12 = scmp.lt.u32.totalorder %s1479_s30, %s1843_s23 }
 0x6ed   : > { %p1481_p7 = pnand %p1480_p4, %p1670_p5 }
 0x6ee   : > { %p1486_p11 = por %p1485_p10, %p1484_p9 }
 0x6ef   : > { %p1482_p8 = pneg %p1481_p7 }
 0x6f0   : > { %p1488_p13 = por %p1487_p12, %p1486_p11 }
 0x6f2   : > { %p1489_p0 = pnand %p1488_p13, %p1482_p8 }
 0x6f4   : > { %1492 = shalt.err (!%p1489_p0)
}
 0x6f5   : > { %1357 = dma.vmem_to_hbm [thread:$0]  (%p1670_p5), %s1845_s26, 16, %s1843_s23, %s1170_s29  }
 0x6f6 PF: > { %p1363_p1 = scmp.ge.s32.totalorder %s1527_s27, 2  ;;  %s1194_s4 = sand.u32 1, %s1515_s24  }
 0x6f7   : > { %s1195_s19 = scalar_lea.sflag [#allocation3], %s1194_s4 }
 0x6f8   : > { %p1360_p2 = pnand %p1363_p1, %p1674_p6 }
 0x6fa   : > { %1510 = dma.done.wait (!%p1360_p2), %s1195_s19, 16  }
 0x6fb   : > { %1512 = vsyncadd (!%p1360_p2), %s1195_s19, 4294967280  ;;  %s1918_s28 = sld [smem:[#allocation5_spill]]  ;;  %s1919_s26 = sld [smem:[#allocation6_spill]] }
 0x6fc   : > { %p27_p3 = scmp.ge.s32.totalorder %s1657_s0, 4   ;;  %s1920_s24 = smov %s1519_s25 }
 0x6fd   : > { %s1922_s27 = smov %s1657_s0 }
 0x6fe   :  { %29 = sbr.rel (!%p27_p3) target bundleno = 9 (0x9), region = 123 }
 0x701   : > { %s1921_s25 = smov %s1918_s28 }
 0x705   :  { %1199 = vsyncpa [#allocation3], 1 }
 0x706   :  { %1201 = vsyncpa [#allocation3 + $0x1], 1 }

// kernel: ensemble_forward.2
= control target key start
LH: loop header
LB: loop body
LE: loop exit
PB: predicated region body
PF: predicated region fallthrough
CT: control target
= control target key end

     0   :  { %s2952_s18 = smov 0   ;;  %s2954_s19 = smov 0   ;;  %s3798_s0 = inlined_call_operand.vmem [shape: f32[16,16,8], index: 0, kind: input, shape index: {}]   ;;  %s3799_s1 = inlined_call_operand.vmem [shape: bf16[72,64], index: 1, kind: input, shape index: {}]   ;;  %s3800_s2 = inlined_call_operand.vmem [shape: f32[1,64], index: 2, kind: input, shape index: {}]   ;;  %s3801_s3 = inlined_call_operand.vmem [shape: bf16[288,64], index: 3, kind: input, shape index: {}]   ;;  %s3802_s4 = inlined_call_operand.vmem [shape: f32[1,64], index: 4, kind: input, shape index: {}]   ;;  %s3803_s5 = inlined_call_operand.vmem [shape: f32[16,128], index: 5, kind: output, shape index: {}]  }
   0x1   :  { %s2956_s20 = smov 0  }
   0x2 LB: > { %s2187_s21 = sadd.s32 4294967295, %s2901_s20   ;;  %s2969_s22 = sadd.s32 1, %s2901_s20   ;;  %s2901_s20 = sphi %s2956_s20, %s3806_s20   ;;  %s2897_s19 = sphi %s2954_s19, %s3805_s19   ;;  %s2893_s18 = sphi %s2952_s18, %s3804_s18  }
   0x3   : > { %s19_s23 = ssub.s32 %s2901_s20, %s2969_s22  ;;  %s22_s24 = sadd.s32 1, %s2897_s19 }
   0x4   : > { %p20_p0 = scmp.eq.s32.totalorder %s19_s23, 0  ;;  %p29_p1 = scmp.ne.s32.totalorder %s2897_s19, %s2893_s18 }
   0x5   : > { %p30_p2 = scmp.eq.s32.totalorder %s2901_s20, 0  ;;  %p2190_p4 = scmp.ge.s32.totalorder %s2901_s20, 2 }
   0x6   : > { %s2978_s25 = scalar_select %p20_p0, %s2897_s19, %s22_s24  }
   0x7   : > { %p31_p3 = por %p30_p2, %p29_p1  ;;  %177 = sbr.rel (%p2190_p4) target bundleno = 26 (0x1a), region = 32 }
   0xe   : > { %180 = sbr.rel (!%p31_p3) target bundleno = 26 (0x1a), region = 36  ;;  %s182_s26 = sand.u32 (%p31_p3), 1, %s2897_s19  }
   0xf   : > { %s2192_s27 = sshll.u32 (%p31_p3), %s2901_s20, 3  ;;  %s2191_s28 = sshll.u32 (%p31_p3), %s182_s26, 7 }
  0x10   : > { %s2986_s6 = scalar_lea.vmem (%p31_p3), %s3798_s0, %s2192_s27  ;;  %s184_s7 = scalar_lea.vmem (%p31_p3), [#allocation4], %s2191_s28 }
  0x11   : > { %v244_v0 = vld [vmem:[%s2986_s6] sm:$0xff] (%p31_p3)  ;;  %v246_v1 = vld [vmem:[%s2986_s6 + $0x10] sm:$0xff] (%p31_p3) }
  0x12   : > { %v248_v2 = vld [vmem:[%s2986_s6 + $0x20] sm:$0xff] (%p31_p3)  ;;  %245 = vst [vmem:[%s184_s7] sm:$0xff] (%p31_p3), %v244_v0  ;;  %247 = vst [vmem:[%s184_s7 + $0x8] sm:$0xff] (%p31_p3), %v246_v1  ;;  %v250_v3 = vld [vmem:[%s2986_s6 + $0x30] sm:$0xff] (%p31_p3) }
  0x13   : > { %249 = vst [vmem:[%s184_s7 + $0x10] sm:$0xff] (%p31_p3), %v248_v2  ;;  %v252_v4 = vld [vmem:[%s2986_s6 + $0x40] sm:$0xff] (%p31_p3)  ;;  %v254_v5 = vld [vmem:[%s2986_s6 + $0x50] sm:$0xff] (%p31_p3)  ;;  %251 = vst [vmem:[%s184_s7 + $0x18] sm:$0xff] (%p31_p3), %v250_v3 }
  0x14   : > { %253 = vst [vmem:[%s184_s7 + $0x20] sm:$0xff] (%p31_p3), %v252_v4  ;;  %255 = vst [vmem:[%s184_s7 + $0x28] sm:$0xff] (%p31_p3), %v254_v5  ;;  %v256_v6 = vld [vmem:[%s2986_s6 + $0x60] sm:$0xff] (%p31_p3)  ;;  %v258_v7 = vld [vmem:[%s2986_s6 + $0x70] sm:$0xff] (%p31_p3) }
  0x15   : > { %v260_v8 = vld [vmem:[%s2986_s6 + $0x80] sm:$0xff]  ;;  %257 = vst [vmem:[%s184_s7 + $0x30] sm:$0xff] %v256_v6  ;;  %259 = vst [vmem:[%s184_s7 + $0x38] sm:$0xff] %v258_v7  ;;  %v262_v9 = vld [vmem:[%s2986_s6 + $0x90] sm:$0xff] }
  0x16   : > { %261 = vst [vmem:[%s184_s7 + $0x40] sm:$0xff] %v260_v8  ;;  %v264_v10 = vld [vmem:[%s2986_s6 + $0xa0] sm:$0xff]  ;;  %v266_v11 = vld [vmem:[%s2986_s6 + $0xb0] sm:$0xff]  ;;  %263 = vst [vmem:[%s184_s7 + $0x48] sm:$0xff] %v262_v9 }
  0x17   : > { %265 = vst [vmem:[%s184_s7 + $0x50] sm:$0xff] %v264_v10  ;;  %267 = vst [vmem:[%s184_s7 + $0x58] sm:$0xff] %v266_v11  ;;  %v268_v12 = vld [vmem:[%s2986_s6 + $0xc0] sm:$0xff]  ;;  %v270_v13 = vld [vmem:[%s2986_s6 + $0xd0] sm:$0xff] }
  0x18   : > { %v272_v14 = vld [vmem:[%s2986_s6 + $0xe0] sm:$0xff]  ;;  %269 = vst [vmem:[%s184_s7 + $0x60] sm:$0xff] %v268_v12  ;;  %271 = vst [vmem:[%s184_s7 + $0x68] sm:$0xff] %v270_v13  ;;  %v274_v15 = vld [vmem:[%s2986_s6 + $0xf0] sm:$0xff] }
  0x19   : > { %273 = vst [vmem:[%s184_s7 + $0x70] sm:$0xff] %v272_v14  ;;  %275 = vst [vmem:[%s184_s7 + $0x78] sm:$0xff] %v274_v15 }
  0x1a PF: > { %p2193_p5 = scmp.ge.s32.totalorder %s2901_s20, 1  ;;  %p280_p6 = scmp.lt.s32.totalorder %s2901_s20, 3 }
  0x1c   : > { %p281_p7 = pnand %p2193_p5, %p280_p6 }
  0x1d   : > { %s287_s8 = sand.u32 (!%p281_p7), 1, %s2893_s18   ;;  %vm318_vm0 = vcmask (!%p281_p7), 80896   ;;  %v2903_v16 = vmov (!%p281_p7), 0.0   ;;  %s2904_s11 = smov (!%p281_p7), 1   ;;  %vm418_vm1 = vcmask (!%p281_p7), 72712   ;;  %v2856_v47 = vld [vmem:[%s3799_s1] sm:$0xff] (!%p281_p7)  }
  0x1e   : > { %284 = sbr.rel (%p281_p7) target bundleno = 1481 (0x5c9), region = 74  ;;  %s2194_s9 = sshll.u32 (!%p281_p7), %s287_s8, 7  ;;  %322 = vst.msk [vmem:[#allocation2 + $0x18] sm:$0xff] (!%p281_p7), %vm318_vm0, %v2903_v16  ;;  %319 = vst.msk [vmem:[#allocation2] sm:$0xff] (!%p281_p7), %vm318_vm0, %v2903_v16  ;;  %2294 = vmatprep.subr.bf16.mxu0 (!%p281_p7), %v2856_v47  ;;  %v2857_v51 = vld [vmem:[%s3799_s1 + $0x8] sm:$0xff] (!%p281_p7)   ;;  %vm1001_vm2 = vcmask (!%p281_p7), 392192  }
  0x1f   : > { %320 = vst.msk [vmem:[#allocation2 + $0x8] sm:$0xff] (!%p281_p7), %vm318_vm0, %v2903_v16  ;;  %321 = vst.msk [vmem:[#allocation2 + $0x10] sm:$0xff] (!%p281_p7), %vm318_vm0, %v2903_v16  ;;  %s3043_s10 = scalar_lea.vmem (!%p281_p7), [#allocation4], %s2194_s9  ;;  %s2905_s12 = smov (!%p281_p7), 7   ;;  %2295 = vmatpush3.bf16.msra.mxu0 (!%p281_p7), %v2856_v47  ;;  %v2858_v56 = vld [vmem:[%s3799_s1 + $0x10] sm:$0xff] (!%p281_p7)   ;;  %v2859_v59 = vld [vmem:[%s3799_s1 + $0x18] sm:$0xff] (!%p281_p7)  }
  0x20   : > { %323 = vst.msk [vmem:[#allocation2 + $0x20] sm:$0xff] (!%p281_p7), %vm318_vm0, %v2903_v16  ;;  %324 = vst.msk [vmem:[#allocation2 + $0x28] sm:$0xff] (!%p281_p7), %vm318_vm0, %v2903_v16  ;;  %v339_v17 = vld [vmem:[%s3043_s10 + $0x10] sm:$0xff] (!%p281_p7)  ;;  %v337_v18 = vld [vmem:[%s3043_s10] sm:$0xff] (!%p281_p7)  ;;  %s2906_s15 = smov (!%p281_p7), 14   ;;  %s2907_s18 = smov (!%p281_p7), 24   ;;  %2296 = vmatprep.subr.bf16.mxu0 (!%p281_p7), %v2857_v51 }
  0x21   : > { %325 = vst.msk [vmem:[#allocation2 + $0x30] sm:$0xff] (!%p281_p7), %vm318_vm0, %v2903_v16  ;;  %326 = vst.msk [vmem:[#allocation2 + $0x38] sm:$0xff] (!%p281_p7), %vm318_vm0, %v2903_v16  ;;  %373 = vrot.lane.b32.xlu1 (!%p281_p7), %v339_v17, %s2904_s11  ;;  %369 = vrot.lane.b32.xlu0 (!%p281_p7), %v337_v18, %s2904_s11  ;;  %v340_v19 = vld [vmem:[%s3043_s10 + $0x18] sm:$0xff] (!%p281_p7)  ;;  %v338_v20 = vld [vmem:[%s3043_s10 + $0x8] sm:$0xff] (!%p281_p7)  ;;  %s2908_s26 = smov (!%p281_p7), 31   ;;  %s2909_s29 = smov (!%p281_p7), 38  }
  0x22   : > { %327 = vst.msk [vmem:[#allocation2 + $0x40] sm:$0xff] (!%p281_p7), %vm318_vm0, %v2903_v16  ;;  %328 = vst.msk [vmem:[#allocation2 + $0x48] sm:$0xff] (!%p281_p7), %vm318_vm0, %v2903_v16  ;;  %v341_v21 = vld [vmem:[%s3043_s10 + $0x20] sm:$0xff] (!%p281_p7)  ;;  %v342_v22 = vld [vmem:[%s3043_s10 + $0x28] sm:$0xff] (!%p281_p7)  ;;  %vm1128_vm3 = vcmask (!%p281_p7), 1043456   ;;  %s2910_s7 = smov (!%p281_p7), 48  }
  0x23   : > { %329 = vst.msk [vmem:[#allocation2 + $0x50] sm:$0xff] (!%p281_p7), %vm318_vm0, %v2903_v16  ;;  %330 = vst.msk [vmem:[#allocation2 + $0x58] sm:$0xff] (!%p281_p7), %vm318_vm0, %v2903_v16  ;;  %v344_v23 = vld [vmem:[%s3043_s10 + $0x38] sm:$0xff] (!%p281_p7)  ;;  %v343_v24 = vld [vmem:[%s3043_s10 + $0x30] sm:$0xff] (!%p281_p7)  ;;  %2297 = vmatpush3.bf16.msra.mxu0 (!%p281_p7), %v2857_v51  ;;  %s2911_s8 = smov (!%p281_p7), 55   ;;  %s2912_s9 = smov (!%p281_p7), 62  }
  0x24   : > { %331 = vst.msk [vmem:[#allocation2 + $0x60] sm:$0xff] (!%p281_p7), %vm318_vm0, %v2903_v16  ;;  %332 = vst.msk [vmem:[#allocation2 + $0x68] sm:$0xff] (!%p281_p7), %vm318_vm0, %v2903_v16  ;;  %v345_v25 = vld [vmem:[%s3043_s10 + $0x40] sm:$0xff] (!%p281_p7)  ;;  %v346_v26 = vld [vmem:[%s3043_s10 + $0x48] sm:$0xff] (!%p281_p7)  ;;  %2298 = vmatprep.subr.bf16.mxu0 (!%p281_p7), %v2858_v56  ;;  %vm916_vm4 = vcmask (!%p281_p7), 64512   ;;  %vm933_vm5 = vcmask (!%p281_p7), 130048  }
  0x25   : > { %333 = vst.msk [vmem:[#allocation2 + $0x70] sm:$0xff] %vm318_vm0, %v2903_v16  ;;  %334 = vst.msk [vmem:[#allocation2 + $0x78] sm:$0xff] %vm318_vm0, %v2903_v16  ;;  %375 = vrot.lane.b32.xlu1 %v340_v19, %s2904_s11  ;;  %371 = vrot.lane.b32.xlu0 %v338_v20, %s2904_s11  ;;  %v348_v27 = vld [vmem:[%s3043_s10 + $0x58] sm:$0xff]  ;;  %v347_v28 = vld [vmem:[%s3043_s10 + $0x50] sm:$0xff]  ;;  %vm950_vm6 = vcmask 195584   ;;  %vm967_vm7 = vcmask 261120  }
  0x26   : > { %335 = vst.msk [vmem:[#allocation2 + $0x80] sm:$0xff] %vm318_vm0, %v2903_v16  ;;  %336 = vst.msk [vmem:[#allocation2 + $0x88] sm:$0xff] %vm318_vm0, %v2903_v16  ;;  %v349_v29 = vld [vmem:[%s3043_s10 + $0x60] sm:$0xff]  ;;  %v350_v30 = vld [vmem:[%s3043_s10 + $0x68] sm:$0xff]  ;;  %vm984_vm8 = vcmask 326656   ;;  %vm1018_vm9 = vcmask 457728  }
  0x27   : > { %v352_v31 = vld [vmem:[%s3043_s10 + $0x78] sm:$0xff]  ;;  %v351_v32 = vld [vmem:[%s3043_s10 + $0x70] sm:$0xff]  ;;  %v3065_v37 = vld [vmem:[#allocation2] sm:$0xff]  ;;  %1413 = vst.msk [vmem:[#allocation3] sm:$0xff] %vm1001_vm2, %v2903_v16  ;;  %2299 = vmatpush3.bf16.msra.mxu0 %v2858_v56  ;;  %vm1035_vm10 = vcmask 523264   ;;  %vm1103_vm11 = vcmask 588800  }
  0x28   : > { %1414 = vst.msk [vmem:[#allocation3 + $0x8] sm:$0xff] %vm1001_vm2, %v2903_v16  ;;  %1415 = vst.msk [vmem:[#allocation3 + $0x10] sm:$0xff] %vm1001_vm2, %v2903_v16  ;;  %2300 = vmatprep.subr.bf16.mxu0 %v2859_v59  ;;  %v2860_v62 = vld [vmem:[%s3799_s1 + $0x20] ss:$0 sps:$4 sm:$0xff]   ;;  %s2914_s13 = smov 120   ;;  %s2915_s14 = smov 112  }
  0x29   : > { %377 = vrot.lane.b32.xlu0 %v341_v21, %s2904_s11  ;;  %379 = vrot.lane.b32.xlu1 %v342_v22, %s2904_s11  ;;  %1416 = vst.msk [vmem:[#allocation3 + $0x18] sm:$0xff] %vm1001_vm2, %v2903_v16  ;;  %1417 = vst.msk [vmem:[#allocation3 + $0x20] sm:$0xff] %vm1001_vm2, %v2903_v16  ;;  %v1130_v0 = vsel %vm1128_vm3, %v2860_v62, 0  ;;  %s2917_s16 = smov 8   ;;  %vm1456_vm12 = vcmask 326720   ;;  %s2919_s27 = smov 64  }
  0x2a   : > { %1418 = vst.msk [vmem:[#allocation3 + $0x28] sm:$0xff] %vm1001_vm2, %v2903_v16  ;;  %1419 = vst.msk [vmem:[#allocation3 + $0x30] sm:$0xff] %vm1001_vm2, %v2903_v16  ;;  %s2920_s28 = smov 88   ;;  %vm1722_vm13 = vcmask 785408   ;;  %p313_p8 = scmp.lt.s32.totalorder %s2187_s21, 1 }
  0x2b   : > { %1420 = vst.msk [vmem:[#allocation3 + $0x38] sm:$0xff] %vm1001_vm2, %v2903_v16  ;;  %1421 = vst.msk [vmem:[#allocation3 + $0x40] sm:$0xff] %vm1001_vm2, %v2903_v16  ;;  %2301 = vmatpush3.bf16.msra.mxu0 %v2859_v59 }
  0x2c   : > { %1422 = vst.msk [vmem:[#allocation3 + $0x48] sm:$0xff] %vm1001_vm2, %v2903_v16  ;;  %2332 = vmatprep.subr.msk.bf16.mxu0 %vm1128_vm3, %v2860_v62  ;;  %s3808_s21 = smov (!%p313_p8, %s2187_s21), 1 }
  0x2d   : > { %383 = vrot.lane.b32.xlu1 %v344_v23, %s2904_s11  ;;  %381 = vrot.lane.b32.xlu0 %v343_v24, %s2904_s11 }
  0x2f   : > { %2303 = vmatpush3.bf16.msra.mxu0 %v1130_v0 }
  0x31   : > { %385 = vrot.lane.b32.xlu0 %v345_v25, %s2904_s11  ;;  %387 = vrot.lane.b32.xlu1 %v346_v26, %s2904_s11  ;;  %v483_v25 = vld [vmem:[#allocation2 + $0x88] sm:$0xff] }
  0x35   : > { %391 = vrot.lane.b32.xlu1 %v348_v27, %s2904_s11  ;;  %389 = vrot.lane.b32.xlu0 %v347_v28, %s2904_s11 }
  0x39   : > { %393 = vrot.lane.b32.xlu0 %v349_v29, %s2904_s11  ;;  %395 = vrot.lane.b32.xlu1 %v350_v30, %s2904_s11 }
  0x3d   : > { %399 = vrot.lane.b32.xlu1 %v352_v31, %s2904_s11  ;;  %397 = vrot.lane.b32.xlu0 %v351_v32, %s2904_s11 }
  0x93   : > { %v374_v33 = vpop.permute.xlu1 %373  ;;  %v370_v34 = vpop.permute.xlu0 %369 }
  0x94   : > { %421 = vst.msk [vmem:[#allocation2 + $0x18] sm:$0xff] %vm418_vm1, %v374_v33  ;;  %419 = vst.msk [vmem:[#allocation2 + $0x8] sm:$0xff] %vm418_vm1, %v370_v34 }
  0x97   : > { %v376_v35 = vpop.permute.xlu1 %375  ;;  %v372_v36 = vpop.permute.xlu0 %371 }
  0x98   : > { %422 = vst.msk [vmem:[#allocation2 + $0x20] sm:$0xff] %vm418_vm1, %v376_v35  ;;  %420 = vst.msk [vmem:[#allocation2 + $0x10] sm:$0xff] %vm418_vm1, %v372_v36 }
  0x9b   : > { %v3067_v38 = vld [vmem:[#allocation2 + $0x8] sm:$0xff]  ;;  %v378_v39 = vpop.permute.xlu0 %377  ;;  %v380_v40 = vpop.permute.xlu1 %379  ;;  %v3073_v42 = vld [vmem:[#allocation2 + $0x18] sm:$0xff] }
  0x9c   : > { %v2376_v41 = vpack.i.bf16 %v3067_v38, %v3065_v37  ;;  %423 = vst.msk [vmem:[#allocation2 + $0x28] sm:$0xff] %vm418_vm1, %v378_v39  ;;  %424 = vst.msk [vmem:[#allocation2 + $0x30] sm:$0xff] %vm418_vm1, %v380_v40 }
  0x9e   : > { %2377 = vrot.lane.b32.xlu0 %v2376_v41, %s2905_s12 }
  0x9f   : > { %v3076_v43 = vld [vmem:[#allocation2 + $0x10] sm:$0xff]  ;;  %v384_v44 = vpop.permute.xlu1 %383  ;;  %v382_v45 = vpop.permute.xlu0 %381  ;;  %v3097_v52 = vld [vmem:[#allocation2 + $0x20] sm:$0xff] }
  0xa0   : > { %v3080_v46 = vpack.i.bf16 %v3073_v42, %v3076_v43  ;;  %426 = vst.msk [vmem:[#allocation2 + $0x40] sm:$0xff] %vm418_vm1, %v384_v44  ;;  %425 = vst.msk [vmem:[#allocation2 + $0x38] sm:$0xff] %vm418_vm1, %v382_v45  ;;  %v2396_v50 = vpack.i.bf16 %v3076_v43, %v3067_v38  ;;  %v2401_v55 = vpack.i.bf16 %v3097_v52, %v3073_v42 }
  0xa2   : > { %2387 = vrot.lane.b32.xlu0 %v2376_v41, %s2906_s15  ;;  %2382 = vrot.lane.b32.xlu1 %v3080_v46, %s2905_s12 }
  0xa3   : > { %v386_v48 = vpop.permute.xlu0 %385  ;;  %v388_v49 = vpop.permute.xlu1 %387  ;;  %v3143_v63 = vld [vmem:[#allocation2 + $0x28] sm:$0xff]  ;;  %v3158_v3 = vld [vmem:[#allocation2 + $0x30] sm:$0xff] }
  0xa4   : > { %427 = vst.msk [vmem:[#allocation2 + $0x48] sm:$0xff] %vm418_vm1, %v386_v48  ;;  %428 = vst.msk [vmem:[#allocation2 + $0x50] sm:$0xff] %vm418_vm1, %v388_v49  ;;  %v2431_v1 = vpack.i.bf16 %v3143_v63, %v3097_v52  ;;  %v2476_v5 = vpack.i.bf16 %v3158_v3, %v3143_v63 }
  0xa6   : > { %2397 = vrot.lane.b32.xlu0 %v2396_v50, %s2907_s18  ;;  %2392 = vrot.lane.b32.xlu1 %v3080_v46, %s2906_s15 }
  0xa7   : > { %v392_v53 = vpop.permute.xlu1 %391  ;;  %v390_v54 = vpop.permute.xlu0 %389  ;;  %v3156_v2 = vld [vmem:[#allocation2 + $0x38] sm:$0xff]  ;;  %v3168_v6 = vld [vmem:[#allocation2 + $0x40] sm:$0xff] }
  0xa8   : > { %430 = vst.msk [vmem:[#allocation2 + $0x60] sm:$0xff] %vm418_vm1, %v392_v53  ;;  %429 = vst.msk [vmem:[#allocation2 + $0x58] sm:$0xff] %vm418_vm1, %v390_v54  ;;  %v2461_v4 = vpack.i.bf16 %v3156_v2, %v3158_v3  ;;  %v2481_v7 = vpack.i.bf16 %v3168_v6, %v3156_v2 }
  0xaa   : > { %2407 = vrot.lane.b32.xlu0 %v2396_v50, %s2908_s26  ;;  %2402 = vrot.lane.b32.xlu1 %v2401_v55, %s2907_s18 }
  0xab   : > { %v394_v57 = vpop.permute.xlu0 %393  ;;  %v396_v58 = vpop.permute.xlu1 %395  ;;  %v3178_v8 = vld [vmem:[#allocation2 + $0x48] sm:$0xff]  ;;  %v3190_v11 = vld [vmem:[#allocation2 + $0x50] sm:$0xff] }
  0xac   : > { %431 = vst.msk [vmem:[#allocation2 + $0x68] sm:$0xff] %vm418_vm1, %v394_v57  ;;  %432 = vst.msk [vmem:[#allocation2 + $0x70] sm:$0xff] %vm418_vm1, %v396_v58  ;;  %v2511_v9 = vpack.i.bf16 %v3178_v8, %v3168_v6  ;;  %v2556_v13 = vpack.i.bf16 %v3190_v11, %v3178_v8 }
  0xae   : > { %2417 = vrot.lane.b32.xlu0 %v2396_v50, %s2909_s29  ;;  %2412 = vrot.lane.b32.xlu1 %v2401_v55, %s2908_s26 }
  0xaf   : > { %v400_v60 = vpop.permute.xlu1 %399  ;;  %v398_v61 = vpop.permute.xlu0 %397  ;;  %v3188_v10 = vld [vmem:[#allocation2 + $0x58] sm:$0xff]  ;;  %v3200_v14 = vld [vmem:[#allocation2 + $0x60] sm:$0xff] }
  0xb0   : > { %434 = vst.msk [vmem:[#allocation2 + $0x80] sm:$0xff] %vm418_vm1, %v400_v60  ;;  %433 = vst.msk [vmem:[#allocation2 + $0x78] sm:$0xff] %vm418_vm1, %v398_v61  ;;  %v2541_v12 = vpack.i.bf16 %v3188_v10, %v3190_v11  ;;  %v2561_v15 = vpack.i.bf16 %v3200_v14, %v3188_v10 }
  0xb2   : > { %2427 = vrot.lane.b32.xlu0 %v3080_v46, %s2910_s7  ;;  %2422 = vrot.lane.b32.xlu1 %v2401_v55, %s2909_s29 }
  0xb3   : > { %v3210_v16 = vld [vmem:[#allocation2 + $0x68] sm:$0xff]  ;;  %v3222_v19 = vld [vmem:[#allocation2 + $0x70] sm:$0xff] }
  0xb4   : > { %v2591_v17 = vpack.i.bf16 %v3210_v16, %v3200_v14  ;;  %v2636_v21 = vpack.i.bf16 %v3222_v19, %v3210_v16 }
  0xb6   : > { %2437 = vrot.lane.b32.xlu0 %v3080_v46, %s2911_s8  ;;  %2432 = vrot.lane.b32.xlu1 %v2431_v1, %s2910_s7 }
  0xb7   : > { %v3220_v18 = vld [vmem:[#allocation2 + $0x78] sm:$0xff]  ;;  %v466_v22 = vld [vmem:[#allocation2 + $0x80] sm:$0xff] }
  0xb8   : > { %v2621_v20 = vpack.i.bf16 %v3220_v18, %v3222_v19  ;;  %v2641_v23 = vpack.i.bf16 %v466_v22, %v3220_v18  ;;  %v2671_v28 = vpack.i.bf16 %v483_v25, %v466_v22 }
  0xba   : > { %2447 = vrot.lane.b32.xlu0 %v3080_v46, %s2912_s9  ;;  %2442 = vrot.lane.b32.xlu1 %v2431_v1, %s2911_s8 }
  0xbe   : > { %2457 = vrot.lane.b32.xlu0 %v2431_v1, %s2912_s9  ;;  %2452 = vrot.lane.b32.xlu1 %v2431_v1, %s2905_s12 }
  0xc2   : > { %2467 = vrot.lane.b32.xlu0 %v2431_v1, %s2906_s15  ;;  %2462 = vrot.lane.b32.xlu1 %v2461_v4, %s2905_s12 }
  0xc6   : > { %2477 = vrot.lane.b32.xlu0 %v2476_v5, %s2907_s18  ;;  %2472 = vrot.lane.b32.xlu1 %v2461_v4, %s2906_s15 }
  0xca   : > { %2487 = vrot.lane.b32.xlu0 %v2476_v5, %s2908_s26  ;;  %2482 = vrot.lane.b32.xlu1 %v2481_v7, %s2907_s18 }
  0xce   : > { %2497 = vrot.lane.b32.xlu0 %v2476_v5, %s2909_s29  ;;  %2492 = vrot.lane.b32.xlu1 %v2481_v7, %s2908_s26 }
  0xd2   : > { %2507 = vrot.lane.b32.xlu0 %v2461_v4, %s2910_s7  ;;  %2502 = vrot.lane.b32.xlu1 %v2481_v7, %s2909_s29 }
  0xd6   : > { %2517 = vrot.lane.b32.xlu0 %v2461_v4, %s2911_s8  ;;  %2512 = vrot.lane.b32.xlu1 %v2511_v9, %s2910_s7 }
  0xda   : > { %2527 = vrot.lane.b32.xlu0 %v2461_v4, %s2912_s9  ;;  %2522 = vrot.lane.b32.xlu1 %v2511_v9, %s2911_s8 }
  0xde   : > { %2537 = vrot.lane.b32.xlu0 %v2511_v9, %s2912_s9  ;;  %2532 = vrot.lane.b32.xlu1 %v2511_v9, %s2905_s12 }
  0xe2   : > { %2547 = vrot.lane.b32.xlu0 %v2511_v9, %s2906_s15  ;;  %2542 = vrot.lane.b32.xlu1 %v2541_v12, %s2905_s12 }
  0xe6   : > { %2557 = vrot.lane.b32.xlu0 %v2556_v13, %s2907_s18  ;;  %2552 = vrot.lane.b32.xlu1 %v2541_v12, %s2906_s15 }
  0xea   : > { %2567 = vrot.lane.b32.xlu0 %v2556_v13, %s2908_s26  ;;  %2562 = vrot.lane.b32.xlu1 %v2561_v15, %s2907_s18 }
  0xee   : > { %2577 = vrot.lane.b32.xlu0 %v2556_v13, %s2909_s29  ;;  %2572 = vrot.lane.b32.xlu1 %v2561_v15, %s2908_s26 }
  0xf2   : > { %2587 = vrot.lane.b32.xlu0 %v2541_v12, %s2910_s7  ;;  %2582 = vrot.lane.b32.xlu1 %v2561_v15, %s2909_s29 }
  0xf6   : > { %2597 = vrot.lane.b32.xlu0 %v2541_v12, %s2911_s8  ;;  %2592 = vrot.lane.b32.xlu1 %v2591_v17, %s2910_s7 }
  0xfa   : > { %2607 = vrot.lane.b32.xlu0 %v2541_v12, %s2912_s9  ;;  %2602 = vrot.lane.b32.xlu1 %v2591_v17, %s2911_s8 }
  0xfe   : > { %2617 = vrot.lane.b32.xlu0 %v2591_v17, %s2912_s9  ;;  %2612 = vrot.lane.b32.xlu1 %v2591_v17, %s2905_s12 }
 0x102   : > { %2627 = vrot.lane.b32.xlu0 %v2591_v17, %s2906_s15  ;;  %2622 = vrot.lane.b32.xlu1 %v2621_v20, %s2905_s12  ;;  %s2913_s12 = smov 96  }
 0x106   : > { %2637 = vrot.lane.b32.xlu0 %v2636_v21, %s2907_s18  ;;  %2632 = vrot.lane.b32.xlu1 %v2621_v20, %s2906_s15  ;;  %s2916_s15 = smov 104  }
 0x10a   : > { %2647 = vrot.lane.b32.xlu0 %v2636_v21, %s2908_s26  ;;  %2642 = vrot.lane.b32.xlu1 %v2641_v23, %s2907_s18 }
 0x10e   : > { %2657 = vrot.lane.b32.xlu0 %v2636_v21, %s2909_s29  ;;  %2652 = vrot.lane.b32.xlu1 %v2641_v23, %s2908_s26 }
 0x110   : > { %v2378_v24 = vpop.permute.xlu0 %2377 }
 0x111   : > { %v2380_v33 = vunpack.i.h.bf16 %v2378_v24  ;;  %v2379_v34 = vunpack.i.l.bf16 %v2378_v24 }
 0x112   : > { %2667 = vrot.lane.b32.xlu0 %v2621_v20, %s2910_s7  ;;  %2662 = vrot.lane.b32.xlu1 %v2641_v23, %s2909_s29  ;;  %s2918_s29 = smov 16  }
 0x113   : > { %v918_v45 = vsel %vm916_vm4, %v3067_v38, %v2380_v33  ;;  %v917_v46 = vsel %vm916_vm4, %v3065_v37, %v2379_v34 }
 0x114   : > { %v2383_v26 = vpop.permute.xlu1 %2382  ;;  %v2388_v27 = vpop.permute.xlu0 %2387 }
 0x115   : > { %v2385_v39 = vunpack.i.h.bf16 %v2383_v26  ;;  %v2384_v40 = vunpack.i.l.bf16 %v2383_v26  ;;  %v2390_v41 = vunpack.i.h.bf16 %v2388_v27  ;;  %v2389_v44 = vunpack.i.l.bf16 %v2388_v27 }
 0x116   : > { %2677 = vrot.lane.b32.xlu0 %v2621_v20, %s2911_s8  ;;  %2672 = vrot.lane.b32.xlu1 %v2671_v28, %s2910_s7 }
 0x117   : > { %v920_v56 = vsel %vm916_vm4, %v3073_v42, %v2385_v39  ;;  %v919_v57 = vsel %vm916_vm4, %v3076_v43, %v2384_v40  ;;  %v934_v59 = vsel %vm933_vm5, %v917_v46, %v2389_v44  ;;  %v935_v37 = vsel %vm933_vm5, %v918_v45, %v2390_v41 }
 0x118   : > { %v2393_v29 = vpop.permute.xlu1 %2392  ;;  %v2398_v30 = vpop.permute.xlu0 %2397 }
 0x119   : > { %v2395_v47 = vunpack.i.h.bf16 %v2393_v29  ;;  %v2394_v48 = vunpack.i.l.bf16 %v2393_v29  ;;  %v2400_v51 = vunpack.i.h.bf16 %v2398_v30  ;;  %v2399_v53 = vunpack.i.l.bf16 %v2398_v30 }
 0x11a   : > { %2687 = vrot.lane.b32.xlu0 %v2621_v20, %s2912_s9  ;;  %2682 = vrot.lane.b32.xlu1 %v2671_v28, %s2911_s8 }
 0x11b   : > { %v936_v62 = vsel %vm933_vm5, %v919_v57, %v2394_v48  ;;  %v937_v0 = vsel %vm933_vm5, %v920_v56, %v2395_v47  ;;  %v951_v7 = vsel %vm950_vm6, %v934_v59, %v2399_v53  ;;  %v952_v43 = vsel %vm950_vm6, %v935_v37, %v2400_v51 }
 0x11c   : > { %v2403_v31 = vpop.permute.xlu1 %2402  ;;  %v2408_v32 = vpop.permute.xlu0 %2407 }
 0x11d   : > { %v2405_v54 = vunpack.i.h.bf16 %v2403_v31  ;;  %v2404_v55 = vunpack.i.l.bf16 %v2403_v31  ;;  %v2410_v58 = vunpack.i.h.bf16 %v2408_v32  ;;  %v2409_v38 = vunpack.i.l.bf16 %v2408_v32 }
 0x11e   : > { %2692 = vrot.lane.b32.xlu1 %v2671_v28, %s2912_s9 }
 0x11f   : > { %v953_v9 = vsel %vm950_vm6, %v936_v62, %v2404_v55  ;;  %v954_v12 = vsel %vm950_vm6, %v937_v0, %v2405_v54  ;;  %v968_v13 = vsel %vm967_vm7, %v951_v7, %v2409_v38  ;;  %v969_v15 = vsel %vm967_vm7, %v952_v43, %v2410_v58 }
 0x120   : > { %v3246_v35 = vpop.permute.xlu1 %2412  ;;  %v2418_v36 = vpop.permute.xlu0 %2417 }
 0x121   : > { %v2420_v60 = vunpack.i.h.bf16 %v2418_v36  ;;  %v2419_v61 = vunpack.i.l.bf16 %v2418_v36  ;;  %v2415_v21 = vunpack.i.h.bf16 %v3246_v35  ;;  %v2414_v22 = vunpack.i.l.bf16 %v3246_v35 }
 0x123   : > { %v985_v23 = vsel %vm984_vm8, %v968_v13, %v2419_v61  ;;  %v986_v24 = vsel %vm984_vm8, %v969_v15, %v2420_v60  ;;  %v970_v41 = vsel %vm967_vm7, %v953_v9, %v2414_v22  ;;  %v971_v44 = vsel %vm967_vm7, %v954_v12, %v2415_v21 }
 0x124   : > { %v2423_v49 = vpop.permute.xlu1 %2422  ;;  %v2428_v50 = vpop.permute.xlu0 %2427 }
 0x125   : > { %v2430_v1 = vunpack.i.h.bf16 %v2428_v50  ;;  %v2429_v4 = vunpack.i.l.bf16 %v2428_v50  ;;  %v2425_v25 = vunpack.i.h.bf16 %v2423_v49  ;;  %v2424_v26 = vunpack.i.l.bf16 %v2423_v49 }
 0x127   : > { %v1002_v29 = vsel %vm1001_vm2, %v985_v23, %v2429_v4  ;;  %v1003_v30 = vsel %vm1001_vm2, %v986_v24, %v2430_v1  ;;  %v987_v47 = vsel %vm984_vm8, %v970_v41, %v2424_v26  ;;  %v988_v48 = vsel %vm984_vm8, %v971_v44, %v2425_v25 }
 0x128   : > { %v2433_v5 = vpop.permute.xlu1 %2432  ;;  %v2438_v42 = vpop.permute.xlu0 %2437 }
 0x129   : > { %v2440_v17 = vunpack.i.h.bf16 %v2438_v42  ;;  %v2439_v20 = vunpack.i.l.bf16 %v2438_v42  ;;  %v2435_v31 = vunpack.i.h.bf16 %v2433_v5  ;;  %v2434_v32 = vunpack.i.l.bf16 %v2433_v5 }
 0x12b   : > { %v1019_v35 = vsel %vm1018_vm9, %v1002_v29, %v2439_v20  ;;  %v1020_v40 = vsel %vm1018_vm9, %v1003_v30, %v2440_v17  ;;  %v1005_v53 = vsel %vm1001_vm2, %v988_v48, %v2435_v31  ;;  %v1004_v54 = vsel %vm1001_vm2, %v987_v47, %v2434_v32 }
 0x12c   : > { %v2443_v27 = vpop.permute.xlu1 %2442  ;;  %v2448_v28 = vpop.permute.xlu0 %2447 }
 0x12d   : > { %v2450_v33 = vunpack.i.h.bf16 %v2448_v28  ;;  %v2449_v34 = vunpack.i.l.bf16 %v2448_v28  ;;  %v2445_v36 = vunpack.i.h.bf16 %v2443_v27  ;;  %v2444_v39 = vunpack.i.l.bf16 %v2443_v27 }
 0x12f   : > { %v1036_v45 = vsel %vm1035_vm10, %v1019_v35, %v2449_v34  ;;  %v1037_v46 = vsel %vm1035_vm10, %v1020_v40, %v2450_v33  ;;  %v1021_v57 = vsel %vm1018_vm9, %v1004_v54, %v2444_v39  ;;  %v1022_v58 = vsel %vm1018_vm9, %v1005_v53, %v2445_v36 }
 0x130   : > { %v2453_v49 = vpop.permute.xlu1 %2452  ;;  %v2458_v50 = vpop.permute.xlu0 %2457  ;;  %v1052_v51 = vpack.c.bf16 %v1037_v46, %v1036_v45 }
 0x131   : > { %v2460_v55 = vunpack.i.h.bf16 %v2458_v50  ;;  %v2459_v56 = vunpack.i.l.bf16 %v2458_v50  ;;  %v2455_v5 = vunpack.i.h.bf16 %v2453_v49  ;;  %v2454_v42 = vunpack.i.l.bf16 %v2453_v49 }
 0x132   : > { %2304 = vmatprep.mubr.msk.bf16.mxu0 %vm1103_vm11, %v1052_v51 }
 0x133   : > { %v1039_v38 = vsel %vm1035_vm10, %v1022_v58, %v2460_v55  ;;  %v1038_v59 = vsel %vm1035_vm10, %v1021_v57, %v2459_v56  ;;  %v922_v17 = vsel %vm916_vm4, %v3143_v63, %v2455_v5  ;;  %v921_v20 = vsel %vm916_vm4, %v3097_v52, %v2454_v42 }
 0x134   : > { %v2463_v37 = vpop.permute.xlu1 %2462  ;;  %v2468_v60 = vpop.permute.xlu0 %2467  ;;  %v1053_v61 = vpack.c.bf16 %v1039_v38, %v1038_v59 }
 0x135   : > { %v2465_v9 = vunpack.i.h.bf16 %v2463_v37  ;;  %v2464_v12 = vunpack.i.l.bf16 %v2463_v37  ;;  %v2470_v13 = vunpack.i.h.bf16 %v2468_v60  ;;  %v2469_v15 = vunpack.i.l.bf16 %v2468_v60 }
 0x136   : > { %2305 = vmatmul.mubr.msk.bf16.vlgmr.msra.gmra.mrb[0].mxu0 %vm1103_vm11, %v1053_v61 }
 0x137   : > { %v924_v29 = vsel %vm916_vm4, %v3156_v2, %v2465_v9  ;;  %v923_v30 = vsel %vm916_vm4, %v3158_v3, %v2464_v12  ;;  %v939_v63 = vsel %vm933_vm5, %v922_v17, %v2470_v13  ;;  %v938_v52 = vsel %vm933_vm5, %v921_v20, %v2469_v15 }
 0x138   : > { %v2473_v62 = vpop.permute.xlu1 %2472  ;;  %v2478_v0 = vpop.permute.xlu0 %2477 }
 0x139   : > { %v2475_v21 = vunpack.i.h.bf16 %v2473_v62  ;;  %v2474_v22 = vunpack.i.l.bf16 %v2473_v62  ;;  %v2480_v25 = vunpack.i.h.bf16 %v2478_v0  ;;  %v2479_v26 = vunpack.i.l.bf16 %v2478_v0 }
 0x13b   : > { %v940_v36 = vsel %vm933_vm5, %v923_v30, %v2474_v22  ;;  %v941_v39 = vsel %vm933_vm5, %v924_v29, %v2475_v21  ;;  %v955_v2 = vsel %vm950_vm6, %v938_v52, %v2479_v26  ;;  %v956_v3 = vsel %vm950_vm6, %v939_v63, %v2480_v25 }
 0x13c   : > { %v2483_v1 = vpop.permute.xlu1 %2482  ;;  %v2488_v4 = vpop.permute.xlu0 %2487 }
 0x13d   : > { %v2485_v27 = vunpack.i.h.bf16 %v2483_v1  ;;  %v2484_v28 = vunpack.i.l.bf16 %v2483_v1  ;;  %v2490_v31 = vunpack.i.h.bf16 %v2488_v4  ;;  %v2489_v32 = vunpack.i.l.bf16 %v2488_v4 }
 0x13f   : > { %v957_v45 = vsel %vm950_vm6, %v940_v36, %v2484_v28  ;;  %v958_v46 = vsel %vm950_vm6, %v941_v39, %v2485_v27  ;;  %v972_v47 = vsel %vm967_vm7, %v955_v2, %v2489_v32  ;;  %v973_v48 = vsel %vm967_vm7, %v956_v3, %v2490_v31 }
 0x140   : > { %v2493_v7 = vpop.permute.xlu1 %2492  ;;  %v2498_v43 = vpop.permute.xlu0 %2497 }
 0x141   : > { %v2500_v33 = vunpack.i.h.bf16 %v2498_v43  ;;  %v2499_v34 = vunpack.i.l.bf16 %v2498_v43  ;;  %v2495_v51 = vunpack.i.h.bf16 %v2493_v7  ;;  %v2494_v53 = vunpack.i.l.bf16 %v2493_v7 }
 0x143   : > { %v989_v54 = vsel %vm984_vm8, %v972_v47, %v2499_v34  ;;  %v990_v55 = vsel %vm984_vm8, %v973_v48, %v2500_v33  ;;  %v974_v7 = vsel %vm967_vm7, %v957_v45, %v2494_v53  ;;  %v975_v43 = vsel %vm967_vm7, %v958_v46, %v2495_v51 }
 0x144   : > { %v2503_v23 = vpop.permute.xlu1 %2502  ;;  %v2508_v24 = vpop.permute.xlu0 %2507 }
 0x145   : > { %v2510_v35 = vunpack.i.h.bf16 %v2508_v24  ;;  %v2509_v40 = vunpack.i.l.bf16 %v2508_v24  ;;  %v2505_v56 = vunpack.i.h.bf16 %v2503_v23  ;;  %v2504_v57 = vunpack.i.l.bf16 %v2503_v23 }
 0x147   : > { %v1006_v58 = vsel %vm1001_vm2, %v989_v54, %v2509_v40  ;;  %v1007_v38 = vsel %vm1001_vm2, %v990_v55, %v2510_v35  ;;  %v991_v13 = vsel %vm984_vm8, %v974_v7, %v2504_v57  ;;  %v992_v15 = vsel %vm984_vm8, %v975_v43, %v2505_v56 }
 0x148   : > { %v2513_v41 = vpop.permute.xlu1 %2512  ;;  %v2518_v44 = vpop.permute.xlu0 %2517 }
 0x149   : > { %v2520_v49 = vunpack.i.h.bf16 %v2518_v44  ;;  %v2519_v50 = vunpack.i.l.bf16 %v2518_v44  ;;  %v2515_v60 = vunpack.i.h.bf16 %v2513_v41  ;;  %v2514_v61 = vunpack.i.l.bf16 %v2513_v41 }
 0x14b   : > { %v1023_v1 = vsel %vm1018_vm9, %v1006_v58, %v2519_v50  ;;  %v1024_v4 = vsel %vm1018_vm9, %v1007_v38, %v2520_v49  ;;  %v1009_v22 = vsel %vm1001_vm2, %v992_v15, %v2515_v60  ;;  %v1008_v23 = vsel %vm1001_vm2, %v991_v13, %v2514_v61 }
 0x14c   : > { %v2523_v59 = vpop.permute.xlu1 %2522  ;;  %v2528_v37 = vpop.permute.xlu0 %2527 }
 0x14d   : > { %v2530_v62 = vunpack.i.h.bf16 %v2528_v37  ;;  %v2529_v0 = vunpack.i.l.bf16 %v2528_v37  ;;  %v2525_v5 = vunpack.i.h.bf16 %v2523_v59  ;;  %v2524_v42 = vunpack.i.l.bf16 %v2523_v59 }
 0x14f   : > { %v1040_v9 = vsel %vm1035_vm10, %v1023_v1, %v2529_v0  ;;  %v1041_v12 = vsel %vm1035_vm10, %v1024_v4, %v2530_v62  ;;  %v1025_v26 = vsel %vm1018_vm9, %v1008_v23, %v2524_v42  ;;  %v1026_v27 = vsel %vm1018_vm9, %v1009_v22, %v2525_v5 }
 0x150   : > { %v2533_v17 = vpop.permute.xlu1 %2532  ;;  %v2538_v20 = vpop.permute.xlu0 %2537  ;;  %v1054_v21 = vpack.c.bf16 %v1041_v12, %v1040_v9 }
 0x151   : > { %v2540_v24 = vunpack.i.h.bf16 %v2538_v20  ;;  %v2539_v25 = vunpack.i.l.bf16 %v2538_v20  ;;  %v2535_v36 = vunpack.i.h.bf16 %v2533_v17  ;;  %v2534_v39 = vunpack.i.l.bf16 %v2533_v17 }
 0x152   : > { %2308 = vmatprep.mubr.msk.bf16.mxu0 %vm1103_vm11, %v1054_v21 }
 0x153   : > { %v1043_v28 = vsel %vm1035_vm10, %v1026_v27, %v2540_v24  ;;  %v1042_v29 = vsel %vm1035_vm10, %v1025_v26, %v2539_v25  ;;  %v926_v45 = vsel %vm916_vm4, %v3178_v8, %v2535_v36  ;;  %v925_v46 = vsel %vm916_vm4, %v3168_v6, %v2534_v39 }
 0x154   : > { %v2543_v30 = vpop.permute.xlu1 %2542  ;;  %v2548_v31 = vpop.permute.xlu0 %2547  ;;  %v1055_v32 = vpack.c.bf16 %v1043_v28, %v1042_v29 }
 0x155   : > { %v2545_v41 = vunpack.i.h.bf16 %v2543_v30  ;;  %v2544_v44 = vunpack.i.l.bf16 %v2543_v30  ;;  %v2550_v2 = vunpack.i.h.bf16 %v2548_v31  ;;  %v2549_v3 = vunpack.i.l.bf16 %v2548_v31 }
 0x156   : > { %2309 = vmatmul.mubr.msk.bf16.gmra.mrb[4].mxu0 %vm1103_vm11, %v1055_v32 }
 0x157   : > { %v928_v56 = vsel %vm916_vm4, %v3188_v10, %v2545_v41  ;;  %v927_v57 = vsel %vm916_vm4, %v3190_v11, %v2544_v44  ;;  %v943_v8 = vsel %vm933_vm5, %v926_v45, %v2550_v2  ;;  %v942_v6 = vsel %vm933_vm5, %v925_v46, %v2549_v3 }
 0x158   : > { %v2553_v63 = vpop.permute.xlu1 %2552  ;;  %v2558_v52 = vpop.permute.xlu0 %2557 }
 0x159   : > { %v2555_v47 = vunpack.i.h.bf16 %v2553_v63  ;;  %v2554_v48 = vunpack.i.l.bf16 %v2553_v63  ;;  %v2560_v51 = vunpack.i.h.bf16 %v2558_v52  ;;  %v2559_v53 = vunpack.i.l.bf16 %v2558_v52 }
 0x15b   : > { %v944_v60 = vsel %vm933_vm5, %v927_v57, %v2554_v48  ;;  %v945_v61 = vsel %vm933_vm5, %v928_v56, %v2555_v47  ;;  %v959_v10 = vsel %vm950_vm6, %v942_v6, %v2559_v53  ;;  %v960_v11 = vsel %vm950_vm6, %v943_v8, %v2560_v51 }
 0x15c   : > { %v2563_v33 = vpop.permute.xlu1 %2562  ;;  %v2568_v34 = vpop.permute.xlu0 %2567 }
 0x15d   : > { %v2565_v54 = vunpack.i.h.bf16 %v2563_v33  ;;  %v2564_v55 = vunpack.i.l.bf16 %v2563_v33  ;;  %v2570_v58 = vunpack.i.h.bf16 %v2568_v34  ;;  %v2569_v38 = vunpack.i.l.bf16 %v2568_v34 }
 0x15f   : > { %v961_v5 = vsel %vm950_vm6, %v944_v60, %v2564_v55  ;;  %v962_v42 = vsel %vm950_vm6, %v945_v61, %v2565_v54  ;;  %v976_v7 = vsel %vm967_vm7, %v959_v10, %v2569_v38  ;;  %v977_v43 = vsel %vm967_vm7, %v960_v11, %v2570_v58 }
 0x160   : > { %v2573_v35 = vpop.permute.xlu1 %2572  ;;  %v2578_v40 = vpop.permute.xlu0 %2577 }
 0x161   : > { %v2580_v59 = vunpack.i.h.bf16 %v2578_v40  ;;  %v2579_v37 = vunpack.i.l.bf16 %v2578_v40  ;;  %v2575_v13 = vunpack.i.h.bf16 %v2573_v35  ;;  %v2574_v15 = vunpack.i.l.bf16 %v2573_v35 }
 0x163   : > { %v993_v17 = vsel %vm984_vm8, %v976_v7, %v2579_v37  ;;  %v994_v20 = vsel %vm984_vm8, %v977_v43, %v2580_v59  ;;  %v978_v33 = vsel %vm967_vm7, %v961_v5, %v2574_v15  ;;  %v979_v34 = vsel %vm967_vm7, %v962_v42, %v2575_v13 }
 0x164   : > { %v2583_v49 = vpop.permute.xlu1 %2582  ;;  %v2588_v50 = vpop.permute.xlu0 %2587 }
 0x165   : > { %v2590_v62 = vunpack.i.h.bf16 %v2588_v50  ;;  %v2589_v0 = vunpack.i.l.bf16 %v2588_v50  ;;  %v2585_v21 = vunpack.i.h.bf16 %v2583_v49  ;;  %v2584_v22 = vunpack.i.l.bf16 %v2583_v49 }
 0x167   : > { %v1010_v23 = vsel %vm1001_vm2, %v993_v17, %v2589_v0  ;;  %v1011_v24 = vsel %vm1001_vm2, %v994_v20, %v2590_v62  ;;  %v995_v35 = vsel %vm984_vm8, %v978_v33, %v2584_v22  ;;  %v996_v40 = vsel %vm984_vm8, %v979_v34, %v2585_v21 }
 0x168   : > { %v2593_v1 = vpop.permute.xlu1 %2592  ;;  %v2598_v4 = vpop.permute.xlu0 %2597 }
 0x169   : > { %v2600_v9 = vunpack.i.h.bf16 %v2598_v4  ;;  %v2599_v12 = vunpack.i.l.bf16 %v2598_v4  ;;  %v2595_v27 = vunpack.i.h.bf16 %v2593_v1  ;;  %v2594_v28 = vunpack.i.l.bf16 %v2593_v1 }
 0x16b   : > { %v1027_v31 = vsel %vm1018_vm9, %v1010_v23, %v2599_v12  ;;  %v1028_v32 = vsel %vm1018_vm9, %v1011_v24, %v2600_v9  ;;  %v1013_v3 = vsel %vm1001_vm2, %v996_v40, %v2595_v27  ;;  %v1012_v45 = vsel %vm1001_vm2, %v995_v35, %v2594_v28 }
 0x16c   : > { %v2603_v25 = vpop.permute.xlu1 %2602  ;;  %v2608_v26 = vpop.permute.xlu0 %2607 }
 0x16d   : > { %v2610_v29 = vunpack.i.h.bf16 %v2608_v26  ;;  %v2609_v30 = vunpack.i.l.bf16 %v2608_v26  ;;  %v2605_v63 = vunpack.i.h.bf16 %v2603_v25  ;;  %v2604_v52 = vunpack.i.l.bf16 %v2603_v25 }
 0x16f   : > { %v1044_v36 = vsel %vm1035_vm10, %v1027_v31, %v2609_v30  ;;  %v1045_v39 = vsel %vm1035_vm10, %v1028_v32, %v2610_v29  ;;  %v1029_v48 = vsel %vm1018_vm9, %v1012_v45, %v2604_v52  ;;  %v1030_v49 = vsel %vm1018_vm9, %v1013_v3, %v2605_v63 }
 0x170   : > { %v2613_v41 = vpop.permute.xlu1 %2612  ;;  %v2618_v44 = vpop.permute.xlu0 %2617  ;;  %v1056_v2 = vpack.c.bf16 %v1045_v39, %v1044_v36 }
 0x171   : > { %v2620_v46 = vunpack.i.h.bf16 %v2618_v44  ;;  %v2619_v47 = vunpack.i.l.bf16 %v2618_v44  ;;  %v2615_v8 = vunpack.i.h.bf16 %v2613_v41  ;;  %v2614_v6 = vunpack.i.l.bf16 %v2613_v41 }
 0x172   : > { %2312 = vmatprep.mubr.msk.bf16.mxu0 %vm1103_vm11, %v1056_v2 }
 0x173   : > { %v1047_v50 = vsel %vm1035_vm10, %v1030_v49, %v2620_v46  ;;  %v1046_v51 = vsel %vm1035_vm10, %v1029_v48, %v2619_v47  ;;  %v930_v1 = vsel %vm916_vm4, %v3210_v16, %v2615_v8  ;;  %v929_v4 = vsel %vm916_vm4, %v3200_v14, %v2614_v6 }
 0x174   : > { %v2623_v53 = vpop.permute.xlu1 %2622  ;;  %v2628_v54 = vpop.permute.xlu0 %2627  ;;  %v1057_v55 = vpack.c.bf16 %v1047_v50, %v1046_v51 }
 0x175   : > { %v2625_v60 = vunpack.i.h.bf16 %v2623_v53  ;;  %v2624_v61 = vunpack.i.l.bf16 %v2623_v53  ;;  %v2630_v62 = vunpack.i.h.bf16 %v2628_v54  ;;  %v2629_v0 = vunpack.i.l.bf16 %v2628_v54 }
 0x176   : > { %2313 = vmatmul.mubr.msk.bf16.gmra.mrb[8].mxu0 %vm1103_vm11, %v1057_v55 }
 0x177   : > { %v932_v13 = vsel %vm916_vm4, %v3220_v18, %v2625_v60  ;;  %v931_v15 = vsel %vm916_vm4, %v3222_v19, %v2624_v61  ;;  %v947_v16 = vsel %vm933_vm5, %v930_v1, %v2630_v62  ;;  %v946_v14 = vsel %vm933_vm5, %v929_v4, %v2629_v0 }
 0x178   : > { %v2633_v56 = vpop.permute.xlu1 %2632  ;;  %v2638_v57 = vpop.permute.xlu0 %2637 }
 0x179   : > { %v2635_v10 = vunpack.i.h.bf16 %v2633_v56  ;;  %v2634_v11 = vunpack.i.l.bf16 %v2633_v56  ;;  %v2640_v7 = vunpack.i.h.bf16 %v2638_v57  ;;  %v2639_v43 = vunpack.i.l.bf16 %v2638_v57 }
 0x17b   : > { %v948_v23 = vsel %vm933_vm5, %v931_v15, %v2634_v11  ;;  %v949_v24 = vsel %vm933_vm5, %v932_v13, %v2635_v10  ;;  %v963_v18 = vsel %vm950_vm6, %v946_v14, %v2639_v43  ;;  %v964_v19 = vsel %vm950_vm6, %v947_v16, %v2640_v7  ;;  %v3405_v11 = vld [vmem:[%s3800_s2] ss:$0 sm:$0xff] }
 0x17c   : > { %v2643_v58 = vpop.permute.xlu1 %2642  ;;  %v2648_v38 = vpop.permute.xlu0 %2647 }
 0x17d   : > { %v2645_v9 = vunpack.i.h.bf16 %v2643_v58  ;;  %v2644_v12 = vunpack.i.l.bf16 %v2643_v58  ;;  %v2650_v17 = vunpack.i.h.bf16 %v2648_v38  ;;  %v2649_v20 = vunpack.i.l.bf16 %v2648_v38 }
 0x17f   : > { %v965_v29 = vsel %vm950_vm6, %v948_v23, %v2644_v12  ;;  %v966_v30 = vsel %vm950_vm6, %v949_v24, %v2645_v9  ;;  %v980_v31 = vsel %vm967_vm7, %v963_v18, %v2649_v20  ;;  %v981_v32 = vsel %vm967_vm7, %v964_v19, %v2650_v17 }
 0x180   : > { %v2653_v59 = vpop.permute.xlu1 %2652  ;;  %v2658_v37 = vpop.permute.xlu0 %2657 }
 0x181   : > { %v2660_v21 = vunpack.i.h.bf16 %v2658_v37  ;;  %v2659_v22 = vunpack.i.l.bf16 %v2658_v37  ;;  %v2655_v33 = vunpack.i.h.bf16 %v2653_v59  ;;  %v2654_v34 = vunpack.i.l.bf16 %v2653_v59 }
 0x183   : > { %v997_v36 = vsel %vm984_vm8, %v980_v31, %v2659_v22  ;;  %v998_v39 = vsel %vm984_vm8, %v981_v32, %v2660_v21  ;;  %v982_v54 = vsel %vm967_vm7, %v965_v29, %v2654_v34  ;;  %v983_v55 = vsel %vm967_vm7, %v966_v30, %v2655_v33 }
 0x184   : > { %v2663_v5 = vpop.permute.xlu1 %2662  ;;  %v2668_v42 = vpop.permute.xlu0 %2667 }
 0x185   : > { %v2670_v25 = vunpack.i.h.bf16 %v2668_v42  ;;  %v2669_v26 = vunpack.i.l.bf16 %v2668_v42  ;;  %v2665_v35 = vunpack.i.h.bf16 %v2663_v5  ;;  %v2664_v40 = vunpack.i.l.bf16 %v2663_v5 }
 0x187   : > { %v1014_v41 = vsel %vm1001_vm2, %v997_v36, %v2669_v26  ;;  %v1015_v44 = vsel %vm1001_vm2, %v998_v39, %v2670_v25  ;;  %v999_v58 = vsel %vm984_vm8, %v982_v54, %v2664_v40  ;;  %v1000_v38 = vsel %vm984_vm8, %v983_v55, %v2665_v35 }
 0x188   : > { %v2673_v27 = vpop.permute.xlu1 %2672  ;;  %v2678_v28 = vpop.permute.xlu0 %2677 }
 0x189   : > { %v2680_v63 = vunpack.i.h.bf16 %v2678_v28  ;;  %v2679_v52 = vunpack.i.l.bf16 %v2678_v28  ;;  %v2675_v45 = vunpack.i.h.bf16 %v2673_v27  ;;  %v2674_v46 = vunpack.i.l.bf16 %v2673_v27 }
 0x18b   : > { %v1031_v49 = vsel %vm1018_vm9, %v1014_v41, %v2679_v52  ;;  %v1032_v50 = vsel %vm1018_vm9, %v1015_v44, %v2680_v63  ;;  %v1016_v59 = vsel %vm1001_vm2, %v999_v58, %v2674_v46  ;;  %v1017_v37 = vsel %vm1001_vm2, %v1000_v38, %v2675_v45 }
 0x18c   : > { %v2683_v2 = vpop.permute.xlu1 %2682  ;;  %v2688_v3 = vpop.permute.xlu0 %2687 }
 0x18d   : > { %v2690_v47 = vunpack.i.h.bf16 %v2688_v3  ;;  %v2689_v48 = vunpack.i.l.bf16 %v2688_v3  ;;  %v2685_v51 = vunpack.i.h.bf16 %v2683_v2  ;;  %v2684_v53 = vunpack.i.l.bf16 %v2683_v2 }
 0x18f   : > { %v1048_v56 = vsel %vm1035_vm10, %v1031_v49, %v2689_v48  ;;  %v1049_v57 = vsel %vm1035_vm10, %v1032_v50, %v2690_v47  ;;  %v1033_v62 = vsel %vm1018_vm9, %v1016_v59, %v2684_v53  ;;  %v1034_v0 = vsel %vm1018_vm9, %v1017_v37, %v2685_v51 }
 0x190   : > { %v1058_v8 = vpack.c.bf16 %v1049_v57, %v1048_v56  ;;  %v2693_v6 = vpop.permute.xlu1 %2692 }
 0x191   : > { %v2695_v60 = vunpack.i.h.bf16 %v2693_v6  ;;  %v2694_v61 = vunpack.i.l.bf16 %v2693_v6 }
 0x192   : > { %2316 = vmatprep.mubr.msk.bf16.mxu0 %vm1103_vm11, %v1058_v8 }
 0x193   : > { %v1050_v1 = vsel %vm1035_vm10, %v1033_v62, %v2694_v61  ;;  %v1051_v4 = vsel %vm1035_vm10, %v1034_v0, %v2695_v60 }
 0x194   : > { %v1059_v10 = vpack.c.bf16 %v1051_v4, %v1050_v1 }
 0x196   : > { %2317 = vmatmul.mubr.msk.bf16.gmra.mrb[12].mxu0 %vm1103_vm11, %v1059_v10 }
 0x209   : > { %v2306_v5 = vpop.f32.mrb[0].mxu0 }
 0x20a   : > { %v1175_v42 = vadd.f32 %v2306_v5, %v3405_v11  ;;  %v1166_v7 = vpop.f32.mrb[1].mxu0 }
 0x20b   : > { %v1167_v43 = vadd.f32 %v3405_v11, %v1166_v7  ;;  %v2307_v9 = vpop.f32.mrb[2].mxu0 }
 0x20c   : > { %v1178_v12 = vadd.f32 %v2307_v9, %v3405_v11  ;;  %v1169_v13 = vpop.f32.mrb[3].mxu0  ;;  %v1231_v17 = vmax.f32 %v1175_v42, 0.0 }
 0x20d   : > { %v1170_v15 = vadd.f32 %v3405_v11, %v1169_v13  ;;  %v1229_v16 = vmax.f32 %v1167_v43, 0.0 }
 0x20e   : > { %v1232_v20 = vmax.f32 %v1178_v12, 0.0 }
 0x20f   : > { %v1230_v14 = vmax.f32 %v1170_v15, 0.0 }
 0x210   : > { %v3411_v21 = vmax.f32 %v1231_v17, %v1232_v20 }
 0x211   : > { %v3413_v22 = vmax.f32 %v1229_v16, %v1230_v14 }
 0x212   : > { %1359 = vrot.lane.b32.xlu0 %v3411_v21, %s2913_s12  ;;  %1263 = vrot.lane.b32.xlu1 %v3411_v21, %s2914_s13 }
 0x216   : > { %1287 = vrot.lane.b32.xlu1 %v3411_v21, %s2915_s14  ;;  %1261 = vrot.lane.b32.xlu0 %v3413_v22, %s2914_s13 }
 0x21a   : > { %1311 = vrot.lane.b32.xlu1 %v3411_v21, %s2916_s15  ;;  %1285 = vrot.lane.b32.xlu0 %v3413_v22, %s2915_s14 }
 0x21e   : > { %1357 = vrot.lane.b32.xlu1 %v3413_v22, %s2913_s12  ;;  %1309 = vrot.lane.b32.xlu0 %v3413_v22, %s2916_s15 }
 0x229   : > { %v2310_v23 = vpop.f32.mrb[4].mxu0 }
 0x22a   : > { %v1191_v24 = vadd.f32 %v2310_v23, %v3405_v11  ;;  %v1182_v25 = vpop.f32.mrb[5].mxu0 }
 0x22b   : > { %v1183_v26 = vadd.f32 %v3405_v11, %v1182_v25  ;;  %v2311_v27 = vpop.f32.mrb[6].mxu0 }
 0x22c   : > { %v1194_v28 = vadd.f32 %v2311_v27, %v3405_v11  ;;  %v1185_v18 = vpop.f32.mrb[7].mxu0  ;;  %v1235_v29 = vmax.f32 %v1191_v24, 0.0 }
 0x22d   : > { %v1186_v19 = vadd.f32 %v3405_v11, %v1185_v18  ;;  %v1233_v31 = vmax.f32 %v1183_v26, 0.0 }
 0x22e   : > { %v1236_v30 = vmax.f32 %v1194_v28, 0.0 }
 0x22f   : > { %v1234_v32 = vmax.f32 %v1186_v19, 0.0 }
 0x230   : > { %v3435_v63 = vmax.f32 %v1235_v29, %v1236_v30 }
 0x231   : > { %v3437_v52 = vmax.f32 %v1233_v31, %v1234_v32 }
 0x232   : > { %1291 = vrot.lane.b32.xlu1 %v3435_v63, %s2915_s14  ;;  %1267 = vrot.lane.b32.xlu0 %v3435_v63, %s2914_s13 }
 0x236   : > { %1289 = vrot.lane.b32.xlu1 %v3437_v52, %s2915_s14  ;;  %1315 = vrot.lane.b32.xlu0 %v3435_v63, %s2916_s15 }
 0x23a   : > { %1361 = vrot.lane.b32.xlu1 %v3437_v52, %s2913_s12  ;;  %1363 = vrot.lane.b32.xlu0 %v3435_v63, %s2913_s12 }
 0x23e   : > { %1265 = vrot.lane.b32.xlu0 %v3437_v52, %s2914_s13 }
 0x242   : > { %1313 = vrot.lane.b32.xlu0 %v3437_v52, %s2916_s15 }
 0x249   : > { %v2314_v33 = vpop.f32.mrb[8].mxu0 }
 0x24a   : > { %v1207_v34 = vadd.f32 %v2314_v33, %v3405_v11  ;;  %v1198_v36 = vpop.f32.mrb[9].mxu0 }
 0x24b   : > { %v1199_v39 = vadd.f32 %v3405_v11, %v1198_v36  ;;  %v2315_v35 = vpop.f32.mrb[10].mxu0 }
 0x24c   : > { %v1210_v40 = vadd.f32 %v2315_v35, %v3405_v11  ;;  %v1201_v41 = vpop.f32.mrb[11].mxu0  ;;  %v1239_v2 = vmax.f32 %v1207_v34, 0.0 }
 0x24d   : > { %v1202_v44 = vadd.f32 %v3405_v11, %v1201_v41  ;;  %v1237_v45 = vmax.f32 %v1199_v39, 0.0 }
 0x24e   : > { %v1240_v3 = vmax.f32 %v1210_v40, 0.0 }
 0x24f   : > { %v1238_v46 = vmax.f32 %v1202_v44, 0.0 }
 0x250   : > { %v3459_v47 = vmax.f32 %v1239_v2, %v1240_v3 }
 0x251   : > { %v3461_v48 = vmax.f32 %v1237_v45, %v1238_v46 }
 0x252   : > { %1295 = vrot.lane.b32.xlu1 %v3459_v47, %s2915_s14  ;;  %1271 = vrot.lane.b32.xlu0 %v3459_v47, %s2914_s13 }
 0x256   : > { %1293 = vrot.lane.b32.xlu1 %v3461_v48, %s2915_s14  ;;  %1319 = vrot.lane.b32.xlu0 %v3459_v47, %s2916_s15 }
 0x25a   : > { %1317 = vrot.lane.b32.xlu1 %v3461_v48, %s2916_s15  ;;  %1269 = vrot.lane.b32.xlu0 %v3461_v48, %s2914_s13 }
 0x25e   : > { %1365 = vrot.lane.b32.xlu1 %v3461_v48, %s2913_s12  ;;  %1367 = vrot.lane.b32.xlu0 %v3459_v47, %s2913_s12 }
 0x269   : > { %v2318_v49 = vpop.f32.mrb[12].mxu0 }
 0x26a   : > { %v1223_v50 = vadd.f32 %v2318_v49, %v3405_v11  ;;  %v1214_v51 = vpop.f32.mrb[13].mxu0 }
 0x26b   : > { %v1215_v53 = vadd.f32 %v3405_v11, %v1214_v51  ;;  %v2319_v54 = vpop.f32.mrb[14].mxu0 }
 0x26c   : > { %v1226_v55 = vadd.f32 %v2319_v54, %v3405_v11  ;;  %v1217_v56 = vpop.f32.mrb[15].mxu0  ;;  %v1243_v58 = vmax.f32 %v1223_v50, 0.0 }
 0x26d   : > { %v1218_v57 = vadd.f32 %v3405_v11, %v1217_v56  ;;  %v1241_v8 = vmax.f32 %v1215_v53, 0.0 }
 0x26e   : > { %v1244_v38 = vmax.f32 %v1226_v55, 0.0 }
 0x26f   : > { %v1242_v6 = vmax.f32 %v1218_v57, 0.0 }
 0x270   : > { %v3483_v59 = vmax.f32 %v1243_v58, %v1244_v38 }
 0x271   : > { %v3485_v37 = vmax.f32 %v1241_v8, %v1242_v6 }
 0x273   : > { %1297 = vrot.lane.b32.xlu1 %v3485_v37, %s2915_s14  ;;  %1273 = vrot.lane.b32.xlu0 %v3485_v37, %s2914_s13 }
 0x277   : > { %1321 = vrot.lane.b32.xlu1 %v3485_v37, %s2916_s15  ;;  %1275 = vrot.lane.b32.xlu0 %v3483_v59, %s2914_s13 }
 0x27b   : > { %1369 = vrot.lane.b32.xlu1 %v3485_v37, %s2913_s12  ;;  %1323 = vrot.lane.b32.xlu0 %v3483_v59, %s2916_s15 }
 0x27f   : > { %1299 = vrot.lane.b32.xlu1 %v3483_v59, %s2915_s14 }
 0x283   : > { %1371 = vrot.lane.b32.xlu1 %v3483_v59, %s2913_s12 }
 0x284   : > { %v1360_v60 = vpop.permute.xlu0 %1359  ;;  %v1264_v61 = vpop.permute.xlu1 %1263 }
 0x285   : > { %v1334_v1 = vsel %vm916_vm4, %v3411_v21, %v1264_v61 }
 0x288   : > { %v1288_v62 = vpop.permute.xlu1 %1287  ;;  %v1262_v0 = vpop.permute.xlu0 %1261 }
 0x289   : > { %v1342_v4 = vsel %vm933_vm5, %v1334_v1, %v1288_v62  ;;  %v1382_v10 = vsel %vm916_vm4, %v1264_v61, %v1288_v62  ;;  %v1333_v9 = vsel %vm916_vm4, %v3413_v22, %v1262_v0 }
 0x28c   : > { %v1312_v11 = vpop.permute.xlu1 %1311  ;;  %v1286_v5 = vpop.permute.xlu0 %1285 }
 0x28d   : > { %v1350_v42 = vsel %vm950_vm6, %v1342_v4, %v1312_v11  ;;  %v1390_v7 = vsel %vm933_vm5, %v1382_v10, %v1312_v11  ;;  %v1341_v13 = vsel %vm933_vm5, %v1333_v9, %v1286_v5  ;;  %v1381_v15 = vsel %vm916_vm4, %v1262_v0, %v1286_v5 }
 0x28e   : > { %v1398_v43 = vsel %vm950_vm6, %v1390_v7, %v1360_v60 }
 0x28f   : > { %v1406_v12 = vmax.f32 %v1350_v42, %v1398_v43 }
 0x290   : > { %v1358_v17 = vpop.permute.xlu1 %1357  ;;  %v1310_v20 = vpop.permute.xlu0 %1309 }
 0x291   : > { %v1349_v16 = vsel %vm950_vm6, %v1341_v13, %v1310_v20  ;;  %v1389_v14 = vsel %vm933_vm5, %v1381_v15, %v1310_v20  ;;  %1433 = vrot.lane.b32.xlu1 %v1406_v12, %s2917_s16 }
 0x292   : > { %v1397_v21 = vsel %vm950_vm6, %v1389_v14, %v1358_v17 }
 0x293   : > { %v1405_v23 = vmax.f32 %v1349_v16, %v1397_v21 }
 0x295   : > { %1431 = vrot.lane.b32.xlu0 %v1405_v23, %s2917_s16 }
 0x2a4   : > { %v1268_v22 = vpop.permute.xlu0 %1267  ;;  %v1292_v24 = vpop.permute.xlu1 %1291 }
 0x2a5   : > { %v1336_v26 = vsel %vm916_vm4, %v3435_v63, %v1268_v22  ;;  %v1384_v27 = vsel %vm916_vm4, %v1268_v22, %v1292_v24 }
 0x2a6   : > { %v1344_v28 = vsel %vm933_vm5, %v1336_v26, %v1292_v24 }
 0x2a8   : > { %v1316_v25 = vpop.permute.xlu0 %1315  ;;  %v1290_v32 = vpop.permute.xlu1 %1289 }
 0x2a9   : > { %v1392_v18 = vsel %vm933_vm5, %v1384_v27, %v1316_v25  ;;  %v1352_v29 = vsel %vm950_vm6, %v1344_v28, %v1316_v25 }
 0x2ac   : > { %v1364_v19 = vpop.permute.xlu0 %1363  ;;  %v1362_v35 = vpop.permute.xlu1 %1361 }
 0x2ad   : > { %v1400_v30 = vsel %vm950_vm6, %v1392_v18, %v1364_v19  ;;  %v3575_v19 = vld [vmem:[#allocation3] sm:$0xff] }
 0x2ae   : > { %v1408_v31 = vmax.f32 %v1352_v29, %v1400_v30  ;;  %v2861_v29 = vld [vmem:[%s3801_s3 + $0x40] sm:$0xff]  }
 0x2af   : > { %v2862_v30 = vld [vmem:[%s3801_s3] sm:$0xff]   ;;  %2248 = vmatprep.subr.bf16.mxu1 %v2861_v29 }
 0x2b0   : > { %1437 = vrot.lane.b32.xlu1 %v1408_v31, %s2917_s16  ;;  %v1266_v33 = vpop.permute.xlu0 %1265  ;;  %v2863_v31 = vld [vmem:[%s3801_s3 + $0x48] sm:$0xff]   ;;  %2249 = vmatpush3.bf16.msra.mxu1 %v2862_v30 }
 0x2b1   : > { %v1335_v34 = vsel %vm916_vm4, %v3437_v52, %v1266_v33  ;;  %v1383_v63 = vsel %vm916_vm4, %v1266_v33, %v1290_v32  ;;  %v2864_v33 = vld [vmem:[%s3801_s3 + $0x8] sm:$0xff]   ;;  %2250 = vmatprep.subr.bf16.mxu1 %v2863_v31 }
 0x2b2   : > { %v1343_v36 = vsel %vm933_vm5, %v1335_v34, %v1290_v32  ;;  %v2865_v34 = vld [vmem:[%s3801_s3 + $0x50] sm:$0xff]  }
 0x2b4   : > { %v1314_v39 = vpop.permute.xlu0 %1313  ;;  %2251 = vmatpush3.bf16.msra.mxu1 %v2864_v33 }
 0x2b5   : > { %v1351_v40 = vsel %vm950_vm6, %v1343_v36, %v1314_v39  ;;  %v1391_v41 = vsel %vm933_vm5, %v1383_v63, %v1314_v39  ;;  %v2866_v63 = vld [vmem:[%s3801_s3 + $0x10] sm:$0xff]   ;;  %2252 = vmatprep.subr.bf16.mxu1 %v2865_v34  ;;  %v2867_v36 = vld [vmem:[%s3801_s3 + $0x58] sm:$0xff]  }
 0x2b6   : > { %v1399_v44 = vsel %vm950_vm6, %v1391_v41, %v1362_v35  ;;  %v2868_v39 = vld [vmem:[%s3801_s3 + $0x18] sm:$0xff]   ;;  %v2869_v35 = vld [vmem:[%s3801_s3 + $0x60] sm:$0xff]   ;;  %v2871_v41 = vld [vmem:[%s3801_s3 + $0x68] sm:$0xff]  }
 0x2b7   : > { %v1407_v2 = vmax.f32 %v1351_v40, %v1399_v44  ;;  %v2870_v40 = vld [vmem:[%s3801_s3 + $0x20] sm:$0xff]  }
 0x2b8   : > { %2253 = vmatpush3.bf16.msra.mxu1 %v2866_v63 }
 0x2b9   : > { %1435 = vrot.lane.b32.xlu0 %v1407_v2, %s2917_s16  ;;  %2254 = vmatprep.subr.bf16.mxu1 %v2867_v36  ;;  %v2872_v2 = vld [vmem:[%s3801_s3 + $0x28] sm:$0xff]  }
 0x2bc   : > { %2255 = vmatpush3.bf16.msra.mxu1 %v2868_v39 }
 0x2bd   : > { %2256 = vmatprep.subr.bf16.mxu1 %v2869_v35 }
 0x2c0   : > { %2257 = vmatpush3.bf16.msra.mxu1 %v2870_v40 }
 0x2c1   : > { %2258 = vmatprep.subr.bf16.mxu1 %v2871_v41 }
 0x2c4   : > { %v1296_v3 = vpop.permute.xlu1 %1295  ;;  %v1272_v45 = vpop.permute.xlu0 %1271  ;;  %2259 = vmatpush3.bf16.msra.mxu1 %v2872_v2 }
 0x2c5   : > { %v1338_v51 = vsel %vm916_vm4, %v3459_v47, %v1272_v45  ;;  %v1386_v56 = vsel %vm916_vm4, %v1272_v45, %v1296_v3  ;;  %v2874_v45 = vld [vmem:[%s3801_s3 + $0x30] sm:$0xff]  }
 0x2c6   : > { %v1346_v57 = vsel %vm933_vm5, %v1338_v51, %v1296_v3  ;;  %v2873_v3 = vld [vmem:[%s3801_s3 + $0x70] sm:$0xff]  }
 0x2c7   : > { %2260 = vmatprep.subr.bf16.mxu1 %v2873_v3 }
 0x2c8   : > { %v1294_v46 = vpop.permute.xlu1 %1293  ;;  %v1320_v49 = vpop.permute.xlu0 %1319  ;;  %2261 = vmatpush3.bf16.msra.mxu1 %v2874_v45 }
 0x2c9   : > { %v1394_v58 = vsel %vm933_vm5, %v1386_v56, %v1320_v49  ;;  %v1354_v60 = vsel %vm950_vm6, %v1346_v57, %v1320_v49  ;;  %v2875_v49 = vld [vmem:[%s3801_s3 + $0x78] sm:$0xff]  }
 0x2ca   : > { %2262 = vmatprep.subr.bf16.mxu1 %v2875_v49 }
 0x2cc   : > { %v1318_v52 = vpop.permute.xlu1 %1317  ;;  %v1270_v50 = vpop.permute.xlu0 %1269 }
 0x2cd   : > { %v1337_v53 = vsel %vm916_vm4, %v3461_v48, %v1270_v50  ;;  %v1385_v54 = vsel %vm916_vm4, %v1270_v50, %v1294_v46 }
 0x2ce   : > { %v1345_v55 = vsel %vm933_vm5, %v1337_v53, %v1294_v46  ;;  %v1393_v8 = vsel %vm933_vm5, %v1385_v54, %v1318_v52 }
 0x2cf   : > { %v1353_v47 = vsel %vm950_vm6, %v1345_v55, %v1318_v52  ;;  %v2876_v52 = vld [vmem:[%s3801_s3 + $0x38] sm:$0xff]  }
 0x2d0   : > { %v1366_v38 = vpop.permute.xlu1 %1365  ;;  %v1368_v6 = vpop.permute.xlu0 %1367  ;;  %2263 = vmatpush3.bf16.msra.mxu1 %v2876_v52 }
 0x2d1   : > { %v1401_v48 = vsel %vm950_vm6, %v1393_v8, %v1366_v38  ;;  %v1402_v61 = vsel %vm950_vm6, %v1394_v58, %v1368_v6  ;;  %v2877_v6 = vld [vmem:[%s3801_s3 + $0x80] sm:$0xff]  }
 0x2d2   : > { %v1409_v62 = vmax.f32 %v1353_v47, %v1401_v48  ;;  %v1410_v0 = vmax.f32 %v1354_v60, %v1402_v61  ;;  %2320 = vmatprep.subr.bf16.mxu0 %v2877_v6  ;;  %v2878_v60 = vld [vmem:[%s3801_s3 + $0x88] sm:$0xff]  }
 0x2d3   : > { %2321 = vmatpush3.bf16.msra.mxu0 %v2877_v6 }
 0x2d4   : > { %1439 = vrot.lane.b32.xlu0 %v1409_v62, %s2917_s16  ;;  %1441 = vrot.lane.b32.xlu1 %v1410_v0, %s2917_s16  ;;  %v1489_v0 = vld [vmem:[#allocation3 + $0x48] sm:$0xff] }
 0x2d5   : > { %2322 = vmatprep.subr.bf16.mxu0 %v2878_v60 }
 0x2d7   : > { %2323 = vmatpush3.bf16.msra.mxu0 %v2878_v60 }
 0x2e5   : > { %v1298_v1 = vpop.permute.xlu1 %1297  ;;  %v1274_v4 = vpop.permute.xlu0 %1273 }
 0x2e6   : > { %v1339_v11 = vsel %vm916_vm4, %v3485_v37, %v1274_v4  ;;  %v1387_v5 = vsel %vm916_vm4, %v1274_v4, %v1298_v1 }
 0x2e7   : > { %v1347_v42 = vsel %vm933_vm5, %v1339_v11, %v1298_v1 }
 0x2e9   : > { %v1322_v10 = vpop.permute.xlu1 %1321  ;;  %v1276_v12 = vpop.permute.xlu0 %1275 }
 0x2ea   : > { %v1395_v7 = vsel %vm933_vm5, %v1387_v5, %v1322_v10  ;;  %v1355_v9 = vsel %vm950_vm6, %v1347_v42, %v1322_v10  ;;  %v1340_v20 = vsel %vm916_vm4, %v3483_v59, %v1276_v12 }
 0x2ed   : > { %v1370_v43 = vpop.permute.xlu1 %1369  ;;  %v1324_v14 = vpop.permute.xlu0 %1323 }
 0x2ee   : > { %v1403_v13 = vsel %vm950_vm6, %v1395_v7, %v1370_v43 }
 0x2ef   : > { %v1411_v15 = vmax.f32 %v1355_v9, %v1403_v13 }
 0x2f1   : > { %v1300_v17 = vpop.permute.xlu1 %1299  ;;  %1443 = vrot.lane.b32.xlu0 %v1411_v15, %s2917_s16 }
 0x2f2   : > { %v1388_v37 = vsel %vm916_vm4, %v1276_v12, %v1300_v17  ;;  %v1348_v16 = vsel %vm933_vm5, %v1340_v20, %v1300_v17 }
 0x2f3   : > { %v1396_v23 = vsel %vm933_vm5, %v1388_v37, %v1324_v14  ;;  %v1356_v22 = vsel %vm950_vm6, %v1348_v16, %v1324_v14 }
 0x2f5   : > { %v1372_v21 = vpop.permute.xlu1 %1371 }
 0x2f6   : > { %v1404_v24 = vsel %vm950_vm6, %v1396_v23, %v1372_v21 }
 0x2f7   : > { %v1412_v25 = vmax.f32 %v1356_v22, %v1404_v24 }
 0x2f9   : > { %1445 = vrot.lane.b32.xlu1 %v1412_v25, %s2917_s16 }
 0x303   : > { %v1434_v26 = vpop.permute.xlu1 %1433 }
 0x304   : > { %1458 = vst.msk [vmem:[#allocation3 + $0x10] sm:$0xff] %vm1456_vm12, %v1434_v26 }
 0x307   : > { %v1432_v59 = vpop.permute.xlu0 %1431 }
 0x308   : > { %1457 = vst.msk [vmem:[#allocation3 + $0x8] sm:$0xff] %vm1456_vm12, %v1432_v59 }
 0x30b   : > { %v3571_v28 = vld [vmem:[#allocation3 + $0x10] sm:$0xff] }
 0x30f   : > { %v3569_v27 = vld [vmem:[#allocation3 + $0x8] sm:$0xff] }
 0x310   : > { %v2701_v18 = vpack.i.bf16 %v3571_v28, %v3569_v27  ;;  %v2706_v32 = vpack.i.bf16 %v3569_v27, %v3575_v19 }
 0x312   : > { %2702 = vrot.lane.b32.xlu1 %v2701_v18, %s2918_s29  ;;  %2697 = vrot.lane.b32.xlu0 %v2701_v18, %s2914_s13 }
 0x316   : > { %2707 = vrot.lane.b32.xlu0 %v2706_v32, %s2907_s18 }
 0x31a   : > { %2712 = vrot.lane.b32.xlu0 %v2706_v32, %s2910_s7 }
 0x31e   : > { %2717 = vrot.lane.b32.xlu0 %v2701_v18, %s2913_s12 }
 0x322   : > { %v1438_v44 = vpop.permute.xlu1 %1437 }
 0x323   : > { %1460 = vst.msk [vmem:[#allocation3 + $0x20] sm:$0xff] %vm1456_vm12, %v1438_v44 }
 0x32a   : > { %v3636_v51 = vld [vmem:[#allocation3 + $0x20] sm:$0xff] }
 0x32b   : > { %v1436_v46 = vpop.permute.xlu0 %1435 }
 0x32c   : > { %1459 = vst.msk [vmem:[#allocation3 + $0x18] sm:$0xff] %vm1456_vm12, %v1436_v46 }
 0x333   : > { %v3634_v50 = vld [vmem:[#allocation3 + $0x18] sm:$0xff] }
 0x334   : > { %v2721_v53 = vpack.i.bf16 %v3634_v50, %v3571_v28  ;;  %v2736_v54 = vpack.i.bf16 %v3636_v51, %v3634_v50 }
 0x336   : > { %2722 = vrot.lane.b32.xlu1 %v2721_v53, %s2919_s27  ;;  %2737 = vrot.lane.b32.xlu0 %v2736_v54, %s2918_s29 }
 0x33a   : > { %2727 = vrot.lane.b32.xlu1 %v2721_v53, %s2920_s28 }
 0x33e   : > { %2732 = vrot.lane.b32.xlu1 %v2736_v54, %s2914_s13 }
 0x342   : > { %2742 = vrot.lane.b32.xlu1 %v2721_v53, %s2907_s18 }
 0x346   : > { %v1442_v55 = vpop.permute.xlu1 %1441  ;;  %2747 = vrot.lane.b32.xlu1 %v2721_v53, %s2910_s7  ;;  %v1440_v56 = vpop.permute.xlu0 %1439 }
 0x347   : > { %1462 = vst.msk [vmem:[#allocation3 + $0x30] sm:$0xff] %vm1456_vm12, %v1442_v55  ;;  %1461 = vst.msk [vmem:[#allocation3 + $0x28] sm:$0xff] %vm1456_vm12, %v1440_v56 }
 0x34a   : > { %2752 = vrot.lane.b32.xlu1 %v2736_v54, %s2913_s12 }
 0x34e   : > { %2757 = vrot.lane.b32.xlu1 %v2721_v53, %s2915_s14  ;;  %v3652_v57 = vld [vmem:[#allocation3 + $0x28] sm:$0xff]  ;;  %v3654_v58 = vld [vmem:[#allocation3 + $0x30] sm:$0xff] }
 0x34f   : > { %v2761_v38 = vpack.i.bf16 %v3652_v57, %v3636_v51  ;;  %v2776_v8 = vpack.i.bf16 %v3654_v58, %v3652_v57 }
 0x351   : > { %2762 = vrot.lane.b32.xlu0 %v2761_v38, %s2919_s27 }
 0x352   : > { %2777 = vrot.lane.b32.xlu1 %v2776_v8, %s2918_s29 }
 0x355   : > { %2767 = vrot.lane.b32.xlu0 %v2761_v38, %s2920_s28 }
 0x359   : > { %2772 = vrot.lane.b32.xlu0 %v2776_v8, %s2914_s13 }
 0x35d   : > { %2782 = vrot.lane.b32.xlu0 %v2761_v38, %s2907_s18 }
 0x361   : > { %2787 = vrot.lane.b32.xlu0 %v2761_v38, %s2910_s7 }
 0x363   : > { %v1444_v47 = vpop.permute.xlu0 %1443 }
 0x364   : > { %1463 = vst.msk [vmem:[#allocation3 + $0x38] sm:$0xff] %vm1456_vm12, %v1444_v47 }
 0x365   : > { %2792 = vrot.lane.b32.xlu0 %v2776_v8, %s2913_s12 }
 0x369   : > { %2797 = vrot.lane.b32.xlu0 %v2761_v38, %s2915_s14 }
 0x36b   : > { %v1446_v48 = vpop.permute.xlu1 %1445  ;;  %v3675_v61 = vld [vmem:[#allocation3 + $0x38] sm:$0xff] }
 0x36c   : > { %1464 = vst.msk [vmem:[#allocation3 + $0x40] sm:$0xff] %vm1456_vm12, %v1446_v48  ;;  %v2806_v62 = vpack.i.bf16 %v3675_v61, %v3654_v58 }
 0x36e   : > { %2807 = vrot.lane.b32.xlu1 %v2806_v62, %s2919_s27 }
 0x372   : > { %2812 = vrot.lane.b32.xlu1 %v2806_v62, %s2920_s28 }
 0x373   : > { %v1488_v1 = vld [vmem:[#allocation3 + $0x40] sm:$0xff] }
 0x374   : > { %v2801_v4 = vpack.i.bf16 %v1489_v0, %v1488_v1  ;;  %v2816_v10 = vpack.i.bf16 %v1488_v1, %v3675_v61 }
 0x376   : > { %2802 = vrot.lane.b32.xlu0 %v2801_v4, %s2919_s27  ;;  %2817 = vrot.lane.b32.xlu1 %v2816_v10, %s2914_s13  ;;  %s2921_s13 = smov 32  }
 0x37a   : > { %2822 = vrot.lane.b32.xlu0 %v2816_v10, %s2918_s29  ;;  %2832 = vrot.lane.b32.xlu1 %v2806_v62, %s2907_s18 }
 0x37e   : > { %2827 = vrot.lane.b32.xlu0 %v2801_v4, %s2920_s28  ;;  %2837 = vrot.lane.b32.xlu1 %v2806_v62, %s2910_s7 }
 0x382   : > { %2847 = vrot.lane.b32.xlu0 %v2806_v62, %s2915_s14  ;;  %2842 = vrot.lane.b32.xlu1 %v2816_v10, %s2913_s12 }
 0x384   : > { %v2698_v11 = vpop.permute.xlu0 %2697  ;;  %v2703_v7 = vpop.permute.xlu1 %2702 }
 0x385   : > { %v2705_v43 = vunpack.i.h.bf16 %v2703_v7  ;;  %v2704_v9 = vunpack.i.l.bf16 %v2703_v7  ;;  %v2700_v13 = vunpack.i.h.bf16 %v2698_v11  ;;  %v2699_v15 = vunpack.i.l.bf16 %v2698_v11 }
 0x386   : > { %2852 = vrot.lane.b32.xlu1 %v2801_v4, %s2915_s14 }
 0x387   : > { %v1731_v18 = vsel %vm967_vm7, %v2699_v15, %v2704_v9  ;;  %v1732_v29 = vsel %vm967_vm7, %v2700_v13, %v2705_v43 }
 0x388   : > { %v2708_v5 = vpop.permute.xlu0 %2707 }
 0x389   : > { %v2710_v17 = vunpack.i.h.bf16 %v2708_v5  ;;  %v2709_v20 = vunpack.i.l.bf16 %v2708_v5 }
 0x38b   : > { %v1707_v25 = vsel %vm967_vm7, %v3569_v27, %v2710_v17  ;;  %v1706_v26 = vsel %vm967_vm7, %v3575_v19, %v2709_v20 }
 0x38c   : > { %v2713_v42 = vpop.permute.xlu0 %2712 }
 0x38d   : > { %v2715_v16 = vunpack.i.h.bf16 %v2713_v42  ;;  %v2714_v14 = vunpack.i.l.bf16 %v2713_v42 }
 0x38f   : > { %v1714_v30 = vsel %vm1035_vm10, %v1706_v26, %v2714_v14  ;;  %v1715_v31 = vsel %vm1035_vm10, %v1707_v25, %v2715_v16 }
 0x390   : > { %v2718_v12 = vpop.permute.xlu0 %2717 }
 0x391   : > { %v2720_v21 = vunpack.i.h.bf16 %v2718_v12  ;;  %v2719_v23 = vunpack.i.l.bf16 %v2718_v12 }
 0x393   : > { %v1723_v27 = vsel %vm1722_vm13, %v1714_v30, %v2719_v23  ;;  %v1724_v36 = vsel %vm1722_vm13, %v1715_v31, %v2720_v21 }
 0x394   : > { %v1755_v41 = vpack.c.bf16 %v1724_v36, %v1723_v27 }
 0x3a8   : > { %v2723_v37 = vpop.permute.xlu1 %2722  ;;  %v2738_v45 = vpop.permute.xlu0 %2737 }
 0x3a9   : > { %v2725_v22 = vunpack.i.h.bf16 %v2723_v37  ;;  %v2724_v24 = vunpack.i.l.bf16 %v2723_v37  ;;  %v2740_v6 = vunpack.i.h.bf16 %v2738_v45  ;;  %v2739_v60 = vunpack.i.l.bf16 %v2738_v45 }
 0x3ab   : > { %v1739_v34 = vsel %vm1035_vm10, %v1731_v18, %v2724_v24  ;;  %v1740_v63 = vsel %vm1035_vm10, %v1732_v29, %v2725_v22 }
 0x3ac   : > { %v2728_v59 = vpop.permute.xlu1 %2727 }
 0x3ad   : > { %v2730_v32 = vunpack.i.h.bf16 %v2728_v59  ;;  %v2729_v33 = vunpack.i.l.bf16 %v2728_v59 }
 0x3af   : > { %v1747_v19 = vsel %vm1722_vm13, %v1739_v34, %v2729_v33  ;;  %v1748_v39 = vsel %vm1722_vm13, %v1740_v63, %v2730_v32 }
 0x3b0   : > { %v2733_v35 = vpop.permute.xlu1 %2732  ;;  %v1756_v40 = vpack.c.bf16 %v1748_v39, %v1747_v19 }
 0x3b1   : > { %v2735_v53 = vunpack.i.h.bf16 %v2733_v35  ;;  %v2734_v54 = vunpack.i.l.bf16 %v2733_v35 }
 0x3b2   : > { %1962 = vmatprep.mubr.bf16.mxu1 %v1756_v40 }
 0x3b3   : > { %1963 = vmatmul.mubr.bf16.vlgmr.msra.gmra.mrb[0].mxu1 %v1755_v41  ;;  %v1733_v10 = vsel %vm967_vm7, %v2734_v54, %v2739_v60  ;;  %v1734_v11 = vsel %vm967_vm7, %v2735_v53, %v2740_v6 }
 0x3b4   : > { %v2743_v44 = vpop.permute.xlu1 %2742 }
 0x3b5   : > { %v2745_v55 = vunpack.i.h.bf16 %v2743_v44  ;;  %v2744_v56 = vunpack.i.l.bf16 %v2743_v44 }
 0x3b7   : > { %v1709_v5 = vsel %vm967_vm7, %v3634_v50, %v2745_v55  ;;  %v1708_v42 = vsel %vm967_vm7, %v3571_v28, %v2744_v56 }
 0x3b8   : > { %v2748_v2 = vpop.permute.xlu1 %2747 }
 0x3b9   : > { %v2750_v47 = vunpack.i.h.bf16 %v2748_v2  ;;  %v2749_v48 = vunpack.i.l.bf16 %v2748_v2 }
 0x3bb   : > { %v1716_v43 = vsel %vm1035_vm10, %v1708_v42, %v2749_v48  ;;  %v1717_v9 = vsel %vm1035_vm10, %v1709_v5, %v2750_v47 }
 0x3bc   : > { %v2753_v3 = vpop.permute.xlu1 %2752 }
 0x3bd   : > { %v2755_v62 = vunpack.i.h.bf16 %v2753_v3  ;;  %v2754_v0 = vunpack.i.l.bf16 %v2753_v3 }
 0x3bf   : > { %v1725_v20 = vsel %vm1722_vm13, %v1716_v43, %v2754_v0  ;;  %v1726_v37 = vsel %vm1722_vm13, %v1717_v9, %v2755_v62 }
 0x3c0   : > { %v2758_v46 = vpop.permute.xlu1 %2757  ;;  %v1758_v21 = vpack.c.bf16 %v1726_v37, %v1725_v20 }
 0x3c1   : > { %v2760_v49 = vunpack.i.h.bf16 %v2758_v46  ;;  %v2759_v52 = vunpack.i.l.bf16 %v2758_v46 }
 0x3c3   : > { %v1757_v38 = vpack.c.bf16 %v2760_v49, %v2759_v52  ;;  %v2763_v8 = vpop.permute.xlu0 %2762 }
 0x3c4   : > { %v2765_v1 = vunpack.i.h.bf16 %v2763_v8  ;;  %v2764_v4 = vunpack.i.l.bf16 %v2763_v8  ;;  %v2778_v26 = vpop.permute.xlu1 %2777 }
 0x3c5   : > { %2324 = vmatprep.mubr.msk.bf16.mxu0 %vm967_vm7, %v1757_v38  ;;  %v2780_v63 = vunpack.i.h.bf16 %v2778_v26  ;;  %v2779_v27 = vunpack.i.l.bf16 %v2778_v26 }
 0x3c6   : > { %v1741_v15 = vsel %vm1035_vm10, %v1733_v10, %v2764_v4  ;;  %v1742_v17 = vsel %vm1035_vm10, %v1734_v11, %v2765_v1 }
 0x3c7   : > { %v2768_v7 = vpop.permute.xlu0 %2767 }
 0x3c8   : > { %v2770_v12 = vunpack.i.h.bf16 %v2768_v7  ;;  %v2769_v13 = vunpack.i.l.bf16 %v2768_v7 }
 0x3ca   : > { %v1749_v50 = vsel %vm1722_vm13, %v1741_v15, %v2769_v13  ;;  %v1750_v16 = vsel %vm1722_vm13, %v1742_v17, %v2770_v12 }
 0x3cb   : > { %v2773_v28 = vpop.permute.xlu0 %2772  ;;  %v1759_v14 = vpack.c.bf16 %v1750_v16, %v1749_v50 }
 0x3cc   : > { %v2775_v30 = vunpack.i.h.bf16 %v2773_v28  ;;  %v2774_v31 = vunpack.i.l.bf16 %v2773_v28 }
 0x3cd   : > { %1970 = vmatprep.mubr.bf16.mxu1 %v1759_v14 }
 0x3ce   : > { %1971 = vmatmul.mubr.bf16.gmra.mrb[4].mxu1 %v1758_v21  ;;  %v1736_v44 = vsel %vm967_vm7, %v2775_v30, %v2780_v63  ;;  %v1735_v2 = vsel %vm967_vm7, %v2774_v31, %v2779_v27 }
 0x3cf   : > { %v2783_v23 = vpop.permute.xlu0 %2782 }
 0x3d0   : > { %v2785_v32 = vunpack.i.h.bf16 %v2783_v23  ;;  %v2784_v33 = vunpack.i.l.bf16 %v2783_v23 }
 0x3d2   : > { %v1711_v3 = vsel %vm967_vm7, %v3652_v57, %v2785_v32  ;;  %v1710_v45 = vsel %vm967_vm7, %v3636_v51, %v2784_v33 }
 0x3d3   : > { %v2788_v22 = vpop.permute.xlu0 %2787 }
 0x3d4   : > { %v2790_v36 = vunpack.i.h.bf16 %v2788_v22  ;;  %v2789_v19 = vunpack.i.l.bf16 %v2788_v22 }
 0x3d6   : > { %v1718_v49 = vsel %vm1035_vm10, %v1710_v45, %v2789_v19  ;;  %v1719_v52 = vsel %vm1035_vm10, %v1711_v3, %v2790_v36 }
 0x3d7   : > { %v2793_v24 = vpop.permute.xlu0 %2792 }
 0x3d8   : > { %v2795_v39 = vunpack.i.h.bf16 %v2793_v24  ;;  %v2794_v35 = vunpack.i.l.bf16 %v2793_v24 }
 0x3da   : > { %v1727_v38 = vsel %vm1722_vm13, %v1718_v49, %v2794_v35  ;;  %v1728_v8 = vsel %vm1722_vm13, %v1719_v52, %v2795_v39 }
 0x3db   : > { %v2798_v25 = vpop.permute.xlu0 %2797  ;;  %v1761_v48 = vpack.c.bf16 %v1728_v8, %v1727_v38 }
 0x3dc   : > { %v2800_v59 = vunpack.i.h.bf16 %v2798_v25  ;;  %v2799_v18 = vunpack.i.l.bf16 %v2798_v25 }
 0x3de   : > { %v1760_v29 = vpack.c.bf16 %v2800_v59, %v2799_v18 }
 0x3e0   : > { %v2808_v34 = vpop.permute.xlu1 %2807  ;;  %2325 = vmatmul.mubr.msk.bf16.vlgmr.msra.gmra.mrb[16].mxu0 %vm967_vm7, %v1760_v29 }
 0x3e1   : > { %v2810_v40 = vunpack.i.h.bf16 %v2808_v34  ;;  %v2809_v41 = vunpack.i.l.bf16 %v2808_v34 }
 0x3e3   : > { %v1743_v55 = vsel %vm1035_vm10, %v1735_v2, %v2809_v41  ;;  %v1744_v56 = vsel %vm1035_vm10, %v1736_v44, %v2810_v40 }
 0x3e4   : > { %v2813_v46 = vpop.permute.xlu1 %2812 }
 0x3e5   : > { %v2815_v53 = vunpack.i.h.bf16 %v2813_v46  ;;  %v2814_v54 = vunpack.i.l.bf16 %v2813_v46 }
 0x3e7   : > { %v1751_v57 = vsel %vm1722_vm13, %v1743_v55, %v2814_v54  ;;  %v1752_v6 = vsel %vm1722_vm13, %v1744_v56, %v2815_v53  ;;  %v2210_v54 = vld [vmem:[%s3802_s4] ss:$0 sm:$0xff] }
 0x3e8   : > { %v2818_v51 = vpop.permute.xlu1 %2817  ;;  %v2803_v60 = vpop.permute.xlu0 %2802  ;;  %v1762_v47 = vpack.c.bf16 %v1752_v6, %v1751_v57 }
 0x3e9   : > { %v2820_v1 = vunpack.i.h.bf16 %v2818_v51  ;;  %v2819_v4 = vunpack.i.l.bf16 %v2818_v51  ;;  %v2805_v7 = vunpack.i.h.bf16 %v2803_v60  ;;  %v2804_v43 = vunpack.i.l.bf16 %v2803_v60 }
 0x3ea   : > { %1978 = vmatprep.mubr.bf16.mxu1 %v1762_v47 }
 0x3eb   : > { %1979 = vmatmul.mubr.bf16.gmra.mrb[8].mxu1 %v1761_v48 }
 0x3ec   : > { %v2833_v62 = vpop.permute.xlu1 %2832  ;;  %v2823_v0 = vpop.permute.xlu0 %2822 }
 0x3ed   : > { %v2825_v10 = vunpack.i.h.bf16 %v2823_v0  ;;  %v2824_v11 = vunpack.i.l.bf16 %v2823_v0  ;;  %v2835_v9 = vunpack.i.h.bf16 %v2833_v62  ;;  %v2834_v12 = vunpack.i.l.bf16 %v2833_v62 }
 0x3ef   : > { %v1738_v5 = vsel %vm967_vm7, %v2820_v1, %v2825_v10  ;;  %v1737_v42 = vsel %vm967_vm7, %v2819_v4, %v2824_v11  ;;  %v1713_v23 = vsel %vm967_vm7, %v3675_v61, %v2835_v9  ;;  %v1712_v22 = vsel %vm967_vm7, %v3654_v58, %v2834_v12 }
 0x3f0   : > { %v2838_v13 = vpop.permute.xlu1 %2837  ;;  %v2828_v15 = vpop.permute.xlu0 %2827  ;;  %v1745_v16 = vsel %vm1035_vm10, %v1737_v42, %v2804_v43  ;;  %v1746_v28 = vsel %vm1035_vm10, %v1738_v5, %v2805_v7 }
 0x3f1   : > { %v2830_v17 = vunpack.i.h.bf16 %v2828_v15  ;;  %v2829_v20 = vunpack.i.l.bf16 %v2828_v15  ;;  %v2840_v37 = vunpack.i.h.bf16 %v2838_v13  ;;  %v2839_v50 = vunpack.i.l.bf16 %v2838_v13 }
 0x3f3   : > { %v1753_v14 = vsel %vm1722_vm13, %v1745_v16, %v2829_v20  ;;  %v1754_v21 = vsel %vm1722_vm13, %v1746_v28, %v2830_v17  ;;  %v1720_v31 = vsel %vm1035_vm10, %v1712_v22, %v2839_v50  ;;  %v1721_v32 = vsel %vm1035_vm10, %v1713_v23, %v2840_v37 }
 0x3f4   : > { %v2843_v24 = vpop.permute.xlu1 %2842  ;;  %v2848_v25 = vpop.permute.xlu0 %2847  ;;  %v1765_v26 = vpack.c.bf16 %v1754_v21, %v1753_v14 }
 0x3f5   : > { %v2845_v59 = vunpack.i.h.bf16 %v2843_v24  ;;  %v2844_v18 = vunpack.i.l.bf16 %v2843_v24  ;;  %v2850_v29 = vunpack.i.h.bf16 %v2848_v25  ;;  %v2849_v30 = vunpack.i.l.bf16 %v2848_v25 }
 0x3f6   : > { %1986 = vmatprep.mubr.bf16.mxu1 %v1765_v26 }
 0x3f7   : > { %v1763_v33 = vpack.c.bf16 %v2850_v29, %v2849_v30  ;;  %v1729_v34 = vsel %vm1722_vm13, %v1720_v31, %v2844_v18  ;;  %v1730_v61 = vsel %vm1722_vm13, %v1721_v32, %v2845_v59 }
 0x3f8   : > { %v2853_v63 = vpop.permute.xlu1 %2852  ;;  %v1764_v27 = vpack.c.bf16 %v1730_v61, %v1729_v34 }
 0x3f9   : > { %v2855_v58 = vunpack.i.h.bf16 %v2853_v63  ;;  %v2854_v36 = vunpack.i.l.bf16 %v2853_v63  ;;  %2328 = vmatprep.mubr.msk.bf16.mxu0 %vm967_vm7, %v1763_v33 }
 0x3fa   : > { %1987 = vmatmul.mubr.bf16.gmra.mrb[12].mxu1 %v1764_v27 }
 0x3fb   : > { %v1766_v19 = vpack.c.bf16 %v2855_v58, %v2854_v36 }
 0x3fd   : > { %2329 = vmatmul.mubr.msk.bf16.gmra.mrb[20].mxu0 %vm967_vm7, %v1766_v19 }
 0x486   : > { %v2264_v39 = vpop.f32.mrb[0].mxu1 }
 0x487   : > { %v2265_v35 = vpop.f32.mrb[1].mxu1 }
 0x488   : > { %v2266_v40 = vadd.f32 %v2265_v35, %v2264_v39  ;;  %v2267_v41 = vpop.f32.mrb[2].mxu1 }
 0x489   : > { %v2268_v44 = vpop.f32.mrb[3].mxu1 }
 0x48a   : > { %v2269_v2 = vadd.f32 %v2268_v44, %v2267_v41  ;;  %v1965_v38 = vadd.f32 %v2266_v40, %v2210_v54 }
 0x48c   : > { %v1968_v47 = vadd.f32 %v2269_v2, %v2210_v54 }
 0x4a1   : > { %v2270_v3 = vpop.f32.mrb[4].mxu1 }
 0x4a2   : > { %v2271_v45 = vpop.f32.mrb[5].mxu1 }
 0x4a3   : > { %v2272_v46 = vadd.f32 %v2271_v45, %v2270_v3  ;;  %v2273_v49 = vpop.f32.mrb[6].mxu1 }
 0x4a4   : > { %v2274_v52 = vpop.f32.mrb[7].mxu1 }
 0x4a5   : > { %v2275_v53 = vadd.f32 %v2274_v52, %v2273_v49  ;;  %v1973_v55 = vadd.f32 %v2272_v46, %v2210_v54 }
 0x4a7   : > { %v1976_v6 = vadd.f32 %v2275_v53, %v2210_v54 }
 0x4b3   : > { %v2326_v56 = vpop.f32.mrb[16].mxu0 }
 0x4b4   : > { %v2038_v8 = vadd.f32 %v2326_v56, %v1973_v55  ;;  %v2029_v57 = vpop.f32.mrb[17].mxu0 }
 0x4b5   : > { %v2030_v51 = vadd.f32 %v2029_v57, %v1965_v38  ;;  %v2327_v60 = vpop.f32.mrb[18].mxu0 }
 0x4b6   : > { %v2041_v48 = vadd.f32 %v2327_v60, %v1976_v6  ;;  %v2032_v62 = vpop.f32.mrb[19].mxu0  ;;  %v2062_v1 = vmax.f32 %v2038_v8, 0.0 }
 0x4b7   : > { %v2033_v0 = vadd.f32 %v2032_v62, %v1968_v47  ;;  %v2060_v10 = vmax.f32 %v2030_v51, 0.0 }
 0x4b8   : > { %v2063_v4 = vmax.f32 %v2041_v48, 0.0 }
 0x4b9   : > { %v2061_v11 = vmax.f32 %v2033_v0, 0.0 }
 0x4ba   : > { %v2069_v5 = vmax.f32 %v2062_v1, %v2063_v4 }
 0x4bb   : > { %v3755_v42 = vmax.f32 %v2060_v10, %v2061_v11 }
 0x4bc   : > { %2094 = vrot.lane.b32.xlu1 %v2069_v5, %s2913_s12  ;;  %2078 = vrot.lane.b32.xlu0 %v2069_v5, %s2915_s14 }
 0x4be   : > { %v2276_v7 = vpop.f32.mrb[8].mxu1 }
 0x4bf   : > { %v2277_v43 = vpop.f32.mrb[9].mxu1 }
 0x4c0   : > { %v2278_v9 = vadd.f32 %v2277_v43, %v2276_v7  ;;  %v2279_v12 = vpop.f32.mrb[10].mxu1 }
 0x4c1   : > { %v2280_v13 = vpop.f32.mrb[11].mxu1 }
 0x4c2   : > { %v2281_v15 = vadd.f32 %v2280_v13, %v2279_v12  ;;  %v1981_v14 = vadd.f32 %v2278_v9, %v2210_v54 }
 0x4c4   : > { %v1984_v26 = vadd.f32 %v2281_v15, %v2210_v54 }
 0x4cd   : > { %v2282_v17 = vpop.f32.mrb[12].mxu1 }
 0x4ce   : > { %v2283_v20 = vpop.f32.mrb[13].mxu1 }
 0x4cf   : > { %v2284_v37 = vadd.f32 %v2283_v20, %v2282_v17  ;;  %v2285_v50 = vpop.f32.mrb[14].mxu1 }
 0x4d0   : > { %v2286_v16 = vpop.f32.mrb[15].mxu1  ;;  %v2330_v28 = vpop.f32.mrb[20].mxu0 }
 0x4d1   : > { %v2287_v21 = vadd.f32 %v2286_v16, %v2285_v50  ;;  %v1989_v23 = vadd.f32 %v2284_v37, %v2210_v54  ;;  %v2045_v22 = vpop.f32.mrb[21].mxu0 }
 0x4d2   : > { %v2046_v24 = vadd.f32 %v2045_v22, %v1981_v14  ;;  %v2331_v25 = vpop.f32.mrb[22].mxu0 }
 0x4d3   : > { %v2054_v59 = vadd.f32 %v2330_v28, %v1989_v23  ;;  %v1992_v18 = vadd.f32 %v2287_v21, %v2210_v54  ;;  %v2048_v29 = vpop.f32.mrb[23].mxu0 }
 0x4d4   : > { %v2049_v30 = vadd.f32 %v2048_v29, %v1984_v26  ;;  %v2064_v32 = vmax.f32 %v2046_v24, 0.0 }
 0x4d5   : > { %v2057_v31 = vadd.f32 %v2331_v25, %v1992_v18  ;;  %v2066_v34 = vmax.f32 %v2054_v59, 0.0 }
 0x4d6   : > { %v2065_v33 = vmax.f32 %v2049_v30, 0.0 }
 0x4d7   : > { %v2067_v61 = vmax.f32 %v2057_v31, 0.0 }
 0x4d8   : > { %v2070_v63 = vmax.f32 %v2064_v32, %v2065_v33 }
 0x4d9   : > { %v2071_v27 = vmax.f32 %v2066_v34, %v2067_v61 }
 0x4da   : > { %2096 = vrot.lane.b32.xlu1 %v2070_v63, %s2913_s12  ;;  %2080 = vrot.lane.b32.xlu0 %v2070_v63, %s2915_s14 }
 0x4de   : > { %2098 = vrot.lane.b32.xlu1 %v2071_v27, %s2913_s12  ;;  %2082 = vrot.lane.b32.xlu0 %v2071_v27, %s2915_s14 }
 0x4e2   : > { %2092 = vrot.lane.b32.xlu1 %v3755_v42, %s2913_s12  ;;  %2076 = vrot.lane.b32.xlu0 %v3755_v42, %s2915_s14  ;;  %s2195_s14 = sshll.u32 %s3808_s21, 3 }
 0x52e   : > { %v2095_v58 = vpop.permute.xlu1 %2094  ;;  %v2079_v36 = vpop.permute.xlu0 %2078 }
 0x52f   : > { %v2089_v19 = vsel %vm933_vm5, %v2069_v5, %v2079_v36  ;;  %v2105_v39 = vsel %vm933_vm5, %v2079_v36, %v2095_v58 }
 0x530   : > { %v2109_v35 = vmax.f32 %v2089_v19, %v2105_v39 }
 0x532   : > { %2113 = vrot.lane.b32.xlu0 %v2109_v35, %s2921_s13 }
 0x54c   : > { %v2097_v40 = vpop.permute.xlu1 %2096  ;;  %v2081_v41 = vpop.permute.xlu0 %2080 }
 0x54d   : > { %v2090_v44 = vsel %vm933_vm5, %v2070_v63, %v2081_v41  ;;  %v2106_v2 = vsel %vm933_vm5, %v2081_v41, %v2097_v40 }
 0x54e   : > { %v2110_v3 = vmax.f32 %v2090_v44, %v2106_v2 }
 0x550   : > { %v2099_v45 = vpop.permute.xlu1 %2098  ;;  %v2083_v46 = vpop.permute.xlu0 %2082  ;;  %2117 = vrot.lane.b32.xlu1 %v2110_v3, %s2919_s27 }
 0x551   : > { %v2091_v49 = vsel %vm933_vm5, %v2071_v27, %v2083_v46  ;;  %v2107_v52 = vsel %vm933_vm5, %v2083_v46, %v2099_v45 }
 0x552   : > { %v2111_v53 = vmax.f32 %v2091_v49, %v2107_v52 }
 0x554   : > { %2121 = vrot.lane.b32.xlu0 %v2111_v53, %s2913_s12  ;;  %v2093_v54 = vpop.permute.xlu1 %2092  ;;  %v2077_v55 = vpop.permute.xlu0 %2076  ;;  %s316_s12 = scalar_lea.vmem %s3803_s5, %s2195_s14 }
 0x555   : > { %v2088_v56 = vsel %vm933_vm5, %v3755_v42, %v2077_v55  ;;  %v2104_v38 = vsel %vm933_vm5, %v2077_v55, %v2093_v54 }
 0x556   : > { %v2108_v57 = vmax.f32 %v2088_v56, %v2104_v38 }
 0x5a4   : > { %v2114_v8 = vpop.permute.xlu0 %2113 }
 0x5a5   : > { %v2124_v51 = vsel %vm967_vm7, %v2108_v57, %v2114_v8 }
 0x5c2   : > { %v2118_v6 = vpop.permute.xlu1 %2117 }
 0x5c3   : > { %v2125_v60 = vsel %vm1035_vm10, %v2124_v51, %v2118_v6 }
 0x5c6   : > { %v2122_v47 = vpop.permute.xlu0 %2121 }
 0x5c7   : > { %v2126_v48 = vsel %vm1722_vm13, %v2125_v60, %v2122_v47 }
 0x5c8   : > { %2127 = vst [vmem:[%s316_s12] sm:$0xff] %v2126_v48 }
 0x5c9 PF: > { %p12_p9 = scmp.ge.s32.totalorder %s2969_s22, 4   ;;  %s3804_s18 = smov %s2897_s19 }
 0x5ca   : > { %s3805_s19 = smov %s2978_s25  ;;  %s3806_s20 = smov %s2969_s22 }
 0x5cb   :  { %14 = sbr.rel (!%p12_p9) target bundleno = 2 (0x2), region = 117 }

</bundles_post_ra>
